<compile_context>
chip_gen: v7x
topology: tpu7x:2x2x1
jax: 0.10.0
libtpu: 0.0.40
codegen_flags: <defaults>
</compile_context>

<pallas_src>
import functools

import jax
import jax.numpy as jnp
from jax.experimental import pallas as pl
from jax.experimental.pallas import tpu as pltpu


def _bilinear_matrix(in_size: int, scale: int) -> jnp.ndarray:
    """(out, in) interpolation matrix matching PyTorch bilinear, align_corners=False."""
    out_size = in_size * scale
    o = jnp.arange(out_size, dtype=jnp.float32)
    src = (o + 0.5) / scale - 0.5
    src = jnp.maximum(src, 0.0)                      # PyTorch clamps negative source coords
    i0 = jnp.minimum(jnp.floor(src).astype(jnp.int32), in_size - 1)
    i1 = jnp.minimum(i0 + 1, in_size - 1)
    frac = src - i0.astype(jnp.float32)
    A = jnp.zeros((out_size, in_size), jnp.float32)
    A = A.at[jnp.arange(out_size), i0].add(1.0 - frac)
    A = A.at[jnp.arange(out_size), i1].add(frac)
    return A


def _decoder_kernel(x_ref, awt_ref, m_ref, b_ref, o_ref, *, Kb, Ho):
    # x_ref  : (C*H, W)       one batch element, channel-major rows (NCHW reshaped)
    # awt_ref: (W, Wo)        bilinear W factor (transposed)
    # m_ref  : (Kb*Ho, C*H)   kron(fused conv weights, A_h) block for this k-tile
    # b_ref  : SMEM (K,)      fused bias  b1 @ w2 + b2
    # o_ref  : (Kb, Ho, Wo)   output-channel block, already NCHW, Wo lane-dense
    kt = pl.program_id(1)
    # W-pass upsample once on the whole slab: (C*H, W) @ (W, Wo) -> lane-dense (C*H, Wo).
    xw = jnp.dot(x_ref[...], awt_ref[...], preferred_element_type=jnp.float32)
    # Fused channel contraction + H-pass upsample as a single MXU matmul:
    # (Kb*Ho, C*H) @ (C*H, Wo) -> (Kb*Ho, Wo).
    y = jnp.dot(m_ref[...], xw, preferred_element_type=jnp.float32)
    # Per-output-channel bias add + store (slices are tile-aligned: Ho % 8 == 0, Wo = 128).
    for k in range(Kb):
        o_ref[k] = (y[k * Ho:(k + 1) * Ho, :] + b_ref[kt * Kb + k]).astype(o_ref.dtype)


def decoder_forward(x_nchw, w1, b1, w2, b2, scale=4):
    N, C, H, W = x_nchw.shape
    K = w2.shape[1]
    Ho, Wo = H * scale, W * scale

    # Fuse conv1 -> conv2 (the module has no nonlinearity between them; the conv1 bias
    # commutes through the bilinear upsample because interpolation rows sum to 1).
    w_eff = w1 @ w2                                   # (C, K)
    b_eff = b1 @ w2 + b2                              # (K,)

    # Separable bilinear factors.
    A_h = _bilinear_matrix(H, scale)                  # (Ho, H)
    A_wT = _bilinear_matrix(W, scale).T               # (W, Wo)

    # Fold the channel contraction into the H-pass:
    #   M[k*Ho + ho, c*H + h] = w_eff[c, k] * A_h[ho, h]          shape (K*Ho, C*H)
    M = jnp.einsum('ck,oh->koch', w_eff, A_h).reshape(K * Ho, C * H)

    # NCHW -> (N, C*H, W): pure reshape, no transpose.
    x_k = x_nchw.reshape(N, C * H, W)

    # Single-core chips: never split K.  Only at N == 1 split K so a second TensorCore
    # (v7x megacore) still has work.
    KT = (2 if K % 2 == 0 else 1) if N == 1 else 1
    Kb = K // KT

    kernel = functools.partial(_decoder_kernel, Kb=Kb, Ho=Ho)

    out = pl.pallas_call(
        kernel,
        out_shape=jax.ShapeDtypeStruct((N, K, Ho, Wo), jnp.float32),
        grid=(N, KT),
        in_specs=[
            pl.BlockSpec((None, C * H, W), lambda n, kt: (n, 0, 0)),
            pl.BlockSpec((W, Wo), lambda n, kt: (0, 0)),
            pl.BlockSpec((Kb * Ho, C * H), lambda n, kt: (kt, 0)),
            pl.BlockSpec(memory_space=pltpu.MemorySpace.SMEM),       # fused bias
        ],
        out_specs=pl.BlockSpec((None, Kb, Ho, Wo), lambda n, kt: (n, kt, 0, 0)),
        compiler_params=pltpu.CompilerParams(
            dimension_semantics=("parallel", "parallel"),
            vmem_limit_bytes=16 * 1024 * 1024,       # real footprint ~7 MiB double-buffered
        ),
    )(x_k, A_wT, M, b_eff)
    return out                                        # already NCHW: (N, K, Ho, Wo)


def _upsample_bilinear_nchw(x, scale):
    """PyTorch-style bilinear x`scale` upsample, align_corners=False (gather formulation)."""
    N, C, H, W = x.shape

    def coords(n):
        o = jnp.arange(n * scale, dtype=jnp.float32)
        src = jnp.maximum((o + 0.5) / scale - 0.5, 0.0)
        i0 = jnp.minimum(jnp.floor(src).astype(jnp.int32), n - 1)
        i1 = jnp.minimum(i0 + 1, n - 1)
        f = src - i0.astype(jnp.float32)
        return i0, i1, f

    h0, h1, fh = coords(H)
    w0, w1, fw = coords(W)
    xh = (x[:, :, h0, :] * (1.0 - fh)[None, None, :, None]
          + x[:, :, h1, :] * fh[None, None, :, None])
    xw = (xh[:, :, :, w0] * (1.0 - fw)[None, None, None, :]
          + xh[:, :, :, w1] * fw[None, None, None, :])
    return xw


def _reference(x_nchw, w1, b1, w2, b2, scale=4):
    """Pure-JAX reference: unfused 1x1 convs + gather-based bilinear upsample."""
    t = jnp.einsum('nchw,ck->nkhw', x_nchw, w1) + b1[None, :, None, None]
    u = _upsample_bilinear_nchw(t, scale)
    return jnp.einsum('nchw,ck->nkhw', u, w2) + b2[None, :, None, None]


if __name__ == "__main__":
    # Shapes consistent with the module: in_channels=16 -> hidden=4 -> num_classes=8.
    N, C, H, W = 2, 16, 32, 32
    num_classes = 8
    C4 = C // 4

    key = jax.random.PRNGKey(0)
    kx, k1, kb1, k2, kb2 = jax.random.split(key, 5)
    x = jax.random.normal(kx, (N, C, H, W), jnp.float32)
    # 1x1 conv weights kept as channel-matmul matrices (PyTorch layout: (out, in, 1, 1)).
    w1 = jax.random.normal(k1, (C, C4), jnp.float32) * 0.1
    b1 = jax.random.normal(kb1, (C4,), jnp.float32) * 0.1
    w2 = jax.random.normal(k2, (C4, num_classes), jnp.float32) * 0.1
    b2 = jax.random.normal(kb2, (num_classes,), jnp.float32) * 0.1

    out = decoder_forward(x, w1, b1, w2, b2)
    out = jax.block_until_ready(out)

    ref = _reference(x, w1, b1, w2, b2)
    assert out.shape == (N, num_classes, 4 * H, 4 * W), out.shape
    assert jnp.allclose(out, ref, atol=1e-4, rtol=1e-4), "mismatch vs reference"
    print("KERNEL_OK")
</pallas_src>

<mosaic_0001>
module attributes {stable_mosaic.version = 11 : i64} {
  func.func @_decoder_kernel(%arg0: i32, %arg1: i32, %arg2: memref<1x512x32xf32, #tpu.memory_space<vmem>>, %arg3: memref<32x128xf32, #tpu.memory_space<vmem>>, %arg4: memref<1024x512xf32, #tpu.memory_space<vmem>>, %arg5: memref<8xf32, #tpu.memory_space<smem>>, %arg6: memref<1x8x128x128xf32, #tpu.memory_space<vmem>>) attributes {dimension_semantics = [#tpu.dimension_semantics<parallel>, #tpu.dimension_semantics<parallel>], iteration_bounds = array<i64: 2, 1>, scalar_prefetch = 0 : i64, scratch_operands = 0 : i64, tpu.core_type = #tpu.core_type<tc>, window_params = [{transform_indices = @transform_0, window_bounds = array<i64: 1, 512, 32>}, {pipeline_mode = #tpu.pipeline_mode<synchronous>, transform_indices = @transform_1, window_bounds = array<i64: 32, 128>}, {transform_indices = @transform_2, window_bounds = array<i64: 1024, 512>}, {transform_indices = @transform_3, window_bounds = array<i64: 8>}, {transform_indices = @transform_4, window_bounds = array<i64: 1, 8, 128, 128>}]} {
    %c0 = arith.constant 0 : index
    %c0_0 = arith.constant 0 : index
    %c0_1 = arith.constant 0 : index
    %0 = vector.load %arg2[%c0, %c0_0, %c0_1] : memref<1x512x32xf32, #tpu.memory_space<vmem>>, vector<1x512x32xf32>
    %1 = vector.shape_cast %0 : vector<1x512x32xf32> to vector<512x32xf32>
    %c0_2 = arith.constant 0 : index
    %c0_3 = arith.constant 0 : index
    %2 = vector.load %arg3[%c0_2, %c0_3] : memref<32x128xf32, #tpu.memory_space<vmem>>, vector<32x128xf32>
    %cst = arith.constant dense<0.000000e+00> : vector<512x128xf32>
    %3 = tpu.matmul %1, %2, %cst {dimension_numbers = #tpu.dot_dimension_numbers<[1], [0], [0], [1], [0, 0, 1, 1], [], []>} : vector<512x32xf32>, vector<32x128xf32>, vector<512x128xf32> -> vector<512x128xf32>
    %c0_4 = arith.constant 0 : index
    %c0_5 = arith.constant 0 : index
    %4 = vector.load %arg4[%c0_4, %c0_5] : memref<1024x512xf32, #tpu.memory_space<vmem>>, vector<1024x512xf32>
    %cst_6 = arith.constant dense<0.000000e+00> : vector<1024x128xf32>
    %5 = tpu.matmul %4, %3, %cst_6 {dimension_numbers = #tpu.dot_dimension_numbers<[1], [0], [0], [1], [0, 0, 1, 1], [], []>} : vector<1024x512xf32>, vector<512x128xf32>, vector<1024x128xf32> -> vector<1024x128xf32>
    %6 = vector.extract_strided_slice %5 {offsets = [0, 0], sizes = [128, 128], strides = [1, 1]} : vector<1024x128xf32> to vector<128x128xf32>
    %c8_i32 = arith.constant 8 : i32
    %7 = arith.muli %arg1, %c8_i32 : i32
    %c0_i32 = arith.constant 0 : i32
    %8 = arith.addi %7, %c0_i32 : i32
    %9 = arith.index_cast %8 : i32 to index
    %10 = memref.load %arg5[%9] : memref<8xf32, #tpu.memory_space<smem>>
    %11 = vector.broadcast %10 : f32 to vector<128x128xf32>
    %12 = arith.addf %6, %11 : vector<128x128xf32>
    %c0_7 = arith.constant 0 : index
    %c0_8 = arith.constant 0 : index
    %c0_9 = arith.constant 0 : index
    %c0_10 = arith.constant 0 : index
    %13 = vector.load %arg6[%c0_7, %c0_8, %c0_9, %c0_10] : memref<1x8x128x128xf32, #tpu.memory_space<vmem>>, vector<1x1x128x128xf32>
    %14 = vector.shape_cast %13 : vector<1x1x128x128xf32> to vector<128x128xf32>
    %15 = vector.shape_cast %12 : vector<128x128xf32> to vector<1x1x128x128xf32>
    tpu.vector_store %arg6[%c0_7, %c0_8, %c0_9, %c0_10], %15 {strides = array<i32>} : memref<1x8x128x128xf32, #tpu.memory_space<vmem>>, vector<1x1x128x128xf32>,
    %16 = vector.extract_strided_slice %5 {offsets = [128, 0], sizes = [128, 128], strides = [1, 1]} : vector<1024x128xf32> to vector<128x128xf32>
    %c8_i32_11 = arith.constant 8 : i32
    %17 = arith.muli %arg1, %c8_i32_11 : i32
    %c1_i32 = arith.constant 1 : i32
    %18 = arith.addi %17, %c1_i32 : i32
    %19 = arith.index_cast %18 : i32 to index
    %20 = memref.load %arg5[%19] : memref<8xf32, #tpu.memory_space<smem>>
    %21 = vector.broadcast %20 : f32 to vector<128x128xf32>
    %22 = arith.addf %16, %21 : vector<128x128xf32>
    %c0_12 = arith.constant 0 : index
    %c1 = arith.constant 1 : index
    %c0_13 = arith.constant 0 : index
    %c0_14 = arith.constant 0 : index
    %23 = vector.load %arg6[%c0_12, %c1, %c0_13, %c0_14] : memref<1x8x128x128xf32, #tpu.memory_space<vmem>>, vector<1x1x128x128xf32>
    %24 = vector.shape_cast %23 : vector<1x1x128x128xf32> to vector<128x128xf32>
    %25 = vector.shape_cast %22 : vector<128x128xf32> to vector<1x1x128x128xf32>
    tpu.vector_store %arg6[%c0_12, %c1, %c0_13, %c0_14], %25 {strides = array<i32>} : memref<1x8x128x128xf32, #tpu.memory_space<vmem>>, vector<1x1x128x128xf32>,
    %26 = vector.extract_strided_slice %5 {offsets = [256, 0], sizes = [128, 128], strides = [1, 1]} : vector<1024x128xf32> to vector<128x128xf32>
    %c8_i32_15 = arith.constant 8 : i32
    %27 = arith.muli %arg1, %c8_i32_15 : i32
    %c2_i32 = arith.constant 2 : i32
    %28 = arith.addi %27, %c2_i32 : i32
    %29 = arith.index_cast %28 : i32 to index
    %30 = memref.load %arg5[%29] : memref<8xf32, #tpu.memory_space<smem>>
    %31 = vector.broadcast %30 : f32 to vector<128x128xf32>
    %32 = arith.addf %26, %31 : vector<128x128xf32>
    %c0_16 = arith.constant 0 : index
    %c2 = arith.constant 2 : index
    %c0_17 = arith.constant 0 : index
    %c0_18 = arith.constant 0 : index
    %33 = vector.load %arg6[%c0_16, %c2, %c0_17, %c0_18] : memref<1x8x128x128xf32, #tpu.memory_space<vmem>>, vector<1x1x128x128xf32>
    %34 = vector.shape_cast %33 : vector<1x1x128x128xf32> to vector<128x128xf32>
    %35 = vector.shape_cast %32 : vector<128x128xf32> to vector<1x1x128x128xf32>
    tpu.vector_store %arg6[%c0_16, %c2, %c0_17, %c0_18], %35 {strides = array<i32>} : memref<1x8x128x128xf32, #tpu.memory_space<vmem>>, vector<1x1x128x128xf32>,
    %36 = vector.extract_strided_slice %5 {offsets = [384, 0], sizes = [128, 128], strides = [1, 1]} : vector<1024x128xf32> to vector<128x128xf32>
    %c8_i32_19 = arith.constant 8 : i32
    %37 = arith.muli %arg1, %c8_i32_19 : i32
    %c3_i32 = arith.constant 3 : i32
    %38 = arith.addi %37, %c3_i32 : i32
    %39 = arith.index_cast %38 : i32 to index
    %40 = memref.load %arg5[%39] : memref<8xf32, #tpu.memory_space<smem>>
    %41 = vector.broadcast %40 : f32 to vector<128x128xf32>
    %42 = arith.addf %36, %41 : vector<128x128xf32>
    %c0_20 = arith.constant 0 : index
    %c3 = arith.constant 3 : index
    %c0_21 = arith.constant 0 : index
    %c0_22 = arith.constant 0 : index
    %43 = vector.load %arg6[%c0_20, %c3, %c0_21, %c0_22] : memref<1x8x128x128xf32, #tpu.memory_space<vmem>>, vector<1x1x128x128xf32>
    %44 = vector.shape_cast %43 : vector<1x1x128x128xf32> to vector<128x128xf32>
    %45 = vector.shape_cast %42 : vector<128x128xf32> to vector<1x1x128x128xf32>
    tpu.vector_store %arg6[%c0_20, %c3, %c0_21, %c0_22], %45 {strides = array<i32>} : memref<1x8x128x128xf32, #tpu.memory_space<vmem>>, vector<1x1x128x128xf32>,
    %46 = vector.extract_strided_slice %5 {offsets = [512, 0], sizes = [128, 128], strides = [1, 1]} : vector<1024x128xf32> to vector<128x128xf32>
    %c8_i32_23 = arith.constant 8 : i32
    %47 = arith.muli %arg1, %c8_i32_23 : i32
    %c4_i32 = arith.constant 4 : i32
    %48 = arith.addi %47, %c4_i32 : i32
    %49 = arith.index_cast %48 : i32 to index
    %50 = memref.load %arg5[%49] : memref<8xf32, #tpu.memory_space<smem>>
    %51 = vector.broadcast %50 : f32 to vector<128x128xf32>
    %52 = arith.addf %46, %51 : vector<128x128xf32>
    %c0_24 = arith.constant 0 : index
    %c4 = arith.constant 4 : index
    %c0_25 = arith.constant 0 : index
    %c0_26 = arith.constant 0 : index
    %53 = vector.load %arg6[%c0_24, %c4, %c0_25, %c0_26] : memref<1x8x128x128xf32, #tpu.memory_space<vmem>>, vector<1x1x128x128xf32>
    %54 = vector.shape_cast %53 : vector<1x1x128x128xf32> to vector<128x128xf32>
    %55 = vector.shape_cast %52 : vector<128x128xf32> to vector<1x1x128x128xf32>
    tpu.vector_store %arg6[%c0_24, %c4, %c0_25, %c0_26], %55 {strides = array<i32>} : memref<1x8x128x128xf32, #tpu.memory_space<vmem>>, vector<1x1x128x128xf32>,
    %56 = vector.extract_strided_slice %5 {offsets = [640, 0], sizes = [128, 128], strides = [1, 1]} : vector<1024x128xf32> to vector<128x128xf32>
    %c8_i32_27 = arith.constant 8 : i32
    %57 = arith.muli %arg1, %c8_i32_27 : i32
    %c5_i32 = arith.constant 5 : i32
    %58 = arith.addi %57, %c5_i32 : i32
    %59 = arith.index_cast %58 : i32 to index
    %60 = memref.load %arg5[%59] : memref<8xf32, #tpu.memory_space<smem>>
    %61 = vector.broadcast %60 : f32 to vector<128x128xf32>
    %62 = arith.addf %56, %61 : vector<128x128xf32>
    %c0_28 = arith.constant 0 : index
    %c5 = arith.constant 5 : index
    %c0_29 = arith.constant 0 : index
    %c0_30 = arith.constant 0 : index
    %63 = vector.load %arg6[%c0_28, %c5, %c0_29, %c0_30] : memref<1x8x128x128xf32, #tpu.memory_space<vmem>>, vector<1x1x128x128xf32>
    %64 = vector.shape_cast %63 : vector<1x1x128x128xf32> to vector<128x128xf32>
    %65 = vector.shape_cast %62 : vector<128x128xf32> to vector<1x1x128x128xf32>
    tpu.vector_store %arg6[%c0_28, %c5, %c0_29, %c0_30], %65 {strides = array<i32>} : memref<1x8x128x128xf32, #tpu.memory_space<vmem>>, vector<1x1x128x128xf32>,
    %66 = vector.extract_strided_slice %5 {offsets = [768, 0], sizes = [128, 128], strides = [1, 1]} : vector<1024x128xf32> to vector<128x128xf32>
    %c8_i32_31 = arith.constant 8 : i32
    %67 = arith.muli %arg1, %c8_i32_31 : i32
    %c6_i32 = arith.constant 6 : i32
    %68 = arith.addi %67, %c6_i32 : i32
    %69 = arith.index_cast %68 : i32 to index
    %70 = memref.load %arg5[%69] : memref<8xf32, #tpu.memory_space<smem>>
    %71 = vector.broadcast %70 : f32 to vector<128x128xf32>
    %72 = arith.addf %66, %71 : vector<128x128xf32>
    %c0_32 = arith.constant 0 : index
    %c6 = arith.constant 6 : index
    %c0_33 = arith.constant 0 : index
    %c0_34 = arith.constant 0 : index
    %73 = vector.load %arg6[%c0_32, %c6, %c0_33, %c0_34] : memref<1x8x128x128xf32, #tpu.memory_space<vmem>>, vector<1x1x128x128xf32>
    %74 = vector.shape_cast %73 : vector<1x1x128x128xf32> to vector<128x128xf32>
    %75 = vector.shape_cast %72 : vector<128x128xf32> to vector<1x1x128x128xf32>
    tpu.vector_store %arg6[%c0_32, %c6, %c0_33, %c0_34], %75 {strides = array<i32>} : memref<1x8x128x128xf32, #tpu.memory_space<vmem>>, vector<1x1x128x128xf32>,
    %76 = vector.extract_strided_slice %5 {offsets = [896, 0], sizes = [128, 128], strides = [1, 1]} : vector<1024x128xf32> to vector<128x128xf32>
    %c8_i32_35 = arith.constant 8 : i32
    %77 = arith.muli %arg1, %c8_i32_35 : i32
    %c7_i32 = arith.constant 7 : i32
    %78 = arith.addi %77, %c7_i32 : i32
    %79 = arith.index_cast %78 : i32 to index
    %80 = memref.load %arg5[%79] : memref<8xf32, #tpu.memory_space<smem>>
    %81 = vector.broadcast %80 : f32 to vector<128x128xf32>
    %82 = arith.addf %76, %81 : vector<128x128xf32>
    %c0_36 = arith.constant 0 : index
    %c7 = arith.constant 7 : index
    %c0_37 = arith.constant 0 : index
    %c0_38 = arith.constant 0 : index
    %83 = vector.load %arg6[%c0_36, %c7, %c0_37, %c0_38] : memref<1x8x128x128xf32, #tpu.memory_space<vmem>>, vector<1x1x128x128xf32>
    %84 = vector.shape_cast %83 : vector<1x1x128x128xf32> to vector<128x128xf32>
    %85 = vector.shape_cast %82 : vector<128x128xf32> to vector<1x1x128x128xf32>
    tpu.vector_store %arg6[%c0_36, %c7, %c0_37, %c0_38], %85 {strides = array<i32>} : memref<1x8x128x128xf32, #tpu.memory_space<vmem>>, vector<1x1x128x128xf32>,
    return
  }
  func.func @transform_0(%arg0: i32, %arg1: i32) -> (i32, i32, i32) {
    %c0_i32 = arith.constant 0 : i32
    %c0_i32_0 = arith.constant 0 : i32
    %c0_i32_1 = arith.constant 0 : i32
    return %arg0, %c0_i32, %c0_i32_0 : i32, i32, i32
  }
  func.func @transform_1(%arg0: i32, %arg1: i32) -> (i32, i32) {
    %c0_i32 = arith.constant 0 : i32
    %c0_i32_0 = arith.constant 0 : i32
    %c0_i32_1 = arith.constant 0 : i32
    return %c0_i32, %c0_i32_0 : i32, i32
  }
  func.func @transform_2(%arg0: i32, %arg1: i32) -> (i32, i32) {
    %c0_i32 = arith.constant 0 : i32
    %c0_i32_0 = arith.constant 0 : i32
    return %arg1, %c0_i32 : i32, i32
  }
  func.func @transform_3(%arg0: i32, %arg1: i32) -> i32 {
    %c0_i32 = arith.constant 0 : i32
    %c0_i32_0 = arith.constant 0 : i32
    return %c0_i32 : i32
  }
  func.func @transform_4(%arg0: i32, %arg1: i32) -> (i32, i32, i32, i32) {
    %c0_i32 = arith.constant 0 : i32
    %c0_i32_0 = arith.constant 0 : i32
    %c0_i32_1 = arith.constant 0 : i32
    return %arg0, %arg1, %c0_i32, %c0_i32_0 : i32, i32, i32, i32
  }
}

</mosaic_0001>

<bundles_post_ra>
// kernel: tpu_custom_call.1
= control target key start
LH: loop header
LB: loop body
LE: loop exit
PB: predicated region body
PF: predicated region fallthrough
CT: control target
= control target key end

     0   :  { %9 = vsyncpa [#allocation3], 0  ;;  %s4681_s0 = inlined_call_operand.vmem [shape: f32[2,512,32], index: 0, kind: input, shape index: {}]   ;;  %s4682_s1 = inlined_call_operand.hbm [shape: f32[32,128], index: 1, kind: input, shape index: {}]   ;;  %s4683_s2 = inlined_call_operand.hbm [shape: f32[1024,512], index: 2, kind: input, shape index: {}]   ;;  %s4684_s3 = inlined_call_operand.hbm [shape: f32[8], index: 3, kind: input, shape index: {}]   ;;  %s4685_s4 = inlined_call_operand.hbm [shape: f32[2,8,128,128], index: 4, kind: output, shape index: {}]  }
   0x1   :  { %10 = vsyncpa [#allocation7], 0 }
   0x2   :  { %11 = vsyncpa [#allocation5], 0 }
   0x3   :  { %12 = vsyncpa [#allocation4], 0 }
   0x4   :  { %14 = vsyncpa [#allocation4 + $0x1], 0  ;;  %s4018_s15 = smov 0   ;;  %s4020_s16 = smov 0  }
   0x5   :  { %s4022_s17 = smov 0   ;;  %s4024_s18 = smov 0  }
   0x6   :  { %s4026_s19 = smov 0   ;;  %s4028_s20 = smov 0  }
   0x7 LB: > { %s3244_s21 = sadd.s32 4294967295, %s3980_s20   ;;  %s3245_s22 = sadd.s32 4294967294, %s3980_s20   ;;  %s3980_s20 = sphi %s4028_s20, %s20_s20   ;;  %s3976_s19 = sphi %s4026_s19, %s4707_s19   ;;  %s3972_s18 = sphi %s4024_s18, %s4706_s18   ;;  %s3968_s17 = sphi %s4022_s17, %s4705_s17   ;;  %s3964_s16 = sphi %s4020_s16, %s4704_s16   ;;  %s3960_s15 = sphi %s4018_s15, %s4703_s15  }
   0x8   : > { %s32_s23 = sadd.s32 1, %s3976_s19  ;;  %s135_s24 = sadd.s32 1, %s3968_s17 }
   0x9   : > { %p34_p0 = scmp.ge.s32.totalorder %s32_s23, 2  ;;  %p145_p1 = scmp.ne.s32.totalorder %s3968_s17, %s3964_s16 }
   0xa   : > { %p146_p2 = scmp.eq.s32.totalorder %s3244_s21, 1  ;;  %p151_p3 = scmp.ne.s32.totalorder %s3964_s16, %s3960_s15 }
   0xb   : > { %s4709_s23 = smov (%p34_p0, %s32_s23), 0  ;;  %p152_p5 = scmp.eq.s32.totalorder %s3245_s22, 1 }
   0xc   : > { %4691 = sst [smem:[#allocation14_spill]] %s4709_s23  ;;  %p4058_p4 = por %p146_p2, %p145_p1 }
   0xd   : > { %s130_s26 = ssub.s32 %s3976_s19, %s4709_s23  ;;  %p3246_p6 = scmp.ge.s32.totalorder %s3980_s20, 1 }
   0xe   : > { %s4692_s25 = scalar_select %p4058_p4, 1, 0 }
   0xf   : > { %p133_p7 = scmp.eq.s32.totalorder %s130_s26, 0  ;;  %p4065_p8 = por %p152_p5, %p151_p3 }
  0x10   : > { %p159_p9 = scmp.lt.s32.totalorder %s3980_s20, 3  ;;  %p4077_p11 = scmp.eq.s32.totalorder %s3244_s21, 0 }
  0x11   : > { %s4693_s27 = scalar_select %p4065_p8, 1, 0 }
  0x12   : > { %s4071_s28 = scalar_select %p133_p7, %s3968_s17, %s135_s24  }
  0x13   : > { %p4073_p10 = pnand %p3246_p6, %p159_p9  ;;  %s3982_s5 = smov [#allocation2]  }
  0x14   : > { %s4695_s30 = scalar_select %p4077_p11, 1, 0 }
  0x15   : > { %s4694_s29 = scalar_select %p4073_p10, 1, 0 }
  0x16   : > { %p3742_p12 = pneg %p4073_p10  ;;  %s171_s6 = sshll.u32 %s3982_s5, 4  ;;  %s172_s6 = int_to_ptr.vmem [resolvable:$true] %s171_s6 }
  0x17   : > { %s3983_s8 = smov [#allocation6]   ;;  %s3821_s12 = scalar_lea.hbm %s4682_s1, 512 }
  0x18   : > { %p4085_p13 = pnand %p4077_p11, %p3742_p12  ;;  %s188_s9 = sshll.u32 %s3983_s8, 4  ;;  %s4089_s9 = int_to_ptr.vmem [resolvable:$true] %s188_s9 }
  0x19   : > { %p3822_p0 = scmp.ne.s32.totalorder %s4682_s1, %s3821_s12  ;;  %p3828_p5 = scmp.lt.u32.totalorder %s3821_s12, %s4682_s1 }
  0x1a   : > { %p4099_p1 = pneg %p4085_p13 }
  0x1c   : > { %p3824_p2 = pnand %p4099_p1, %p3822_p0 }
  0x1e   : > { %p3825_p3 = pneg %p3824_p2 }
  0x20   : > { %p3830_p6 = pnand %p3828_p5, %p3825_p3 }
  0x22   : > { %3833 = shalt.err (!%p3830_p6)
}
  0x23   : > { %s3834_s26 = scalar_lea.vmem %s172_s6, 512  ;;  %p3842_p8 = scmp.lt.s32.totalorder %s172_s6, %s172_s6 }
  0x24   : > { %p3835_p7 = scmp.ne.s32.totalorder %s172_s6, %s3834_s26  ;;  %p3843_p4 = scmp.lt.s32.totalorder %s3834_s26, %s3834_s26 }
  0x26   : > { %p3837_p9 = pnand %p3835_p7, %p4099_p1  ;;  %p3844_p11 = por %p3843_p4, %p3842_p8 }
  0x28   : > { %p3838_p12 = pneg %p3837_p9 }
  0x2a   : > { %p3845_p10 = pnand %p3844_p11, %p3838_p12 }
  0x2c   : > { %3848 = shalt.err (!%p3845_p10)
}
  0x2d   : > { %s3984_s5 = smov 128   ;;  %s3985_s8 = smov 8  }
  0x2e   : > { %3745 = dma.hbm_to_vmem [thread:$0]  (!%p4085_p13), %s4682_s1, 512, %s172_s6, [#allocation3], %s3984_s5, %s3984_s5, %s3985_s8  }
  0x2f   : > { %s3849_s14 = scalar_lea.hbm %s4683_s2, 65536 }
  0x30   : > { %p3850_p0 = scmp.ne.s32.totalorder %s4683_s2, %s3849_s14  ;;  %p3856_p10 = scmp.lt.u32.totalorder %s3849_s14, %s4683_s2 }
  0x32   : > { %p3852_p4 = pnand %p3850_p0, %p4099_p1 }
  0x34   : > { %p3853_p8 = pneg %p3852_p4 }
  0x36   : > { %p3858_p11 = pnand %p3856_p10, %p3853_p8 }
  0x38   : > { %3861 = shalt.err (!%p3858_p11)
}
  0x39   : > { %s3862_s6 = scalar_lea.vmem %s4089_s9, 65536  ;;  %p3870_p6 = scmp.lt.s32.totalorder %s4089_s9, %s4089_s9 }
  0x3a   : > { %p3863_p2 = scmp.ne.s32.totalorder %s4089_s9, %s3862_s6  ;;  %p3871_p7 = scmp.lt.s32.totalorder %s3862_s6, %s3862_s6 }
  0x3c   : > { %p3865_p3 = pnand %p3863_p2, %p4099_p1  ;;  %p3872_p9 = por %p3871_p7, %p3870_p6 }
  0x3e   : > { %p3866_p5 = pneg %p3865_p3 }
  0x40   : > { %p3873_p12 = pnand %p3872_p9, %p3866_p5 }
  0x42   : > { %3876 = shalt.err (!%p3873_p12)
}
  0x43   : > { %s3986_s5 = smov 512   ;;  %s3987_s23 = smov 32  }
  0x44   : > { %3748 = dma.hbm_to_vmem [thread:$0]  (!%p4085_p13), %s4683_s2, 65536, %s4089_s9, [#allocation7], %s3986_s5, %s3986_s5, %s3987_s23  }
  0x45   : > { %s3877_s13 = scalar_lea.hbm %s4684_s3, 16 }
  0x46   : > { %p3878_p0 = scmp.ne.s32.totalorder %s4684_s3, %s3877_s13  ;;  %p3884_p10 = scmp.lt.u32.totalorder %s3877_s13, %s4684_s3 }
  0x48   : > { %p3880_p4 = pnand %p3878_p0, %p4099_p1 }
  0x4a   : > { %p3881_p8 = pneg %p3880_p4 }
  0x4c   : > { %p3886_p11 = pnand %p3884_p10, %p3881_p8 }
  0x4e   : > { %3889 = shalt.err (!%p3886_p11)
}
  0x4f   : > { %s3988_s6 = smov [#allocation8]   ;;  %p4698_p2 = scmp.ne.s32.totalorder %s4694_s29, 0 }
  0x50   : > { %3751 = dma.hbm_to_smem (!%p4085_p13), %s4684_s3, 16, %s3988_s6, [#allocation5]  }
  0x51   : > { %221 = sbr.rel (%p4698_p2) target bundleno = 1124 (0x464), region = 36  ;;  %p4699_p3 = scmp.ne.s32.totalorder (!%p4698_p2), %s4695_s30, 0 }
  0x58   : > { %3943 = dma.done.wait (%p4699_p3), [#allocation3], 512  }
  0x59   : > { %3945 = vsyncadd (%p4699_p3), [#allocation3], 4294966784 }
  0x5a   : > { %3947 = dma.done.wait (%p4699_p3), [#allocation7], 65536  }
  0x5b   : > { %3949 = vsyncadd (%p4699_p3), [#allocation7], 4294901760 }
  0x5c   : > { %3951 = dma.done.wait (%p4699_p3), [#allocation5], 16  }
  0x5d   : > { %3953 = vsyncadd (%p4699_p3), [#allocation5], 4294967280 }
  0x5e   : > { %235 = sfence }
  0x5f   : > { %v327_v0 = vld [vmem:[#allocation2] sm:$0xff]  ;;  %v328_v1 = vld [vmem:[#allocation2 + $0x8] sm:$0xff]  ;;  %v329_v2 = vld [vmem:[#allocation2 + $0x10] sm:$0xff]  ;;  %p256_p13 = scmp.lt.s32.totalorder %s3972_s18, 1  ;;  %vm331_vm0 = vcmask 261120   ;;  %s2832_s8 = sld [smem:[#allocation8]] }
  0x60   : > { %v3620_v3 = vpack.c.bf16 %v328_v1, %v327_v0  ;;  %v330_v4 = vld [vmem:[#allocation2 + $0x18] sm:$0xff]  ;;  %s253_s10 = sand.u32 1, %s3964_s16   ;;  %s4369_s13 = sld [smem:[#allocation8 + $0x1]] }
  0x61   : > { %v3624_v5 = vpack.c.bf16 %v330_v4, %v329_v2  ;;  %s257_s29 = scalar_select %p256_p13, %s3972_s18, 1 }
  0x62   : > { %3621 = vmatprep.subr.bf16.mxu0 %v3620_v3  ;;  %3724 = vmatprep.subr.bf16.mxu1 %v3620_v3  ;;  %s3255_s11 = sshll.u32 %s253_s10, 10  ;;  %s4406_s14 = sld [smem:[#allocation8 + $0x2]] }
  0x63   : > { %3623 = vmatpush3.bf16.msra.mxu0 %v3620_v3  ;;  %3726 = vmatpush3.bf16.msra.mxu1 %v3620_v3  ;;  %s3446_s7 = sshll.u32 %s257_s29, 9  ;;  %s4341_s12 = scalar_lea.vmem [#allocation9], %s3255_s11 }
  0x64   : > { %3625 = vmatprep.subr.bf16.mxu0 %v3624_v5  ;;  %3725 = vmatprep.subr.bf16.mxu1 %v3624_v5  ;;  %s4173_s23 = scalar_lea.vmem %s4681_s0, %s3446_s7  ;;  %s4443_s22 = sld [smem:[#allocation8 + $0x3]] }
  0x65   : > { %v263_v6 = vld [vmem:[%s4173_s23] sm:$0xff]  ;;  %v264_v8 = vld [vmem:[%s4173_s23 + $0x8] sm:$0xff]  ;;  %v265_v10 = vld [vmem:[%s4173_s23 + $0x10] sm:$0xff]  ;;  %s4480_s24 = sld [smem:[#allocation8 + $0x4]]  ;;  %s3390_s26 = sld [smem:[#allocation8 + $0x5]] }
  0x66   : > { %v295_v7 = vld [vmem:[%s4173_s23 + $0x100] sm:$0xff]  ;;  %3524 = vmatprep.mubr.msk.f32.mxu0 %vm331_vm0, %v263_v6  ;;  %v296_v9 = vld [vmem:[%s4173_s23 + $0x108] sm:$0xff]  ;;  %v297_v11 = vld [vmem:[%s4173_s23 + $0x110] sm:$0xff]  ;;  %v3989_v6 = vmov 0.0|0.0   ;;  %s3407_s6 = sld [smem:[#allocation8 + $0x6]]  ;;  %s3424_s9 = sld [smem:[#allocation8 + $0x7]] }
  0x67   : > { %3572 = vmatprep.mubr.msk.f32.mxu1 %vm331_vm0, %v295_v7  ;;  %3627 = vmatpush3.bf16.msra.mxu0 %v3624_v5  ;;  %v266_v12 = vld [vmem:[%s4173_s23 + $0x18] sm:$0xff]  ;;  %v267_v14 = vld [vmem:[%s4173_s23 + $0x20] sm:$0xff]  ;;  %v268_v16 = vld [vmem:[%s4173_s23 + $0x28] sm:$0xff]  ;;  %s3447_s5 = sshll.u32 %s3972_s18, 14  ;;  %s3135_s29 = sshll.u32 %s4341_s12, 4  ;;  %s4629_s29 = int_to_ptr.vmem [resolvable:$true] %s3135_s29 }
  0x68   : > { %3727 = vmatpush3.bf16.msra.mxu1 %v3624_v5  ;;  %v298_v13 = vld [vmem:[%s4173_s23 + $0x118] sm:$0xff]  ;;  %v299_v15 = vld [vmem:[%s4173_s23 + $0x120] sm:$0xff]  ;;  %v300_v17 = vld [vmem:[%s4173_s23 + $0x128] sm:$0xff]  ;;  %3676 = vmatprep.subr.bf16.mxu0 %v3989_v6  ;;  %s4627_s21 = scalar_lea.hbm %s4685_s4, %s3447_s5  ;;  %s4635_s18 = scalar_lea.sflag [#allocation4], %s253_s10 }
  0x69   : > { %v269_v18 = vld [vmem:[%s4173_s23 + $0x30] sm:$0xff]  ;;  %v270_v20 = vld [vmem:[%s4173_s23 + $0x38] sm:$0xff]  ;;  %v271_v22 = vld [vmem:[%s4173_s23 + $0x40] sm:$0xff]  ;;  %3628 = vmatprep.subr.bf16.mxu1 %v3989_v6  ;;  %p4700_p5 = scmp.ne.s32.totalorder %s4692_s25, 0 }
  0x6a   : > { %3525 = vmatmul.mubr.msk.f32.vlgmr.msra.gmra.mrb[0].mxu0 %vm331_vm0, %v264_v8  ;;  %v301_v19 = vld [vmem:[%s4173_s23 + $0x130] sm:$0xff]  ;;  %v302_v21 = vld [vmem:[%s4173_s23 + $0x138] sm:$0xff]  ;;  %v303_v23 = vld [vmem:[%s4173_s23 + $0x140] sm:$0xff] }
  0x6b   : > { %3573 = vmatmul.mubr.msk.f32.vlgmr.msra.gmra.mrb[0].mxu1 %vm331_vm0, %v296_v9  ;;  %3527 = vmatprep.mubr.msk.f32.mxu0 %vm331_vm0, %v265_v10  ;;  %v272_v24 = vld [vmem:[%s4173_s23 + $0x48] sm:$0xff]  ;;  %v273_v26 = vld [vmem:[%s4173_s23 + $0x50] sm:$0xff]  ;;  %v274_v28 = vld [vmem:[%s4173_s23 + $0x58] sm:$0xff] }
  0x6c   : > { %3575 = vmatprep.mubr.msk.f32.mxu1 %vm331_vm0, %v297_v11  ;;  %v304_v25 = vld [vmem:[%s4173_s23 + $0x148] sm:$0xff]  ;;  %v305_v27 = vld [vmem:[%s4173_s23 + $0x150] sm:$0xff]  ;;  %v306_v29 = vld [vmem:[%s4173_s23 + $0x158] sm:$0xff] }
  0x6d   : > { %v275_v30 = vld [vmem:[%s4173_s23 + $0x60] sm:$0xff]  ;;  %v276_v32 = vld [vmem:[%s4173_s23 + $0x68] sm:$0xff]  ;;  %v277_v34 = vld [vmem:[%s4173_s23 + $0x70] sm:$0xff] }
  0x6e   : > { %3528 = vmatmul.mubr.msk.f32.gmra.mrb[2].mxu0 %vm331_vm0, %v266_v12  ;;  %v307_v31 = vld [vmem:[%s4173_s23 + $0x160] sm:$0xff]  ;;  %v308_v33 = vld [vmem:[%s4173_s23 + $0x168] sm:$0xff]  ;;  %v309_v35 = vld [vmem:[%s4173_s23 + $0x170] sm:$0xff] }
  0x6f   : > { %3576 = vmatmul.mubr.msk.f32.gmra.mrb[2].mxu1 %vm331_vm0, %v298_v13  ;;  %3530 = vmatprep.mubr.msk.f32.mxu0 %vm331_vm0, %v267_v14  ;;  %v278_v36 = vld [vmem:[%s4173_s23 + $0x78] sm:$0xff]  ;;  %v279_v38 = vld [vmem:[%s4173_s23 + $0x80] sm:$0xff]  ;;  %v280_v40 = vld [vmem:[%s4173_s23 + $0x88] sm:$0xff] }
  0x70   : > { %3578 = vmatprep.mubr.msk.f32.mxu1 %vm331_vm0, %v299_v15  ;;  %v310_v37 = vld [vmem:[%s4173_s23 + $0x178] sm:$0xff]  ;;  %v311_v39 = vld [vmem:[%s4173_s23 + $0x180] sm:$0xff]  ;;  %v312_v41 = vld [vmem:[%s4173_s23 + $0x188] sm:$0xff] }
  0x71   : > { %v281_v42 = vld [vmem:[%s4173_s23 + $0x90] sm:$0xff]  ;;  %v282_v44 = vld [vmem:[%s4173_s23 + $0x98] sm:$0xff]  ;;  %v283_v46 = vld [vmem:[%s4173_s23 + $0xa0] sm:$0xff] }
  0x72   : > { %3531 = vmatmul.mubr.msk.f32.gmra.mrb[4].mxu0 %vm331_vm0, %v268_v16  ;;  %v313_v43 = vld [vmem:[%s4173_s23 + $0x190] sm:$0xff]  ;;  %v314_v45 = vld [vmem:[%s4173_s23 + $0x198] sm:$0xff]  ;;  %v315_v47 = vld [vmem:[%s4173_s23 + $0x1a0] sm:$0xff] }
  0x73   : > { %3579 = vmatmul.mubr.msk.f32.gmra.mrb[4].mxu1 %vm331_vm0, %v300_v17  ;;  %3533 = vmatprep.mubr.msk.f32.mxu0 %vm331_vm0, %v269_v18  ;;  %v284_v48 = vld [vmem:[%s4173_s23 + $0xa8] sm:$0xff]  ;;  %v285_v50 = vld [vmem:[%s4173_s23 + $0xb0] sm:$0xff]  ;;  %v286_v52 = vld [vmem:[%s4173_s23 + $0xb8] sm:$0xff] }
  0x74   : > { %3581 = vmatprep.mubr.msk.f32.mxu1 %vm331_vm0, %v301_v19  ;;  %v316_v49 = vld [vmem:[%s4173_s23 + $0x1a8] sm:$0xff]  ;;  %v317_v51 = vld [vmem:[%s4173_s23 + $0x1b0] sm:$0xff]  ;;  %v318_v53 = vld [vmem:[%s4173_s23 + $0x1b8] sm:$0xff] }
  0x75   : > { %v287_v54 = vld [vmem:[%s4173_s23 + $0xc0] sm:$0xff]  ;;  %v288_v56 = vld [vmem:[%s4173_s23 + $0xc8] sm:$0xff]  ;;  %v289_v58 = vld [vmem:[%s4173_s23 + $0xd0] sm:$0xff] }
  0x76   : > { %3534 = vmatmul.mubr.msk.f32.gmra.mrb[6].mxu0 %vm331_vm0, %v270_v20  ;;  %v319_v55 = vld [vmem:[%s4173_s23 + $0x1c0] sm:$0xff]  ;;  %v320_v57 = vld [vmem:[%s4173_s23 + $0x1c8] sm:$0xff]  ;;  %v321_v59 = vld [vmem:[%s4173_s23 + $0x1d0] sm:$0xff] }
  0x77   : > { %3582 = vmatmul.mubr.msk.f32.gmra.mrb[6].mxu1 %vm331_vm0, %v302_v21  ;;  %3536 = vmatprep.mubr.msk.f32.mxu0 %vm331_vm0, %v271_v22  ;;  %v290_v60 = vld [vmem:[%s4173_s23 + $0xd8] sm:$0xff]  ;;  %v291_v62 = vld [vmem:[%s4173_s23 + $0xe0] sm:$0xff]  ;;  %v292_v0 = vld [vmem:[%s4173_s23 + $0xe8] sm:$0xff] }
  0x78   : > { %3584 = vmatprep.mubr.msk.f32.mxu1 %vm331_vm0, %v303_v23  ;;  %v322_v61 = vld [vmem:[%s4173_s23 + $0x1d8] sm:$0xff]  ;;  %v323_v63 = vld [vmem:[%s4173_s23 + $0x1e0] sm:$0xff]  ;;  %v324_v1 = vld [vmem:[%s4173_s23 + $0x1e8] sm:$0xff] }
  0x79   : > { %v293_v2 = vld [vmem:[%s4173_s23 + $0xf0] sm:$0xff]  ;;  %v294_v4 = vld [vmem:[%s4173_s23 + $0xf8] sm:$0xff]  ;;  %v910_v7 = vld [vmem:[#allocation6 + $0x8] sm:$0xff] }
  0x7a   : > { %3537 = vmatmul.mubr.msk.f32.gmra.mrb[8].mxu0 %vm331_vm0, %v272_v24  ;;  %v325_v3 = vld [vmem:[%s4173_s23 + $0x1f0] sm:$0xff]  ;;  %v326_v5 = vld [vmem:[%s4173_s23 + $0x1f8] sm:$0xff]  ;;  %s3890_s23 = scalar_lea.vmem %s4629_s29, 16384 }
  0x7b   : > { %3585 = vmatmul.mubr.msk.f32.gmra.mrb[8].mxu1 %vm331_vm0, %v304_v25  ;;  %3539 = vmatprep.mubr.msk.f32.mxu0 %vm331_vm0, %v273_v26  ;;  %v912_v8 = vld [vmem:[#allocation6 + $0x18] sm:$0xff]  ;;  %p3891_p1 = scmp.ne.s32.totalorder %s4629_s29, %s3890_s23 }
  0x7c   : > { %3587 = vmatprep.mubr.msk.f32.mxu1 %vm331_vm0, %v305_v27 }
  0x7d   : > { %p3892_p6 = pnand %p3891_p1, %p4700_p5 }
  0x7e   : > { %3540 = vmatmul.mubr.msk.f32.gmra.mrb[10].mxu0 %vm331_vm0, %v274_v28 }
  0x7f   : > { %3588 = vmatmul.mubr.msk.f32.gmra.mrb[10].mxu1 %vm331_vm0, %v306_v29  ;;  %3542 = vmatprep.mubr.msk.f32.mxu0 %vm331_vm0, %v275_v30  ;;  %p3893_p7 = pneg %p3892_p6 }
  0x80   : > { %3590 = vmatprep.mubr.msk.f32.mxu1 %vm331_vm0, %v307_v31 }
  0x82   : > { %3543 = vmatmul.mubr.msk.f32.gmra.mrb[12].mxu0 %vm331_vm0, %v276_v32 }
  0x83   : > { %3591 = vmatmul.mubr.msk.f32.gmra.mrb[12].mxu1 %vm331_vm0, %v308_v33  ;;  %3545 = vmatprep.mubr.msk.f32.mxu0 %vm331_vm0, %v277_v34 }
  0x84   : > { %3593 = vmatprep.mubr.msk.f32.mxu1 %vm331_vm0, %v309_v35 }
  0x86   : > { %3546 = vmatmul.mubr.msk.f32.gmra.mrb[14].mxu0 %vm331_vm0, %v278_v36 }
  0x87   : > { %3594 = vmatmul.mubr.msk.f32.gmra.mrb[14].mxu1 %vm331_vm0, %v310_v37  ;;  %3548 = vmatprep.mubr.msk.f32.mxu0 %vm331_vm0, %v279_v38 }
  0x88   : > { %3596 = vmatprep.mubr.msk.f32.mxu1 %vm331_vm0, %v311_v39 }
  0x8a   : > { %3549 = vmatmul.mubr.msk.f32.gmra.mrb[16].mxu0 %vm331_vm0, %v280_v40 }
  0x8b   : > { %3597 = vmatmul.mubr.msk.f32.gmra.mrb[16].mxu1 %vm331_vm0, %v312_v41  ;;  %3551 = vmatprep.mubr.msk.f32.mxu0 %vm331_vm0, %v281_v42 }
  0x8c   : > { %3599 = vmatprep.mubr.msk.f32.mxu1 %vm331_vm0, %v313_v43 }
  0x8e   : > { %3552 = vmatmul.mubr.msk.f32.gmra.mrb[18].mxu0 %vm331_vm0, %v282_v44 }
  0x8f   : > { %3600 = vmatmul.mubr.msk.f32.gmra.mrb[18].mxu1 %vm331_vm0, %v314_v45  ;;  %3554 = vmatprep.mubr.msk.f32.mxu0 %vm331_vm0, %v283_v46 }
  0x90   : > { %3602 = vmatprep.mubr.msk.f32.mxu1 %vm331_vm0, %v315_v47 }
  0x92   : > { %3555 = vmatmul.mubr.msk.f32.gmra.mrb[20].mxu0 %vm331_vm0, %v284_v48 }
  0x93   : > { %3603 = vmatmul.mubr.msk.f32.gmra.mrb[20].mxu1 %vm331_vm0, %v316_v49  ;;  %3557 = vmatprep.mubr.msk.f32.mxu0 %vm331_vm0, %v285_v50 }
  0x94   : > { %3605 = vmatprep.mubr.msk.f32.mxu1 %vm331_vm0, %v317_v51 }
  0x96   : > { %3558 = vmatmul.mubr.msk.f32.gmra.mrb[22].mxu0 %vm331_vm0, %v286_v52 }
  0x97   : > { %3606 = vmatmul.mubr.msk.f32.gmra.mrb[22].mxu1 %vm331_vm0, %v318_v53  ;;  %3560 = vmatprep.mubr.msk.f32.mxu0 %vm331_vm0, %v287_v54 }
  0x98   : > { %3608 = vmatprep.mubr.msk.f32.mxu1 %vm331_vm0, %v319_v55 }
  0x9a   : > { %3561 = vmatmul.mubr.msk.f32.gmra.mrb[24].mxu0 %vm331_vm0, %v288_v56 }
  0x9b   : > { %3609 = vmatmul.mubr.msk.f32.gmra.mrb[24].mxu1 %vm331_vm0, %v320_v57  ;;  %3563 = vmatprep.mubr.msk.f32.mxu0 %vm331_vm0, %v289_v58 }
  0x9c   : > { %3611 = vmatprep.mubr.msk.f32.mxu1 %vm331_vm0, %v321_v59 }
  0x9e   : > { %3564 = vmatmul.mubr.msk.f32.gmra.mrb[26].mxu0 %vm331_vm0, %v290_v60 }
  0x9f   : > { %3612 = vmatmul.mubr.msk.f32.gmra.mrb[26].mxu1 %vm331_vm0, %v322_v61  ;;  %3566 = vmatprep.mubr.msk.f32.mxu0 %vm331_vm0, %v291_v62 }
  0xa0   : > { %3614 = vmatprep.mubr.msk.f32.mxu1 %vm331_vm0, %v323_v63 }
  0xa2   : > { %3567 = vmatmul.mubr.msk.f32.gmra.mrb[28].mxu0 %vm331_vm0, %v292_v0 }
  0xa3   : > { %3615 = vmatmul.mubr.msk.f32.gmra.mrb[28].mxu1 %vm331_vm0, %v324_v1  ;;  %3569 = vmatprep.mubr.msk.f32.mxu0 %vm331_vm0, %v293_v2 }
  0xa4   : > { %3617 = vmatprep.mubr.msk.f32.mxu1 %vm331_vm0, %v325_v3 }
  0xa6   : > { %3570 = vmatmul.mubr.msk.f32.gmra.mrb[30].mxu0 %vm331_vm0, %v294_v4 }
  0xa7   : > { %3618 = vmatmul.mubr.msk.f32.gmra.mrb[30].mxu1 %vm331_vm0, %v326_v5  ;;  %2190 = vmatprep.mubr.f32.mxu0 %v912_v8 }
  0xa8   : > { %1485 = vmatprep.mubr.f32.mxu1 %v910_v7 }
 0x13d   : > { %v3526_v9 = vpop.f32.mrb[0].mxu0 }
 0x13e   : > { %v3574_v10 = vpop.f32.mrb[0].mxu1  ;;  %v590_v11 = vpop.f32.mrb[1].mxu0 }
 0x13f   : > { %v750_v12 = vpop.f32.mrb[1].mxu1  ;;  %v3629_v13 = vpack.c.bf16 %v3526_v9, %v590_v11 }
 0x140   : > { %v3677_v14 = vpack.c.bf16 %v3574_v10, %v750_v12 }
 0x141   : > { %v3529_v15 = vpop.f32.mrb[2].mxu0  ;;  %3630 = vmatpush1.bf16.msra.mxu1 %v3629_v13 }
 0x142   : > { %v3577_v16 = vpop.f32.mrb[2].mxu1  ;;  %3678 = vmatpush1.bf16.msra.mxu0 %v3677_v14  ;;  %v600_v17 = vpop.f32.mrb[3].mxu0  ;;  %3631 = vmatprep.subr.bf16.mxu1 %v3989_v6 }
 0x143   : > { %v760_v18 = vpop.f32.mrb[3].mxu1  ;;  %3679 = vmatprep.subr.bf16.mxu0 %v3989_v6  ;;  %v3632_v19 = vpack.c.bf16 %v3529_v15, %v600_v17 }
 0x144   : > { %v3680_v20 = vpack.c.bf16 %v3577_v16, %v760_v18 }
 0x145   : > { %v3532_v21 = vpop.f32.mrb[4].mxu0  ;;  %3633 = vmatpush1.bf16.msra.mxu1 %v3632_v19 }
 0x146   : > { %v3580_v22 = vpop.f32.mrb[4].mxu1  ;;  %3681 = vmatpush1.bf16.msra.mxu0 %v3680_v20  ;;  %v610_v23 = vpop.f32.mrb[5].mxu0  ;;  %3634 = vmatprep.subr.bf16.mxu1 %v3989_v6 }
 0x147   : > { %v770_v24 = vpop.f32.mrb[5].mxu1  ;;  %3682 = vmatprep.subr.bf16.mxu0 %v3989_v6  ;;  %v3635_v25 = vpack.c.bf16 %v3532_v21, %v610_v23 }
 0x148   : > { %v3683_v26 = vpack.c.bf16 %v3580_v22, %v770_v24 }
 0x149   : > { %v3535_v27 = vpop.f32.mrb[6].mxu0  ;;  %3636 = vmatpush1.bf16.msra.mxu1 %v3635_v25 }
 0x14a   : > { %v3583_v28 = vpop.f32.mrb[6].mxu1  ;;  %3684 = vmatpush1.bf16.msra.mxu0 %v3683_v26  ;;  %v620_v29 = vpop.f32.mrb[7].mxu0  ;;  %3637 = vmatprep.subr.bf16.mxu1 %v3989_v6 }
 0x14b   : > { %v780_v30 = vpop.f32.mrb[7].mxu1  ;;  %3685 = vmatprep.subr.bf16.mxu0 %v3989_v6  ;;  %v3638_v31 = vpack.c.bf16 %v3535_v27, %v620_v29 }
 0x14c   : > { %v3686_v32 = vpack.c.bf16 %v3583_v28, %v780_v30 }
 0x14d   : > { %v3538_v33 = vpop.f32.mrb[8].mxu0  ;;  %3639 = vmatpush1.bf16.msra.mxu1 %v3638_v31 }
 0x14e   : > { %v3586_v34 = vpop.f32.mrb[8].mxu1  ;;  %3687 = vmatpush1.bf16.msra.mxu0 %v3686_v32  ;;  %v630_v35 = vpop.f32.mrb[9].mxu0  ;;  %3640 = vmatprep.subr.bf16.mxu1 %v3989_v6 }
 0x14f   : > { %v790_v36 = vpop.f32.mrb[9].mxu1  ;;  %3688 = vmatprep.subr.bf16.mxu0 %v3989_v6  ;;  %v3641_v37 = vpack.c.bf16 %v3538_v33, %v630_v35 }
 0x150   : > { %v3689_v38 = vpack.c.bf16 %v3586_v34, %v790_v36 }
 0x151   : > { %v3541_v39 = vpop.f32.mrb[10].mxu0  ;;  %3642 = vmatpush1.bf16.msra.mxu1 %v3641_v37 }
 0x152   : > { %v3589_v40 = vpop.f32.mrb[10].mxu1  ;;  %3690 = vmatpush1.bf16.msra.mxu0 %v3689_v38  ;;  %v640_v41 = vpop.f32.mrb[11].mxu0  ;;  %3643 = vmatprep.subr.bf16.mxu1 %v3989_v6 }
 0x153   : > { %v800_v42 = vpop.f32.mrb[11].mxu1  ;;  %3691 = vmatprep.subr.bf16.mxu0 %v3989_v6  ;;  %v3644_v43 = vpack.c.bf16 %v3541_v39, %v640_v41 }
 0x154   : > { %v3692_v44 = vpack.c.bf16 %v3589_v40, %v800_v42  ;;  %v909_v42 = vld [vmem:[#allocation6] sm:$0xff] }
 0x155   : > { %v3544_v45 = vpop.f32.mrb[12].mxu0  ;;  %3645 = vmatpush1.bf16.msra.mxu1 %v3644_v43  ;;  %v911_v43 = vld [vmem:[#allocation6 + $0x10] sm:$0xff] }
 0x156   : > { %v3592_v46 = vpop.f32.mrb[12].mxu1  ;;  %3693 = vmatpush1.bf16.msra.mxu0 %v3692_v44  ;;  %v650_v47 = vpop.f32.mrb[13].mxu0  ;;  %3646 = vmatprep.subr.bf16.mxu1 %v3989_v6  ;;  %v914_v44 = vld [vmem:[#allocation6 + $0x28] sm:$0xff] }
 0x157   : > { %v810_v48 = vpop.f32.mrb[13].mxu1  ;;  %3694 = vmatprep.subr.bf16.mxu0 %v3989_v6  ;;  %v3647_v49 = vpack.c.bf16 %v3544_v45, %v650_v47  ;;  %v916_v45 = vld [vmem:[#allocation6 + $0x38] sm:$0xff]  ;;  %v915_v47 = vld [vmem:[#allocation6 + $0x30] sm:$0xff] }
 0x158   : > { %v3695_v50 = vpack.c.bf16 %v3592_v46, %v810_v48  ;;  %v913_v46 = vld [vmem:[#allocation6 + $0x20] sm:$0xff]  ;;  %v918_v48 = vld [vmem:[#allocation6 + $0x48] sm:$0xff] }
 0x159   : > { %v3547_v51 = vpop.f32.mrb[14].mxu0  ;;  %3648 = vmatpush1.bf16.msra.mxu1 %v3647_v49  ;;  %v920_v49 = vld [vmem:[#allocation6 + $0x58] sm:$0xff] }
 0x15a   : > { %v3595_v52 = vpop.f32.mrb[14].mxu1  ;;  %3696 = vmatpush1.bf16.msra.mxu0 %v3695_v50  ;;  %v660_v53 = vpop.f32.mrb[15].mxu0  ;;  %3649 = vmatprep.subr.bf16.mxu1 %v3989_v6  ;;  %v919_v50 = vld [vmem:[#allocation6 + $0x50] sm:$0xff] }
 0x15b   : > { %v820_v54 = vpop.f32.mrb[15].mxu1  ;;  %3697 = vmatprep.subr.bf16.mxu0 %v3989_v6  ;;  %v3650_v55 = vpack.c.bf16 %v3547_v51, %v660_v53  ;;  %v922_v51 = vld [vmem:[#allocation6 + $0x68] sm:$0xff]  ;;  %v921_v53 = vld [vmem:[#allocation6 + $0x60] sm:$0xff] }
 0x15c   : > { %v3698_v56 = vpack.c.bf16 %v3595_v52, %v820_v54  ;;  %v924_v52 = vld [vmem:[#allocation6 + $0x78] sm:$0xff]  ;;  %v923_v54 = vld [vmem:[#allocation6 + $0x70] sm:$0xff] }
 0x15d   : > { %v3550_v57 = vpop.f32.mrb[16].mxu0  ;;  %3651 = vmatpush1.bf16.msra.mxu1 %v3650_v55  ;;  %v926_v55 = vld [vmem:[#allocation6 + $0x88] sm:$0xff] }
 0x15e   : > { %v3598_v58 = vpop.f32.mrb[16].mxu1  ;;  %3699 = vmatpush1.bf16.msra.mxu0 %v3698_v56  ;;  %v670_v59 = vpop.f32.mrb[17].mxu0  ;;  %3652 = vmatprep.subr.bf16.mxu1 %v3989_v6  ;;  %v928_v56 = vld [vmem:[#allocation6 + $0x98] sm:$0xff] }
 0x15f   : > { %v830_v60 = vpop.f32.mrb[17].mxu1  ;;  %3700 = vmatprep.subr.bf16.mxu0 %v3989_v6  ;;  %v3653_v61 = vpack.c.bf16 %v3550_v57, %v670_v59  ;;  %v925_v57 = vld [vmem:[#allocation6 + $0x80] sm:$0xff]  ;;  %v930_v59 = vld [vmem:[#allocation6 + $0xa8] sm:$0xff] }
 0x160   : > { %v3701_v62 = vpack.c.bf16 %v3598_v58, %v830_v60  ;;  %v927_v58 = vld [vmem:[#allocation6 + $0x90] sm:$0xff]  ;;  %v932_v60 = vld [vmem:[#allocation6 + $0xb8] sm:$0xff] }
 0x161   : > { %v3553_v63 = vpop.f32.mrb[18].mxu0  ;;  %3654 = vmatpush1.bf16.msra.mxu1 %v3653_v61  ;;  %v929_v61 = vld [vmem:[#allocation6 + $0xa0] sm:$0xff] }
 0x162   : > { %v3601_v0 = vpop.f32.mrb[18].mxu1  ;;  %3702 = vmatpush1.bf16.msra.mxu0 %v3701_v62  ;;  %v680_v1 = vpop.f32.mrb[19].mxu0  ;;  %3655 = vmatprep.subr.bf16.mxu1 %v3989_v6  ;;  %v931_v62 = vld [vmem:[#allocation6 + $0xb0] sm:$0xff] }
 0x163   : > { %v840_v2 = vpop.f32.mrb[19].mxu1  ;;  %3703 = vmatprep.subr.bf16.mxu0 %v3989_v6  ;;  %v3656_v3 = vpack.c.bf16 %v3553_v63, %v680_v1  ;;  %v934_v63 = vld [vmem:[#allocation6 + $0xc8] sm:$0xff]  ;;  %v933_v1 = vld [vmem:[#allocation6 + $0xc0] sm:$0xff] }
 0x164   : > { %v3704_v4 = vpack.c.bf16 %v3601_v0, %v840_v2  ;;  %v936_v0 = vld [vmem:[#allocation6 + $0xd8] sm:$0xff]  ;;  %v935_v2 = vld [vmem:[#allocation6 + $0xd0] sm:$0xff] }
 0x165   : > { %v3556_v5 = vpop.f32.mrb[20].mxu0  ;;  %3657 = vmatpush1.bf16.msra.mxu1 %v3656_v3  ;;  %v938_v3 = vld [vmem:[#allocation6 + $0xe8] sm:$0xff] }
 0x166   : > { %v3604_v7 = vpop.f32.mrb[20].mxu1  ;;  %3705 = vmatpush1.bf16.msra.mxu0 %v3704_v4  ;;  %v690_v8 = vpop.f32.mrb[21].mxu0  ;;  %3658 = vmatprep.subr.bf16.mxu1 %v3989_v6  ;;  %v940_v4 = vld [vmem:[#allocation6 + $0xf8] sm:$0xff] }
 0x167   : > { %v850_v9 = vpop.f32.mrb[21].mxu1  ;;  %3706 = vmatprep.subr.bf16.mxu0 %v3989_v6  ;;  %v3659_v10 = vpack.c.bf16 %v3556_v5, %v690_v8  ;;  %v937_v5 = vld [vmem:[#allocation6 + $0xe0] sm:$0xff]  ;;  %v942_v8 = vld [vmem:[#allocation6 + $0x108] sm:$0xff] }
 0x168   : > { %v3707_v11 = vpack.c.bf16 %v3604_v7, %v850_v9  ;;  %v939_v7 = vld [vmem:[#allocation6 + $0xf0] sm:$0xff]  ;;  %v944_v9 = vld [vmem:[#allocation6 + $0x118] sm:$0xff] }
 0x169   : > { %v3559_v12 = vpop.f32.mrb[22].mxu0  ;;  %3660 = vmatpush1.bf16.msra.mxu1 %v3659_v10  ;;  %v941_v10 = vld [vmem:[#allocation6 + $0x100] sm:$0xff] }
 0x16a   : > { %v3607_v13 = vpop.f32.mrb[22].mxu1  ;;  %3708 = vmatpush1.bf16.msra.mxu0 %v3707_v11  ;;  %v700_v14 = vpop.f32.mrb[23].mxu0  ;;  %3661 = vmatprep.subr.bf16.mxu1 %v3989_v6  ;;  %v943_v11 = vld [vmem:[#allocation6 + $0x110] sm:$0xff] }
 0x16b   : > { %v860_v15 = vpop.f32.mrb[23].mxu1  ;;  %3709 = vmatprep.subr.bf16.mxu0 %v3989_v6  ;;  %v3662_v16 = vpack.c.bf16 %v3559_v12, %v700_v14  ;;  %v946_v12 = vld [vmem:[#allocation6 + $0x128] sm:$0xff]  ;;  %v945_v14 = vld [vmem:[#allocation6 + $0x120] sm:$0xff] }
 0x16c   : > { %v3710_v17 = vpack.c.bf16 %v3607_v13, %v860_v15  ;;  %v948_v13 = vld [vmem:[#allocation6 + $0x138] sm:$0xff]  ;;  %v947_v15 = vld [vmem:[#allocation6 + $0x130] sm:$0xff] }
 0x16d   : > { %v3562_v18 = vpop.f32.mrb[24].mxu0  ;;  %3663 = vmatpush1.bf16.msra.mxu1 %v3662_v16  ;;  %v950_v16 = vld [vmem:[#allocation6 + $0x148] sm:$0xff] }
 0x16e   : > { %v3610_v19 = vpop.f32.mrb[24].mxu1  ;;  %3711 = vmatpush1.bf16.msra.mxu0 %v3710_v17  ;;  %v710_v20 = vpop.f32.mrb[25].mxu0  ;;  %3664 = vmatprep.subr.bf16.mxu1 %v3989_v6  ;;  %v952_v17 = vld [vmem:[#allocation6 + $0x158] sm:$0xff] }
 0x16f   : > { %v870_v21 = vpop.f32.mrb[25].mxu1  ;;  %3712 = vmatprep.subr.bf16.mxu0 %v3989_v6  ;;  %v3665_v22 = vpack.c.bf16 %v3562_v18, %v710_v20  ;;  %v949_v18 = vld [vmem:[#allocation6 + $0x140] sm:$0xff]  ;;  %v954_v20 = vld [vmem:[#allocation6 + $0x168] sm:$0xff] }
 0x170   : > { %v3713_v23 = vpack.c.bf16 %v3610_v19, %v870_v21  ;;  %v951_v19 = vld [vmem:[#allocation6 + $0x150] sm:$0xff]  ;;  %v956_v21 = vld [vmem:[#allocation6 + $0x178] sm:$0xff] }
 0x171   : > { %v3565_v24 = vpop.f32.mrb[26].mxu0  ;;  %3666 = vmatpush1.bf16.msra.mxu1 %v3665_v22  ;;  %v953_v22 = vld [vmem:[#allocation6 + $0x160] sm:$0xff] }
 0x172   : > { %v3613_v25 = vpop.f32.mrb[26].mxu1  ;;  %3714 = vmatpush1.bf16.msra.mxu0 %v3713_v23  ;;  %v720_v26 = vpop.f32.mrb[27].mxu0  ;;  %3667 = vmatprep.subr.bf16.mxu1 %v3989_v6  ;;  %v955_v23 = vld [vmem:[#allocation6 + $0x170] sm:$0xff] }
 0x173   : > { %v880_v27 = vpop.f32.mrb[27].mxu1  ;;  %3715 = vmatprep.subr.bf16.mxu0 %v3989_v6  ;;  %v3668_v28 = vpack.c.bf16 %v3565_v24, %v720_v26  ;;  %v958_v24 = vld [vmem:[#allocation6 + $0x188] sm:$0xff]  ;;  %v957_v26 = vld [vmem:[#allocation6 + $0x180] sm:$0xff] }
 0x174   : > { %v3716_v29 = vpack.c.bf16 %v3613_v25, %v880_v27  ;;  %v960_v25 = vld [vmem:[#allocation6 + $0x198] sm:$0xff]  ;;  %v959_v27 = vld [vmem:[#allocation6 + $0x190] sm:$0xff] }
 0x175   : > { %v3568_v30 = vpop.f32.mrb[28].mxu0  ;;  %3669 = vmatpush1.bf16.msra.mxu1 %v3668_v28  ;;  %v962_v28 = vld [vmem:[#allocation6 + $0x1a8] sm:$0xff] }
 0x176   : > { %v3616_v31 = vpop.f32.mrb[28].mxu1  ;;  %3717 = vmatpush1.bf16.msra.mxu0 %v3716_v29  ;;  %v730_v32 = vpop.f32.mrb[29].mxu0  ;;  %3670 = vmatprep.subr.bf16.mxu1 %v3989_v6  ;;  %v964_v29 = vld [vmem:[#allocation6 + $0x1b8] sm:$0xff] }
 0x177   : > { %v890_v33 = vpop.f32.mrb[29].mxu1  ;;  %3718 = vmatprep.subr.bf16.mxu0 %v3989_v6  ;;  %v3671_v34 = vpack.c.bf16 %v3568_v30, %v730_v32  ;;  %v961_v30 = vld [vmem:[#allocation6 + $0x1a0] sm:$0xff]  ;;  %v966_v32 = vld [vmem:[#allocation6 + $0x1c8] sm:$0xff] }
 0x178   : > { %v3719_v35 = vpack.c.bf16 %v3616_v31, %v890_v33  ;;  %v963_v31 = vld [vmem:[#allocation6 + $0x1b0] sm:$0xff]  ;;  %v968_v33 = vld [vmem:[#allocation6 + $0x1d8] sm:$0xff] }
 0x179   : > { %v3571_v36 = vpop.f32.mrb[30].mxu0  ;;  %3672 = vmatpush1.bf16.msra.mxu1 %v3671_v34  ;;  %v965_v34 = vld [vmem:[#allocation6 + $0x1c0] sm:$0xff] }
 0x17a   : > { %v3619_v37 = vpop.f32.mrb[30].mxu1  ;;  %3720 = vmatpush1.bf16.msra.mxu0 %v3719_v35  ;;  %v740_v38 = vpop.f32.mrb[31].mxu0  ;;  %3673 = vmatprep.subr.bf16.mxu1 %v3989_v6  ;;  %v967_v35 = vld [vmem:[#allocation6 + $0x1d0] sm:$0xff] }
 0x17b   : > { %v900_v39 = vpop.f32.mrb[31].mxu1  ;;  %3721 = vmatprep.subr.bf16.mxu0 %v3989_v6  ;;  %v3674_v40 = vpack.c.bf16 %v3571_v36, %v740_v38  ;;  %v917_v6 = vld [vmem:[#allocation6 + $0x40] sm:$0xff]  ;;  %v970_v36 = vld [vmem:[#allocation6 + $0x1e8] sm:$0xff] }
 0x17c   : > { %v3722_v41 = vpack.c.bf16 %v3619_v37, %v900_v39  ;;  %v972_v37 = vld [vmem:[#allocation6 + $0x1f8] sm:$0xff]  ;;  %v969_v38 = vld [vmem:[#allocation6 + $0x1e0] sm:$0xff]  ;;  %v971_v39 = vld [vmem:[#allocation6 + $0x1f0] sm:$0xff] }
 0x17d   : > { %3675 = vmatpush1.bf16.msra.mxu1 %v3674_v40  ;;  %v974_v40 = vld [vmem:[#allocation6 + $0x208] sm:$0xff] }
 0x17e   : > { %3723 = vmatpush1.bf16.msra.mxu0 %v3722_v41  ;;  %v976_v41 = vld [vmem:[#allocation6 + $0x218] sm:$0xff] }
 0x180   : > { %1486 = vmatmul.mubr.f32.vlgmr.msra.gmra.mrb[32].mxu1 %v909_v42  ;;  %v973_v42 = vld [vmem:[#allocation6 + $0x200] sm:$0xff] }
 0x181   : > { %2191 = vmatmul.mubr.f32.vlgmr.msra.gmra.mrb[32].mxu0 %v911_v43  ;;  %1490 = vmatprep.mubr.f32.mxu1 %v914_v44  ;;  %v975_v43 = vld [vmem:[#allocation6 + $0x210] sm:$0xff]  ;;  %v978_v44 = vld [vmem:[#allocation6 + $0x228] sm:$0xff] }
 0x182   : > { %2195 = vmatprep.mubr.f32.mxu0 %v916_v45  ;;  %v980_v45 = vld [vmem:[#allocation6 + $0x238] sm:$0xff] }
 0x184   : > { %1491 = vmatmul.mubr.f32.gmra.mrb[34].mxu1 %v913_v46  ;;  %v977_v46 = vld [vmem:[#allocation6 + $0x220] sm:$0xff] }
 0x185   : > { %2196 = vmatmul.mubr.f32.gmra.mrb[34].mxu0 %v915_v47  ;;  %1495 = vmatprep.mubr.f32.mxu1 %v918_v48  ;;  %v979_v47 = vld [vmem:[#allocation6 + $0x230] sm:$0xff]  ;;  %v982_v48 = vld [vmem:[#allocation6 + $0x248] sm:$0xff] }
 0x186   : > { %2200 = vmatprep.mubr.f32.mxu0 %v920_v49  ;;  %v984_v49 = vld [vmem:[#allocation6 + $0x258] sm:$0xff] }
 0x188   : > { %1496 = vmatmul.mubr.f32.gmra.mrb[36].mxu1 %v917_v6  ;;  %v981_v6 = vld [vmem:[#allocation6 + $0x240] sm:$0xff] }
 0x189   : > { %2201 = vmatmul.mubr.f32.gmra.mrb[36].mxu0 %v919_v50  ;;  %1500 = vmatprep.mubr.f32.mxu1 %v922_v51  ;;  %v983_v50 = vld [vmem:[#allocation6 + $0x250] sm:$0xff]  ;;  %v986_v51 = vld [vmem:[#allocation6 + $0x268] sm:$0xff] }
 0x18a   : > { %2205 = vmatprep.mubr.f32.mxu0 %v924_v52  ;;  %v988_v52 = vld [vmem:[#allocation6 + $0x278] sm:$0xff] }
 0x18c   : > { %1501 = vmatmul.mubr.f32.gmra.mrb[38].mxu1 %v921_v53  ;;  %v985_v53 = vld [vmem:[#allocation6 + $0x260] sm:$0xff] }
 0x18d   : > { %2206 = vmatmul.mubr.f32.gmra.mrb[38].mxu0 %v923_v54  ;;  %1505 = vmatprep.mubr.f32.mxu1 %v926_v55  ;;  %v987_v54 = vld [vmem:[#allocation6 + $0x270] sm:$0xff]  ;;  %v990_v55 = vld [vmem:[#allocation6 + $0x288] sm:$0xff] }
 0x18e   : > { %2210 = vmatprep.mubr.f32.mxu0 %v928_v56  ;;  %v992_v56 = vld [vmem:[#allocation6 + $0x298] sm:$0xff] }
 0x190   : > { %1506 = vmatmul.mubr.f32.gmra.mrb[40].mxu1 %v925_v57  ;;  %v989_v57 = vld [vmem:[#allocation6 + $0x280] sm:$0xff] }
 0x191   : > { %2211 = vmatmul.mubr.f32.gmra.mrb[40].mxu0 %v927_v58  ;;  %1510 = vmatprep.mubr.f32.mxu1 %v930_v59  ;;  %v991_v58 = vld [vmem:[#allocation6 + $0x290] sm:$0xff]  ;;  %v994_v59 = vld [vmem:[#allocation6 + $0x2a8] sm:$0xff] }
 0x192   : > { %2215 = vmatprep.mubr.f32.mxu0 %v932_v60  ;;  %v996_v60 = vld [vmem:[#allocation6 + $0x2b8] sm:$0xff] }
 0x194   : > { %1511 = vmatmul.mubr.f32.gmra.mrb[42].mxu1 %v929_v61  ;;  %v993_v61 = vld [vmem:[#allocation6 + $0x2a0] sm:$0xff] }
 0x195   : > { %2216 = vmatmul.mubr.f32.gmra.mrb[42].mxu0 %v931_v62  ;;  %1515 = vmatprep.mubr.f32.mxu1 %v934_v63  ;;  %v995_v62 = vld [vmem:[#allocation6 + $0x2b0] sm:$0xff]  ;;  %v998_v63 = vld [vmem:[#allocation6 + $0x2c8] sm:$0xff] }
 0x196   : > { %2220 = vmatprep.mubr.f32.mxu0 %v936_v0  ;;  %v1000_v0 = vld [vmem:[#allocation6 + $0x2d8] sm:$0xff] }
 0x198   : > { %1516 = vmatmul.mubr.f32.gmra.mrb[44].mxu1 %v933_v1  ;;  %v997_v1 = vld [vmem:[#allocation6 + $0x2c0] sm:$0xff] }
 0x199   : > { %2221 = vmatmul.mubr.f32.gmra.mrb[44].mxu0 %v935_v2  ;;  %1520 = vmatprep.mubr.f32.mxu1 %v938_v3  ;;  %v999_v2 = vld [vmem:[#allocation6 + $0x2d0] sm:$0xff]  ;;  %v1002_v3 = vld [vmem:[#allocation6 + $0x2e8] sm:$0xff] }
 0x19a   : > { %2225 = vmatprep.mubr.f32.mxu0 %v940_v4  ;;  %v1004_v4 = vld [vmem:[#allocation6 + $0x2f8] sm:$0xff] }
 0x19c   : > { %1521 = vmatmul.mubr.f32.gmra.mrb[46].mxu1 %v937_v5  ;;  %v1001_v5 = vld [vmem:[#allocation6 + $0x2e0] sm:$0xff] }
 0x19d   : > { %2226 = vmatmul.mubr.f32.gmra.mrb[46].mxu0 %v939_v7  ;;  %1525 = vmatprep.mubr.f32.mxu1 %v942_v8  ;;  %v1003_v7 = vld [vmem:[#allocation6 + $0x2f0] sm:$0xff]  ;;  %v1006_v8 = vld [vmem:[#allocation6 + $0x308] sm:$0xff] }
 0x19e   : > { %2230 = vmatprep.mubr.f32.mxu0 %v944_v9  ;;  %v1008_v9 = vld [vmem:[#allocation6 + $0x318] sm:$0xff] }
 0x1a0   : > { %1526 = vmatmul.mubr.f32.gmra.mrb[48].mxu1 %v941_v10  ;;  %v1005_v10 = vld [vmem:[#allocation6 + $0x300] sm:$0xff] }
 0x1a1   : > { %2231 = vmatmul.mubr.f32.gmra.mrb[48].mxu0 %v943_v11  ;;  %1530 = vmatprep.mubr.f32.mxu1 %v946_v12  ;;  %v1007_v11 = vld [vmem:[#allocation6 + $0x310] sm:$0xff]  ;;  %v1010_v12 = vld [vmem:[#allocation6 + $0x328] sm:$0xff] }
 0x1a2   : > { %2235 = vmatprep.mubr.f32.mxu0 %v948_v13  ;;  %v1012_v13 = vld [vmem:[#allocation6 + $0x338] sm:$0xff] }
 0x1a4   : > { %1531 = vmatmul.mubr.f32.gmra.mrb[50].mxu1 %v945_v14  ;;  %v1009_v14 = vld [vmem:[#allocation6 + $0x320] sm:$0xff] }
 0x1a5   : > { %2236 = vmatmul.mubr.f32.gmra.mrb[50].mxu0 %v947_v15  ;;  %1535 = vmatprep.mubr.f32.mxu1 %v950_v16  ;;  %v1011_v15 = vld [vmem:[#allocation6 + $0x330] sm:$0xff]  ;;  %v1014_v16 = vld [vmem:[#allocation6 + $0x348] sm:$0xff] }
 0x1a6   : > { %2240 = vmatprep.mubr.f32.mxu0 %v952_v17  ;;  %v1016_v17 = vld [vmem:[#allocation6 + $0x358] sm:$0xff] }
 0x1a8   : > { %1536 = vmatmul.mubr.f32.gmra.mrb[52].mxu1 %v949_v18  ;;  %v1013_v18 = vld [vmem:[#allocation6 + $0x340] sm:$0xff] }
 0x1a9   : > { %2241 = vmatmul.mubr.f32.gmra.mrb[52].mxu0 %v951_v19  ;;  %1540 = vmatprep.mubr.f32.mxu1 %v954_v20  ;;  %v1015_v19 = vld [vmem:[#allocation6 + $0x350] sm:$0xff]  ;;  %v1018_v20 = vld [vmem:[#allocation6 + $0x368] sm:$0xff] }
 0x1aa   : > { %2245 = vmatprep.mubr.f32.mxu0 %v956_v21  ;;  %v1020_v21 = vld [vmem:[#allocation6 + $0x378] sm:$0xff] }
 0x1ac   : > { %1541 = vmatmul.mubr.f32.gmra.mrb[54].mxu1 %v953_v22  ;;  %v1017_v22 = vld [vmem:[#allocation6 + $0x360] sm:$0xff] }
 0x1ad   : > { %2246 = vmatmul.mubr.f32.gmra.mrb[54].mxu0 %v955_v23  ;;  %1545 = vmatprep.mubr.f32.mxu1 %v958_v24  ;;  %v1019_v23 = vld [vmem:[#allocation6 + $0x370] sm:$0xff]  ;;  %v1022_v24 = vld [vmem:[#allocation6 + $0x388] sm:$0xff] }
 0x1ae   : > { %2250 = vmatprep.mubr.f32.mxu0 %v960_v25  ;;  %v1024_v25 = vld [vmem:[#allocation6 + $0x398] sm:$0xff] }
 0x1b0   : > { %1546 = vmatmul.mubr.f32.gmra.mrb[56].mxu1 %v957_v26  ;;  %v1021_v26 = vld [vmem:[#allocation6 + $0x380] sm:$0xff] }
 0x1b1   : > { %2251 = vmatmul.mubr.f32.gmra.mrb[56].mxu0 %v959_v27  ;;  %1550 = vmatprep.mubr.f32.mxu1 %v962_v28  ;;  %v1023_v27 = vld [vmem:[#allocation6 + $0x390] sm:$0xff]  ;;  %v1026_v28 = vld [vmem:[#allocation6 + $0x3a8] sm:$0xff] }
 0x1b2   : > { %2255 = vmatprep.mubr.f32.mxu0 %v964_v29  ;;  %v1028_v29 = vld [vmem:[#allocation6 + $0x3b8] sm:$0xff] }
 0x1b4   : > { %1551 = vmatmul.mubr.f32.gmra.mrb[58].mxu1 %v961_v30  ;;  %v1025_v30 = vld [vmem:[#allocation6 + $0x3a0] sm:$0xff] }
 0x1b5   : > { %2256 = vmatmul.mubr.f32.gmra.mrb[58].mxu0 %v963_v31  ;;  %1555 = vmatprep.mubr.f32.mxu1 %v966_v32  ;;  %v1027_v31 = vld [vmem:[#allocation6 + $0x3b0] sm:$0xff]  ;;  %v1030_v32 = vld [vmem:[#allocation6 + $0x3c8] sm:$0xff] }
 0x1b6   : > { %2260 = vmatprep.mubr.f32.mxu0 %v968_v33  ;;  %v1032_v33 = vld [vmem:[#allocation6 + $0x3d8] sm:$0xff] }
 0x1b8   : > { %1556 = vmatmul.mubr.f32.gmra.mrb[60].mxu1 %v965_v34  ;;  %v1029_v34 = vld [vmem:[#allocation6 + $0x3c0] sm:$0xff] }
 0x1b9   : > { %2261 = vmatmul.mubr.f32.gmra.mrb[60].mxu0 %v967_v35  ;;  %1560 = vmatprep.mubr.f32.mxu1 %v970_v36  ;;  %v1031_v35 = vld [vmem:[#allocation6 + $0x3d0] sm:$0xff]  ;;  %v1034_v36 = vld [vmem:[#allocation6 + $0x3e8] sm:$0xff] }
 0x1ba   : > { %2265 = vmatprep.mubr.f32.mxu0 %v972_v37  ;;  %v1036_v37 = vld [vmem:[#allocation6 + $0x3f8] sm:$0xff] }
 0x1bc   : > { %1561 = vmatmul.mubr.f32.gmra.mrb[62].mxu1 %v969_v38  ;;  %v1033_v38 = vld [vmem:[#allocation6 + $0x3e0] sm:$0xff] }
 0x1bd   : > { %2266 = vmatmul.mubr.f32.gmra.mrb[62].mxu0 %v971_v39  ;;  %1565 = vmatprep.mubr.f32.mxu1 %v974_v40  ;;  %v1035_v39 = vld [vmem:[#allocation6 + $0x3f0] sm:$0xff]  ;;  %v1038_v40 = vld [vmem:[#allocation6 + $0x408] sm:$0xff] }
 0x1be   : > { %2270 = vmatprep.mubr.f32.mxu0 %v976_v41  ;;  %v1040_v41 = vld [vmem:[#allocation6 + $0x418] sm:$0xff] }
 0x1c0   : > { %1566 = vmatmul.mubr.f32.gmra.mrb[64].mxu1 %v973_v42  ;;  %v1037_v42 = vld [vmem:[#allocation6 + $0x400] sm:$0xff] }
 0x1c1   : > { %2271 = vmatmul.mubr.f32.gmra.mrb[64].mxu0 %v975_v43  ;;  %1570 = vmatprep.mubr.f32.mxu1 %v978_v44  ;;  %v1039_v43 = vld [vmem:[#allocation6 + $0x410] sm:$0xff]  ;;  %v1042_v44 = vld [vmem:[#allocation6 + $0x428] sm:$0xff] }
 0x1c2   : > { %2275 = vmatprep.mubr.f32.mxu0 %v980_v45  ;;  %v1044_v45 = vld [vmem:[#allocation6 + $0x438] sm:$0xff] }
 0x1c4   : > { %1571 = vmatmul.mubr.f32.gmra.mrb[66].mxu1 %v977_v46  ;;  %v1041_v46 = vld [vmem:[#allocation6 + $0x420] sm:$0xff] }
 0x1c5   : > { %2276 = vmatmul.mubr.f32.gmra.mrb[66].mxu0 %v979_v47  ;;  %1575 = vmatprep.mubr.f32.mxu1 %v982_v48  ;;  %v1043_v47 = vld [vmem:[#allocation6 + $0x430] sm:$0xff]  ;;  %v1046_v48 = vld [vmem:[#allocation6 + $0x448] sm:$0xff] }
 0x1c6   : > { %2280 = vmatprep.mubr.f32.mxu0 %v984_v49  ;;  %v1048_v49 = vld [vmem:[#allocation6 + $0x458] sm:$0xff] }
 0x1c8   : > { %1576 = vmatmul.mubr.f32.gmra.mrb[68].mxu1 %v981_v6  ;;  %v1045_v6 = vld [vmem:[#allocation6 + $0x440] sm:$0xff] }
 0x1c9   : > { %2281 = vmatmul.mubr.f32.gmra.mrb[68].mxu0 %v983_v50  ;;  %1580 = vmatprep.mubr.f32.mxu1 %v986_v51  ;;  %v1047_v50 = vld [vmem:[#allocation6 + $0x450] sm:$0xff]  ;;  %v1050_v51 = vld [vmem:[#allocation6 + $0x468] sm:$0xff] }
 0x1ca   : > { %2285 = vmatprep.mubr.f32.mxu0 %v988_v52  ;;  %v1052_v52 = vld [vmem:[#allocation6 + $0x478] sm:$0xff] }
 0x1cc   : > { %1581 = vmatmul.mubr.f32.gmra.mrb[70].mxu1 %v985_v53  ;;  %v1049_v53 = vld [vmem:[#allocation6 + $0x460] sm:$0xff] }
 0x1cd   : > { %2286 = vmatmul.mubr.f32.gmra.mrb[70].mxu0 %v987_v54  ;;  %1585 = vmatprep.mubr.f32.mxu1 %v990_v55  ;;  %v1051_v54 = vld [vmem:[#allocation6 + $0x470] sm:$0xff]  ;;  %v1054_v55 = vld [vmem:[#allocation6 + $0x488] sm:$0xff] }
 0x1ce   : > { %2290 = vmatprep.mubr.f32.mxu0 %v992_v56  ;;  %v1056_v56 = vld [vmem:[#allocation6 + $0x498] sm:$0xff] }
 0x1d0   : > { %1586 = vmatmul.mubr.f32.gmra.mrb[72].mxu1 %v989_v57  ;;  %v1053_v57 = vld [vmem:[#allocation6 + $0x480] sm:$0xff] }
 0x1d1   : > { %2291 = vmatmul.mubr.f32.gmra.mrb[72].mxu0 %v991_v58  ;;  %1590 = vmatprep.mubr.f32.mxu1 %v994_v59  ;;  %v1055_v58 = vld [vmem:[#allocation6 + $0x490] sm:$0xff]  ;;  %v1058_v59 = vld [vmem:[#allocation6 + $0x4a8] sm:$0xff] }
 0x1d2   : > { %2295 = vmatprep.mubr.f32.mxu0 %v996_v60  ;;  %v1060_v60 = vld [vmem:[#allocation6 + $0x4b8] sm:$0xff] }
 0x1d4   : > { %1591 = vmatmul.mubr.f32.gmra.mrb[74].mxu1 %v993_v61  ;;  %v1057_v61 = vld [vmem:[#allocation6 + $0x4a0] sm:$0xff] }
 0x1d5   : > { %2296 = vmatmul.mubr.f32.gmra.mrb[74].mxu0 %v995_v62  ;;  %1595 = vmatprep.mubr.f32.mxu1 %v998_v63  ;;  %v1059_v62 = vld [vmem:[#allocation6 + $0x4b0] sm:$0xff]  ;;  %v1062_v63 = vld [vmem:[#allocation6 + $0x4c8] sm:$0xff] }
 0x1d6   : > { %2300 = vmatprep.mubr.f32.mxu0 %v1000_v0  ;;  %v1064_v0 = vld [vmem:[#allocation6 + $0x4d8] sm:$0xff] }
 0x1d8   : > { %1596 = vmatmul.mubr.f32.gmra.mrb[76].mxu1 %v997_v1  ;;  %v1061_v1 = vld [vmem:[#allocation6 + $0x4c0] sm:$0xff] }
 0x1d9   : > { %2301 = vmatmul.mubr.f32.gmra.mrb[76].mxu0 %v999_v2  ;;  %1600 = vmatprep.mubr.f32.mxu1 %v1002_v3  ;;  %v1063_v2 = vld [vmem:[#allocation6 + $0x4d0] sm:$0xff]  ;;  %v1066_v3 = vld [vmem:[#allocation6 + $0x4e8] sm:$0xff] }
 0x1da   : > { %2305 = vmatprep.mubr.f32.mxu0 %v1004_v4  ;;  %v1068_v4 = vld [vmem:[#allocation6 + $0x4f8] sm:$0xff] }
 0x1dc   : > { %1601 = vmatmul.mubr.f32.gmra.mrb[78].mxu1 %v1001_v5  ;;  %v1065_v5 = vld [vmem:[#allocation6 + $0x4e0] sm:$0xff] }
 0x1dd   : > { %2306 = vmatmul.mubr.f32.gmra.mrb[78].mxu0 %v1003_v7  ;;  %1605 = vmatprep.mubr.f32.mxu1 %v1006_v8  ;;  %v1067_v7 = vld [vmem:[#allocation6 + $0x4f0] sm:$0xff]  ;;  %v1070_v8 = vld [vmem:[#allocation6 + $0x508] sm:$0xff] }
 0x1de   : > { %2310 = vmatprep.mubr.f32.mxu0 %v1008_v9  ;;  %v1072_v9 = vld [vmem:[#allocation6 + $0x518] sm:$0xff] }
 0x1e0   : > { %1606 = vmatmul.mubr.f32.gmra.mrb[80].mxu1 %v1005_v10  ;;  %v1069_v10 = vld [vmem:[#allocation6 + $0x500] sm:$0xff] }
 0x1e1   : > { %2311 = vmatmul.mubr.f32.gmra.mrb[80].mxu0 %v1007_v11  ;;  %1610 = vmatprep.mubr.f32.mxu1 %v1010_v12  ;;  %v1071_v11 = vld [vmem:[#allocation6 + $0x510] sm:$0xff]  ;;  %v1074_v12 = vld [vmem:[#allocation6 + $0x528] sm:$0xff] }
 0x1e2   : > { %2315 = vmatprep.mubr.f32.mxu0 %v1012_v13  ;;  %v1076_v13 = vld [vmem:[#allocation6 + $0x538] sm:$0xff] }
 0x1e4   : > { %1611 = vmatmul.mubr.f32.gmra.mrb[82].mxu1 %v1009_v14  ;;  %v1073_v14 = vld [vmem:[#allocation6 + $0x520] sm:$0xff] }
 0x1e5   : > { %2316 = vmatmul.mubr.f32.gmra.mrb[82].mxu0 %v1011_v15  ;;  %1615 = vmatprep.mubr.f32.mxu1 %v1014_v16  ;;  %v1075_v15 = vld [vmem:[#allocation6 + $0x530] sm:$0xff]  ;;  %v1078_v16 = vld [vmem:[#allocation6 + $0x548] sm:$0xff] }
 0x1e6   : > { %2320 = vmatprep.mubr.f32.mxu0 %v1016_v17  ;;  %v1080_v17 = vld [vmem:[#allocation6 + $0x558] sm:$0xff] }
 0x1e8   : > { %1616 = vmatmul.mubr.f32.gmra.mrb[84].mxu1 %v1013_v18  ;;  %v1077_v18 = vld [vmem:[#allocation6 + $0x540] sm:$0xff] }
 0x1e9   : > { %2321 = vmatmul.mubr.f32.gmra.mrb[84].mxu0 %v1015_v19  ;;  %1620 = vmatprep.mubr.f32.mxu1 %v1018_v20  ;;  %v1079_v19 = vld [vmem:[#allocation6 + $0x550] sm:$0xff]  ;;  %v1082_v20 = vld [vmem:[#allocation6 + $0x568] sm:$0xff] }
 0x1ea   : > { %2325 = vmatprep.mubr.f32.mxu0 %v1020_v21  ;;  %v1084_v21 = vld [vmem:[#allocation6 + $0x578] sm:$0xff] }
 0x1ec   : > { %1621 = vmatmul.mubr.f32.gmra.mrb[86].mxu1 %v1017_v22  ;;  %v1081_v22 = vld [vmem:[#allocation6 + $0x560] sm:$0xff] }
 0x1ed   : > { %2326 = vmatmul.mubr.f32.gmra.mrb[86].mxu0 %v1019_v23  ;;  %1625 = vmatprep.mubr.f32.mxu1 %v1022_v24  ;;  %v1083_v23 = vld [vmem:[#allocation6 + $0x570] sm:$0xff]  ;;  %v1086_v24 = vld [vmem:[#allocation6 + $0x588] sm:$0xff] }
 0x1ee   : > { %2330 = vmatprep.mubr.f32.mxu0 %v1024_v25  ;;  %v1088_v25 = vld [vmem:[#allocation6 + $0x598] sm:$0xff] }
 0x1f0   : > { %1626 = vmatmul.mubr.f32.gmra.mrb[88].mxu1 %v1021_v26  ;;  %v1085_v26 = vld [vmem:[#allocation6 + $0x580] sm:$0xff] }
 0x1f1   : > { %2331 = vmatmul.mubr.f32.gmra.mrb[88].mxu0 %v1023_v27  ;;  %1630 = vmatprep.mubr.f32.mxu1 %v1026_v28  ;;  %v1087_v27 = vld [vmem:[#allocation6 + $0x590] sm:$0xff]  ;;  %v1090_v28 = vld [vmem:[#allocation6 + $0x5a8] sm:$0xff] }
 0x1f2   : > { %2335 = vmatprep.mubr.f32.mxu0 %v1028_v29  ;;  %v1092_v29 = vld [vmem:[#allocation6 + $0x5b8] sm:$0xff] }
 0x1f4   : > { %1631 = vmatmul.mubr.f32.gmra.mrb[90].mxu1 %v1025_v30  ;;  %v1089_v30 = vld [vmem:[#allocation6 + $0x5a0] sm:$0xff] }
 0x1f5   : > { %2336 = vmatmul.mubr.f32.gmra.mrb[90].mxu0 %v1027_v31  ;;  %1635 = vmatprep.mubr.f32.mxu1 %v1030_v32  ;;  %v1091_v31 = vld [vmem:[#allocation6 + $0x5b0] sm:$0xff]  ;;  %v1094_v32 = vld [vmem:[#allocation6 + $0x5c8] sm:$0xff] }
 0x1f6   : > { %2340 = vmatprep.mubr.f32.mxu0 %v1032_v33  ;;  %v1096_v33 = vld [vmem:[#allocation6 + $0x5d8] sm:$0xff] }
 0x1f8   : > { %1636 = vmatmul.mubr.f32.gmra.mrb[92].mxu1 %v1029_v34  ;;  %v1093_v34 = vld [vmem:[#allocation6 + $0x5c0] sm:$0xff] }
 0x1f9   : > { %2341 = vmatmul.mubr.f32.gmra.mrb[92].mxu0 %v1031_v35  ;;  %1640 = vmatprep.mubr.f32.mxu1 %v1034_v36  ;;  %v1095_v35 = vld [vmem:[#allocation6 + $0x5d0] sm:$0xff]  ;;  %v1098_v36 = vld [vmem:[#allocation6 + $0x5e8] sm:$0xff] }
 0x1fa   : > { %2345 = vmatprep.mubr.f32.mxu0 %v1036_v37  ;;  %v1100_v37 = vld [vmem:[#allocation6 + $0x5f8] sm:$0xff] }
 0x1fc   : > { %1641 = vmatmul.mubr.f32.gmra.mrb[94].mxu1 %v1033_v38  ;;  %v1097_v38 = vld [vmem:[#allocation6 + $0x5e0] sm:$0xff] }
 0x1fd   : > { %2346 = vmatmul.mubr.f32.gmra.mrb[94].mxu0 %v1035_v39  ;;  %1645 = vmatprep.mubr.f32.mxu1 %v1038_v40  ;;  %v1099_v39 = vld [vmem:[#allocation6 + $0x5f0] sm:$0xff]  ;;  %v1102_v40 = vld [vmem:[#allocation6 + $0x608] sm:$0xff] }
 0x1fe   : > { %2350 = vmatprep.mubr.f32.mxu0 %v1040_v41  ;;  %v1104_v41 = vld [vmem:[#allocation6 + $0x618] sm:$0xff] }
 0x200   : > { %1646 = vmatmul.mubr.f32.gmra.mrb[96].mxu1 %v1037_v42  ;;  %v1101_v42 = vld [vmem:[#allocation6 + $0x600] sm:$0xff] }
 0x201   : > { %2351 = vmatmul.mubr.f32.gmra.mrb[96].mxu0 %v1039_v43  ;;  %1650 = vmatprep.mubr.f32.mxu1 %v1042_v44  ;;  %v1103_v43 = vld [vmem:[#allocation6 + $0x610] sm:$0xff]  ;;  %v1106_v44 = vld [vmem:[#allocation6 + $0x628] sm:$0xff] }
 0x202   : > { %2355 = vmatprep.mubr.f32.mxu0 %v1044_v45  ;;  %v1108_v45 = vld [vmem:[#allocation6 + $0x638] sm:$0xff] }
 0x204   : > { %1651 = vmatmul.mubr.f32.gmra.mrb[98].mxu1 %v1041_v46  ;;  %v1105_v46 = vld [vmem:[#allocation6 + $0x620] sm:$0xff] }
 0x205   : > { %2356 = vmatmul.mubr.f32.gmra.mrb[98].mxu0 %v1043_v47  ;;  %1655 = vmatprep.mubr.f32.mxu1 %v1046_v48  ;;  %v1107_v47 = vld [vmem:[#allocation6 + $0x630] sm:$0xff]  ;;  %v1110_v48 = vld [vmem:[#allocation6 + $0x648] sm:$0xff] }
 0x206   : > { %2360 = vmatprep.mubr.f32.mxu0 %v1048_v49  ;;  %v1112_v49 = vld [vmem:[#allocation6 + $0x658] sm:$0xff] }
 0x208   : > { %1656 = vmatmul.mubr.f32.gmra.mrb[100].mxu1 %v1045_v6  ;;  %v1109_v6 = vld [vmem:[#allocation6 + $0x640] sm:$0xff] }
 0x209   : > { %2361 = vmatmul.mubr.f32.gmra.mrb[100].mxu0 %v1047_v50  ;;  %1660 = vmatprep.mubr.f32.mxu1 %v1050_v51  ;;  %v1111_v50 = vld [vmem:[#allocation6 + $0x650] sm:$0xff]  ;;  %v1114_v51 = vld [vmem:[#allocation6 + $0x668] sm:$0xff] }
 0x20a   : > { %2365 = vmatprep.mubr.f32.mxu0 %v1052_v52  ;;  %v1116_v52 = vld [vmem:[#allocation6 + $0x678] sm:$0xff] }
 0x20c   : > { %1661 = vmatmul.mubr.f32.gmra.mrb[102].mxu1 %v1049_v53  ;;  %v1113_v53 = vld [vmem:[#allocation6 + $0x660] sm:$0xff] }
 0x20d   : > { %2366 = vmatmul.mubr.f32.gmra.mrb[102].mxu0 %v1051_v54  ;;  %1665 = vmatprep.mubr.f32.mxu1 %v1054_v55  ;;  %v1115_v54 = vld [vmem:[#allocation6 + $0x670] sm:$0xff]  ;;  %v1118_v55 = vld [vmem:[#allocation6 + $0x688] sm:$0xff] }
 0x20e   : > { %2370 = vmatprep.mubr.f32.mxu0 %v1056_v56  ;;  %v1120_v56 = vld [vmem:[#allocation6 + $0x698] sm:$0xff] }
 0x210   : > { %1666 = vmatmul.mubr.f32.gmra.mrb[104].mxu1 %v1053_v57  ;;  %v1117_v57 = vld [vmem:[#allocation6 + $0x680] sm:$0xff] }
 0x211   : > { %2371 = vmatmul.mubr.f32.gmra.mrb[104].mxu0 %v1055_v58  ;;  %1670 = vmatprep.mubr.f32.mxu1 %v1058_v59  ;;  %v1119_v58 = vld [vmem:[#allocation6 + $0x690] sm:$0xff]  ;;  %v1122_v59 = vld [vmem:[#allocation6 + $0x6a8] sm:$0xff] }
 0x212   : > { %2375 = vmatprep.mubr.f32.mxu0 %v1060_v60  ;;  %v1124_v60 = vld [vmem:[#allocation6 + $0x6b8] sm:$0xff] }
 0x214   : > { %1671 = vmatmul.mubr.f32.gmra.mrb[106].mxu1 %v1057_v61  ;;  %v1121_v61 = vld [vmem:[#allocation6 + $0x6a0] sm:$0xff] }
 0x215   : > { %2376 = vmatmul.mubr.f32.gmra.mrb[106].mxu0 %v1059_v62  ;;  %1675 = vmatprep.mubr.f32.mxu1 %v1062_v63  ;;  %v1123_v62 = vld [vmem:[#allocation6 + $0x6b0] sm:$0xff]  ;;  %v1126_v63 = vld [vmem:[#allocation6 + $0x6c8] sm:$0xff] }
 0x216   : > { %2380 = vmatprep.mubr.f32.mxu0 %v1064_v0  ;;  %v1128_v0 = vld [vmem:[#allocation6 + $0x6d8] sm:$0xff] }
 0x218   : > { %1676 = vmatmul.mubr.f32.gmra.mrb[108].mxu1 %v1061_v1 }
 0x219   : > { %2381 = vmatmul.mubr.f32.gmra.mrb[108].mxu0 %v1063_v2  ;;  %1680 = vmatprep.mubr.f32.mxu1 %v1066_v3  ;;  %v4338_v3 = vstv %s2832_s8  ;;  %s3990_s8 = smov [#allocation9]  }
 0x21a   : > { %2385 = vmatprep.mubr.f32.mxu0 %v1068_v4  ;;  %s3894_s11 = sshll.u32 %s3990_s8, 4  ;;  %s3895_s11 = int_to_ptr.vmem [resolvable:$false] %s3894_s11 }
 0x21b   : > { %p3897_p9 = scmp.lt.s32.totalorder %s4629_s29, %s3895_s11 }
 0x21c   : > { %1681 = vmatmul.mubr.f32.gmra.mrb[110].mxu1 %v1065_v5 }
 0x21d   : > { %2386 = vmatmul.mubr.f32.gmra.mrb[110].mxu0 %v1067_v7  ;;  %1685 = vmatprep.mubr.f32.mxu1 %v1070_v8  ;;  %v1125_v8 = vld [vmem:[#allocation6 + $0x6c0] sm:$0xff] }
 0x21e   : > { %2390 = vmatprep.mubr.f32.mxu0 %v1072_v9  ;;  %v1127_v9 = vld [vmem:[#allocation6 + $0x6d0] sm:$0xff] }
 0x220   : > { %1686 = vmatmul.mubr.f32.gmra.mrb[112].mxu1 %v1069_v10 }
 0x221   : > { %2391 = vmatmul.mubr.f32.gmra.mrb[112].mxu0 %v1071_v11  ;;  %1690 = vmatprep.mubr.f32.mxu1 %v1074_v12  ;;  %v1130_v11 = vld [vmem:[#allocation6 + $0x6e8] sm:$0xff]  ;;  %v1132_v12 = vld [vmem:[#allocation6 + $0x6f8] sm:$0xff] }
 0x222   : > { %2395 = vmatprep.mubr.f32.mxu0 %v1076_v13 }
 0x224   : > { %1691 = vmatmul.mubr.f32.gmra.mrb[114].mxu1 %v1073_v14 }
 0x225   : > { %2396 = vmatmul.mubr.f32.gmra.mrb[114].mxu0 %v1075_v15  ;;  %1695 = vmatprep.mubr.f32.mxu1 %v1078_v16 }
 0x226   : > { %2400 = vmatprep.mubr.f32.mxu0 %v1080_v17 }
 0x228   : > { %1696 = vmatmul.mubr.f32.gmra.mrb[116].mxu1 %v1077_v18  ;;  %v1129_v18 = vld [vmem:[#allocation6 + $0x6e0] sm:$0xff] }
 0x229   : > { %2401 = vmatmul.mubr.f32.gmra.mrb[116].mxu0 %v1079_v19  ;;  %1700 = vmatprep.mubr.f32.mxu1 %v1082_v20  ;;  %v1131_v19 = vld [vmem:[#allocation6 + $0x6f0] sm:$0xff] }
 0x22a   : > { %2405 = vmatprep.mubr.f32.mxu0 %v1084_v21  ;;  %v1134_v21 = vld [vmem:[#allocation6 + $0x708] sm:$0xff] }
 0x22c   : > { %1701 = vmatmul.mubr.f32.gmra.mrb[118].mxu1 %v1081_v22  ;;  %v1136_v22 = vld [vmem:[#allocation6 + $0x718] sm:$0xff] }
 0x22d   : > { %2406 = vmatmul.mubr.f32.gmra.mrb[118].mxu0 %v1083_v23  ;;  %1705 = vmatprep.mubr.f32.mxu1 %v1086_v24 }
 0x22e   : > { %2410 = vmatprep.mubr.f32.mxu0 %v1088_v25 }
 0x230   : > { %1706 = vmatmul.mubr.f32.gmra.mrb[120].mxu1 %v1085_v26 }
 0x231   : > { %2411 = vmatmul.mubr.f32.gmra.mrb[120].mxu0 %v1087_v27  ;;  %1710 = vmatprep.mubr.f32.mxu1 %v1090_v28  ;;  %v1133_v28 = vld [vmem:[#allocation6 + $0x700] sm:$0xff] }
 0x232   : > { %2415 = vmatprep.mubr.f32.mxu0 %v1092_v29  ;;  %v1135_v29 = vld [vmem:[#allocation6 + $0x710] sm:$0xff] }
 0x234   : > { %1711 = vmatmul.mubr.f32.gmra.mrb[122].mxu1 %v1089_v30 }
 0x235   : > { %2416 = vmatmul.mubr.f32.gmra.mrb[122].mxu0 %v1091_v31  ;;  %1715 = vmatprep.mubr.f32.mxu1 %v1094_v32  ;;  %v1138_v31 = vld [vmem:[#allocation6 + $0x728] sm:$0xff]  ;;  %v1140_v32 = vld [vmem:[#allocation6 + $0x738] sm:$0xff] }
 0x236   : > { %2420 = vmatprep.mubr.f32.mxu0 %v1096_v33 }
 0x238   : > { %1716 = vmatmul.mubr.f32.gmra.mrb[124].mxu1 %v1093_v34 }
 0x239   : > { %2421 = vmatmul.mubr.f32.gmra.mrb[124].mxu0 %v1095_v35  ;;  %1720 = vmatprep.mubr.f32.mxu1 %v1098_v36 }
 0x23a   : > { %2425 = vmatprep.mubr.f32.mxu0 %v1100_v37 }
 0x23c   : > { %1721 = vmatmul.mubr.f32.gmra.mrb[126].mxu1 %v1097_v38  ;;  %v1137_v38 = vld [vmem:[#allocation6 + $0x720] sm:$0xff] }
 0x23d   : > { %2426 = vmatmul.mubr.f32.gmra.mrb[126].mxu0 %v1099_v39  ;;  %1725 = vmatprep.mubr.f32.mxu1 %v1102_v40  ;;  %v1139_v39 = vld [vmem:[#allocation6 + $0x730] sm:$0xff] }
 0x23e   : > { %2430 = vmatprep.mubr.f32.mxu0 %v1104_v41  ;;  %v1142_v41 = vld [vmem:[#allocation6 + $0x748] sm:$0xff] }
 0x240   : > { %1726 = vmatmul.mubr.f32.gmra.mrb[128].mxu1 %v1101_v42  ;;  %v1144_v42 = vld [vmem:[#allocation6 + $0x758] sm:$0xff] }
 0x241   : > { %2431 = vmatmul.mubr.f32.gmra.mrb[128].mxu0 %v1103_v43  ;;  %1730 = vmatprep.mubr.f32.mxu1 %v1106_v44 }
 0x242   : > { %2435 = vmatprep.mubr.f32.mxu0 %v1108_v45 }
 0x244   : > { %1731 = vmatmul.mubr.f32.gmra.mrb[130].mxu1 %v1105_v46 }
 0x245   : > { %2436 = vmatmul.mubr.f32.gmra.mrb[130].mxu0 %v1107_v47  ;;  %1735 = vmatprep.mubr.f32.mxu1 %v1110_v48  ;;  %v1141_v48 = vld [vmem:[#allocation6 + $0x740] sm:$0xff] }
 0x246   : > { %2440 = vmatprep.mubr.f32.mxu0 %v1112_v49  ;;  %v1143_v49 = vld [vmem:[#allocation6 + $0x750] sm:$0xff] }
 0x248   : > { %1736 = vmatmul.mubr.f32.gmra.mrb[132].mxu1 %v1109_v6 }
 0x249   : > { %2441 = vmatmul.mubr.f32.gmra.mrb[132].mxu0 %v1111_v50  ;;  %1740 = vmatprep.mubr.f32.mxu1 %v1114_v51  ;;  %v1146_v50 = vld [vmem:[#allocation6 + $0x768] sm:$0xff]  ;;  %v1148_v51 = vld [vmem:[#allocation6 + $0x778] sm:$0xff] }
 0x24a   : > { %2445 = vmatprep.mubr.f32.mxu0 %v1116_v52 }
 0x24c   : > { %1741 = vmatmul.mubr.f32.gmra.mrb[134].mxu1 %v1113_v53 }
 0x24d   : > { %2446 = vmatmul.mubr.f32.gmra.mrb[134].mxu0 %v1115_v54  ;;  %1745 = vmatprep.mubr.f32.mxu1 %v1118_v55 }
 0x24e   : > { %2450 = vmatprep.mubr.f32.mxu0 %v1120_v56 }
 0x250   : > { %1746 = vmatmul.mubr.f32.gmra.mrb[136].mxu1 %v1117_v57  ;;  %v1145_v57 = vld [vmem:[#allocation6 + $0x760] sm:$0xff] }
 0x251   : > { %2451 = vmatmul.mubr.f32.gmra.mrb[136].mxu0 %v1119_v58  ;;  %1750 = vmatprep.mubr.f32.mxu1 %v1122_v59  ;;  %v1147_v58 = vld [vmem:[#allocation6 + $0x770] sm:$0xff] }
 0x252   : > { %2455 = vmatprep.mubr.f32.mxu0 %v1124_v60  ;;  %v1150_v60 = vld [vmem:[#allocation6 + $0x788] sm:$0xff] }
 0x253   : > { %v1487_v1 = vpop.f32.mrb[32].mxu1 }
 0x254   : > { %v2192_v2 = vpop.f32.mrb[32].mxu0  ;;  %v1489_v5 = vpop.f32.mrb[33].mxu1  ;;  %1751 = vmatmul.mubr.f32.gmra.mrb[138].mxu1 %v1121_v61  ;;  %v1152_v61 = vld [vmem:[#allocation6 + $0x798] sm:$0xff] }
 0x255   : > { %v2193_v4 = vadd.f32 %v2192_v2, %v1487_v1  ;;  %v2194_v7 = vpop.f32.mrb[33].mxu0  ;;  %2456 = vmatmul.mubr.f32.gmra.mrb[138].mxu0 %v1123_v62  ;;  %1755 = vmatprep.mubr.f32.mxu1 %v1126_v63  ;;  %v1151_v5 = vld [vmem:[#allocation6 + $0x790] sm:$0xff] }
 0x256   : > { %2460 = vmatprep.mubr.f32.mxu0 %v1128_v0 }
 0x257   : > { %v2834_v10 = vadd.f32 %v4338_v3, %v2193_v4  ;;  %v1492_v13 = vpop.f32.mrb[34].mxu1  ;;  %v1149_v4 = vld [vmem:[#allocation6 + $0x780] sm:$0xff] }
 0x258   : > { %v2197_v14 = vpop.f32.mrb[34].mxu0  ;;  %v1494_v16 = vpop.f32.mrb[35].mxu1  ;;  %1756 = vmatmul.mubr.f32.gmra.mrb[140].mxu1 %v1125_v8  ;;  %v1154_v8 = vld [vmem:[#allocation6 + $0x7a8] sm:$0xff] }
 0x259   : > { %2850 = vst [vmem:[%s4341_s12] sm:$0xff] %v2834_v10  ;;  %v2198_v15 = vadd.f32 %v2197_v14, %v1492_v13  ;;  %v2199_v17 = vpop.f32.mrb[35].mxu0  ;;  %2461 = vmatmul.mubr.f32.gmra.mrb[140].mxu0 %v1127_v9  ;;  %1760 = vmatprep.mubr.f32.mxu1 %v1130_v11  ;;  %v1156_v9 = vld [vmem:[#allocation6 + $0x7b8] sm:$0xff]  ;;  %v1155_v16 = vld [vmem:[#allocation6 + $0x7b0] sm:$0xff] }
 0x25a   : > { %2465 = vmatprep.mubr.f32.mxu0 %v1132_v12 }
 0x25b   : > { %v2835_v20 = vadd.f32 %v4338_v3, %v2198_v15  ;;  %v1497_v23 = vpop.f32.mrb[36].mxu1  ;;  %v1153_v15 = vld [vmem:[#allocation6 + $0x7a0] sm:$0xff] }
 0x25c   : > { %v2202_v24 = vpop.f32.mrb[36].mxu0  ;;  %v1499_v26 = vpop.f32.mrb[37].mxu1  ;;  %1761 = vmatmul.mubr.f32.gmra.mrb[142].mxu1 %v1129_v18  ;;  %v1158_v18 = vld [vmem:[#allocation6 + $0x7c8] sm:$0xff] }
 0x25d   : > { %2851 = vst [vmem:[%s4341_s12 + $0x8] sm:$0xff] %v2835_v20  ;;  %v2203_v25 = vadd.f32 %v2202_v24, %v1497_v23  ;;  %v2204_v27 = vpop.f32.mrb[37].mxu0  ;;  %2466 = vmatmul.mubr.f32.gmra.mrb[142].mxu0 %v1131_v19  ;;  %1765 = vmatprep.mubr.f32.mxu1 %v1134_v21  ;;  %v1160_v19 = vld [vmem:[#allocation6 + $0x7d8] sm:$0xff]  ;;  %v1159_v26 = vld [vmem:[#allocation6 + $0x7d0] sm:$0xff] }
 0x25e   : > { %2470 = vmatprep.mubr.f32.mxu0 %v1136_v22 }
 0x25f   : > { %v2836_v30 = vadd.f32 %v4338_v3, %v2203_v25  ;;  %v1502_v33 = vpop.f32.mrb[38].mxu1  ;;  %v1157_v25 = vld [vmem:[#allocation6 + $0x7c0] sm:$0xff] }
 0x260   : > { %v2207_v34 = vpop.f32.mrb[38].mxu0  ;;  %v1504_v36 = vpop.f32.mrb[39].mxu1  ;;  %1766 = vmatmul.mubr.f32.gmra.mrb[144].mxu1 %v1133_v28  ;;  %v1162_v28 = vld [vmem:[#allocation6 + $0x7e8] sm:$0xff] }
 0x261   : > { %2852 = vst [vmem:[%s4341_s12 + $0x10] sm:$0xff] %v2836_v30  ;;  %v2208_v35 = vadd.f32 %v2207_v34, %v1502_v33  ;;  %v2209_v37 = vpop.f32.mrb[39].mxu0  ;;  %2471 = vmatmul.mubr.f32.gmra.mrb[144].mxu0 %v1135_v29  ;;  %1770 = vmatprep.mubr.f32.mxu1 %v1138_v31  ;;  %v1164_v29 = vld [vmem:[#allocation6 + $0x7f8] sm:$0xff]  ;;  %v1163_v36 = vld [vmem:[#allocation6 + $0x7f0] sm:$0xff] }
 0x262   : > { %2475 = vmatprep.mubr.f32.mxu0 %v1140_v32 }
 0x263   : > { %v2837_v40 = vadd.f32 %v4338_v3, %v2208_v35  ;;  %v1507_v43 = vpop.f32.mrb[40].mxu1  ;;  %v1161_v35 = vld [vmem:[#allocation6 + $0x7e0] sm:$0xff] }
 0x264   : > { %v2212_v44 = vpop.f32.mrb[40].mxu0  ;;  %v1509_v46 = vpop.f32.mrb[41].mxu1  ;;  %1771 = vmatmul.mubr.f32.gmra.mrb[146].mxu1 %v1137_v38  ;;  %v1166_v38 = vld [vmem:[#allocation6 + $0x808] sm:$0xff] }
 0x265   : > { %2853 = vst [vmem:[%s4341_s12 + $0x18] sm:$0xff] %v2837_v40  ;;  %v2213_v45 = vadd.f32 %v2212_v44, %v1507_v43  ;;  %v2214_v47 = vpop.f32.mrb[41].mxu0  ;;  %2476 = vmatmul.mubr.f32.gmra.mrb[146].mxu0 %v1139_v39  ;;  %1775 = vmatprep.mubr.f32.mxu1 %v1142_v41  ;;  %v1168_v39 = vld [vmem:[#allocation6 + $0x818] sm:$0xff]  ;;  %v1167_v46 = vld [vmem:[#allocation6 + $0x810] sm:$0xff] }
 0x266   : > { %2480 = vmatprep.mubr.f32.mxu0 %v1144_v42 }
 0x267   : > { %v2838_v6 = vadd.f32 %v4338_v3, %v2213_v45  ;;  %v1512_v52 = vpop.f32.mrb[42].mxu1  ;;  %v1165_v45 = vld [vmem:[#allocation6 + $0x800] sm:$0xff] }
 0x268   : > { %v2217_v53 = vpop.f32.mrb[42].mxu0  ;;  %v1514_v55 = vpop.f32.mrb[43].mxu1  ;;  %1776 = vmatmul.mubr.f32.gmra.mrb[148].mxu1 %v1141_v48  ;;  %v1170_v48 = vld [vmem:[#allocation6 + $0x828] sm:$0xff] }
 0x269   : > { %2854 = vst [vmem:[%s4341_s12 + $0x20] sm:$0xff] %v2838_v6  ;;  %v2218_v54 = vadd.f32 %v2217_v53, %v1512_v52  ;;  %v2219_v56 = vpop.f32.mrb[43].mxu0  ;;  %2481 = vmatmul.mubr.f32.gmra.mrb[148].mxu0 %v1143_v49  ;;  %1780 = vmatprep.mubr.f32.mxu1 %v1146_v50  ;;  %v1172_v49 = vld [vmem:[#allocation6 + $0x838] sm:$0xff]  ;;  %v1171_v55 = vld [vmem:[#allocation6 + $0x830] sm:$0xff] }
 0x26a   : > { %2485 = vmatprep.mubr.f32.mxu0 %v1148_v51 }
 0x26b   : > { %v2839_v59 = vadd.f32 %v4338_v3, %v2218_v54  ;;  %v1517_v62 = vpop.f32.mrb[44].mxu1  ;;  %v1169_v54 = vld [vmem:[#allocation6 + $0x820] sm:$0xff] }
 0x26c   : > { %v2222_v63 = vpop.f32.mrb[44].mxu0  ;;  %v1519_v1 = vpop.f32.mrb[45].mxu1  ;;  %1781 = vmatmul.mubr.f32.gmra.mrb[150].mxu1 %v1145_v57  ;;  %v1174_v57 = vld [vmem:[#allocation6 + $0x848] sm:$0xff] }
 0x26d   : > { %2855 = vst [vmem:[%s4341_s12 + $0x28] sm:$0xff] %v2839_v59  ;;  %v2223_v0 = vadd.f32 %v2222_v63, %v1517_v62  ;;  %v2224_v2 = vpop.f32.mrb[45].mxu0  ;;  %2486 = vmatmul.mubr.f32.gmra.mrb[150].mxu0 %v1147_v58  ;;  %1785 = vmatprep.mubr.f32.mxu1 %v1150_v60  ;;  %v1176_v58 = vld [vmem:[#allocation6 + $0x858] sm:$0xff]  ;;  %v1175_v1 = vld [vmem:[#allocation6 + $0x850] sm:$0xff] }
 0x26e   : > { %2490 = vmatprep.mubr.f32.mxu0 %v1152_v61 }
 0x26f   : > { %v2840_v7 = vadd.f32 %v4338_v3, %v2223_v0  ;;  %v1522_v10 = vpop.f32.mrb[46].mxu1  ;;  %v1173_v0 = vld [vmem:[#allocation6 + $0x840] sm:$0xff] }
 0x270   : > { %v2227_v11 = vpop.f32.mrb[46].mxu0  ;;  %v1524_v13 = vpop.f32.mrb[47].mxu1  ;;  %1786 = vmatmul.mubr.f32.gmra.mrb[152].mxu1 %v1149_v4  ;;  %v1178_v4 = vld [vmem:[#allocation6 + $0x868] sm:$0xff] }
 0x271   : > { %2856 = vst [vmem:[%s4341_s12 + $0x30] sm:$0xff] %v2840_v7  ;;  %v2228_v12 = vadd.f32 %v2227_v11, %v1522_v10  ;;  %v2229_v14 = vpop.f32.mrb[47].mxu0  ;;  %2491 = vmatmul.mubr.f32.gmra.mrb[152].mxu0 %v1151_v5  ;;  %1790 = vmatprep.mubr.f32.mxu1 %v1154_v8  ;;  %v1180_v5 = vld [vmem:[#allocation6 + $0x878] sm:$0xff]  ;;  %v1179_v13 = vld [vmem:[#allocation6 + $0x870] sm:$0xff] }
 0x272   : > { %2495 = vmatprep.mubr.f32.mxu0 %v1156_v9 }
 0x273   : > { %v2841_v17 = vadd.f32 %v4338_v3, %v2228_v12  ;;  %v1527_v20 = vpop.f32.mrb[48].mxu1  ;;  %v1177_v12 = vld [vmem:[#allocation6 + $0x860] sm:$0xff] }
 0x274   : > { %v2232_v21 = vpop.f32.mrb[48].mxu0  ;;  %v1529_v23 = vpop.f32.mrb[49].mxu1  ;;  %1791 = vmatmul.mubr.f32.gmra.mrb[154].mxu1 %v1153_v15  ;;  %v1182_v15 = vld [vmem:[#allocation6 + $0x888] sm:$0xff] }
 0x275   : > { %2857 = vst [vmem:[%s4341_s12 + $0x38] sm:$0xff] %v2841_v17  ;;  %v2233_v22 = vadd.f32 %v2232_v21, %v1527_v20  ;;  %v2234_v24 = vpop.f32.mrb[49].mxu0  ;;  %2496 = vmatmul.mubr.f32.gmra.mrb[154].mxu0 %v1155_v16  ;;  %1795 = vmatprep.mubr.f32.mxu1 %v1158_v18  ;;  %v1184_v16 = vld [vmem:[#allocation6 + $0x898] sm:$0xff]  ;;  %v1183_v23 = vld [vmem:[#allocation6 + $0x890] sm:$0xff] }
 0x276   : > { %2500 = vmatprep.mubr.f32.mxu0 %v1160_v19 }
 0x277   : > { %v2842_v27 = vadd.f32 %v4338_v3, %v2233_v22  ;;  %v1532_v30 = vpop.f32.mrb[50].mxu1  ;;  %v1181_v22 = vld [vmem:[#allocation6 + $0x880] sm:$0xff] }
 0x278   : > { %v2237_v31 = vpop.f32.mrb[50].mxu0  ;;  %v1534_v33 = vpop.f32.mrb[51].mxu1  ;;  %1796 = vmatmul.mubr.f32.gmra.mrb[156].mxu1 %v1157_v25  ;;  %v1186_v25 = vld [vmem:[#allocation6 + $0x8a8] sm:$0xff] }
 0x279   : > { %2858 = vst [vmem:[%s4341_s12 + $0x40] sm:$0xff] %v2842_v27  ;;  %v2238_v32 = vadd.f32 %v2237_v31, %v1532_v30  ;;  %v2239_v34 = vpop.f32.mrb[51].mxu0  ;;  %2501 = vmatmul.mubr.f32.gmra.mrb[156].mxu0 %v1159_v26  ;;  %1800 = vmatprep.mubr.f32.mxu1 %v1162_v28  ;;  %v1188_v26 = vld [vmem:[#allocation6 + $0x8b8] sm:$0xff]  ;;  %v1187_v33 = vld [vmem:[#allocation6 + $0x8b0] sm:$0xff] }
 0x27a   : > { %2505 = vmatprep.mubr.f32.mxu0 %v1164_v29 }
 0x27b   : > { %v2843_v37 = vadd.f32 %v4338_v3, %v2238_v32  ;;  %v1537_v40 = vpop.f32.mrb[52].mxu1  ;;  %v1185_v32 = vld [vmem:[#allocation6 + $0x8a0] sm:$0xff] }
 0x27c   : > { %v2242_v41 = vpop.f32.mrb[52].mxu0  ;;  %v1539_v43 = vpop.f32.mrb[53].mxu1  ;;  %1801 = vmatmul.mubr.f32.gmra.mrb[158].mxu1 %v1161_v35  ;;  %v1190_v35 = vld [vmem:[#allocation6 + $0x8c8] sm:$0xff] }
 0x27d   : > { %2859 = vst [vmem:[%s4341_s12 + $0x48] sm:$0xff] %v2843_v37  ;;  %v2243_v42 = vadd.f32 %v2242_v41, %v1537_v40  ;;  %v2244_v44 = vpop.f32.mrb[53].mxu0  ;;  %2506 = vmatmul.mubr.f32.gmra.mrb[158].mxu0 %v1163_v36  ;;  %1805 = vmatprep.mubr.f32.mxu1 %v1166_v38  ;;  %v1192_v36 = vld [vmem:[#allocation6 + $0x8d8] sm:$0xff]  ;;  %v1189_v43 = vld [vmem:[#allocation6 + $0x8c0] sm:$0xff] }
 0x27e   : > { %2510 = vmatprep.mubr.f32.mxu0 %v1168_v39  ;;  %v4376_v39 = vstv %s4369_s13  ;;  %v1191_v44 = vld [vmem:[#allocation6 + $0x8d0] sm:$0xff]  ;;  %s3896_s13 = scalar_lea.vmem %s3895_s11, 32768 }
 0x27f   : > { %v2844_v47 = vadd.f32 %v4338_v3, %v2243_v42  ;;  %v1542_v6 = vpop.f32.mrb[54].mxu1  ;;  %p3898_p12 = scmp.lt.s32.totalorder %s3896_s13, %s3890_s23 }
 0x280   : > { %v2247_v50 = vpop.f32.mrb[54].mxu0  ;;  %v1544_v52 = vpop.f32.mrb[55].mxu1  ;;  %1806 = vmatmul.mubr.f32.gmra.mrb[160].mxu1 %v1165_v45 }
 0x281   : > { %2860 = vst [vmem:[%s4341_s12 + $0x50] sm:$0xff] %v2844_v47  ;;  %v2248_v51 = vadd.f32 %v2247_v50, %v1542_v6  ;;  %v2249_v53 = vpop.f32.mrb[55].mxu0  ;;  %2511 = vmatmul.mubr.f32.gmra.mrb[160].mxu0 %v1167_v46  ;;  %1810 = vmatprep.mubr.f32.mxu1 %v1170_v48  ;;  %v1196_v46 = vld [vmem:[#allocation6 + $0x8f8] sm:$0xff]  ;;  %v1195_v52 = vld [vmem:[#allocation6 + $0x8f0] sm:$0xff]  ;;  %p3899_p0 = por %p3898_p12, %p3897_p9 }
 0x282   : > { %2515 = vmatprep.mubr.f32.mxu0 %v1172_v49 }
 0x283   : > { %v2845_v56 = vadd.f32 %v4338_v3, %v2248_v51  ;;  %v1547_v59 = vpop.f32.mrb[56].mxu1  ;;  %v1193_v51 = vld [vmem:[#allocation6 + $0x8e0] sm:$0xff]  ;;  %p3900_p4 = pnand %p3899_p0, %p3893_p7 }
 0x284   : > { %v2252_v60 = vpop.f32.mrb[56].mxu0  ;;  %v1549_v62 = vpop.f32.mrb[57].mxu1  ;;  %1811 = vmatmul.mubr.f32.gmra.mrb[162].mxu1 %v1169_v54  ;;  %v1198_v54 = vld [vmem:[#allocation6 + $0x908] sm:$0xff] }
 0x285   : > { %2861 = vst [vmem:[%s4341_s12 + $0x58] sm:$0xff] %v2845_v56  ;;  %v2253_v61 = vadd.f32 %v2252_v60, %v1547_v59  ;;  %v2254_v63 = vpop.f32.mrb[57].mxu0  ;;  %2516 = vmatmul.mubr.f32.gmra.mrb[162].mxu0 %v1171_v55  ;;  %1815 = vmatprep.mubr.f32.mxu1 %v1174_v57  ;;  %v1200_v55 = vld [vmem:[#allocation6 + $0x918] sm:$0xff]  ;;  %v1199_v62 = vld [vmem:[#allocation6 + $0x910] sm:$0xff] }
 0x286   : > { %2520 = vmatprep.mubr.f32.mxu0 %v1176_v58 }
 0x287   : > { %v2846_v2 = vadd.f32 %v4338_v3, %v2253_v61  ;;  %v1552_v7 = vpop.f32.mrb[58].mxu1  ;;  %v1197_v61 = vld [vmem:[#allocation6 + $0x900] sm:$0xff] }
 0x288   : > { %v2257_v8 = vpop.f32.mrb[58].mxu0  ;;  %v1554_v10 = vpop.f32.mrb[59].mxu1  ;;  %1816 = vmatmul.mubr.f32.gmra.mrb[164].mxu1 %v1173_v0  ;;  %v1202_v0 = vld [vmem:[#allocation6 + $0x928] sm:$0xff] }
 0x289   : > { %2862 = vst [vmem:[%s4341_s12 + $0x60] sm:$0xff] %v2846_v2  ;;  %v2258_v9 = vadd.f32 %v2257_v8, %v1552_v7  ;;  %v2259_v11 = vpop.f32.mrb[59].mxu0  ;;  %2521 = vmatmul.mubr.f32.gmra.mrb[164].mxu0 %v1175_v1  ;;  %1820 = vmatprep.mubr.f32.mxu1 %v1178_v4  ;;  %v1204_v1 = vld [vmem:[#allocation6 + $0x938] sm:$0xff]  ;;  %v1203_v10 = vld [vmem:[#allocation6 + $0x930] sm:$0xff] }
 0x28a   : > { %2525 = vmatprep.mubr.f32.mxu0 %v1180_v5 }
 0x28b   : > { %v2847_v14 = vadd.f32 %v4338_v3, %v2258_v9  ;;  %v1557_v17 = vpop.f32.mrb[60].mxu1  ;;  %v1201_v9 = vld [vmem:[#allocation6 + $0x920] sm:$0xff] }
 0x28c   : > { %v2262_v18 = vpop.f32.mrb[60].mxu0  ;;  %v1559_v20 = vpop.f32.mrb[61].mxu1  ;;  %1821 = vmatmul.mubr.f32.gmra.mrb[166].mxu1 %v1177_v12  ;;  %v1206_v12 = vld [vmem:[#allocation6 + $0x948] sm:$0xff] }
 0x28d   : > { %2863 = vst [vmem:[%s4341_s12 + $0x68] sm:$0xff] %v2847_v14  ;;  %v2263_v19 = vadd.f32 %v2262_v18, %v1557_v17  ;;  %v2264_v21 = vpop.f32.mrb[61].mxu0  ;;  %2526 = vmatmul.mubr.f32.gmra.mrb[166].mxu0 %v1179_v13  ;;  %1825 = vmatprep.mubr.f32.mxu1 %v1182_v15  ;;  %v1208_v13 = vld [vmem:[#allocation6 + $0x958] sm:$0xff]  ;;  %v1207_v20 = vld [vmem:[#allocation6 + $0x950] sm:$0xff] }
 0x28e   : > { %2530 = vmatprep.mubr.f32.mxu0 %v1184_v16 }
 0x28f   : > { %v2848_v24 = vadd.f32 %v4338_v3, %v2263_v19  ;;  %v1562_v27 = vpop.f32.mrb[62].mxu1  ;;  %v1205_v19 = vld [vmem:[#allocation6 + $0x940] sm:$0xff] }
 0x290   : > { %v2267_v28 = vpop.f32.mrb[62].mxu0  ;;  %v1564_v30 = vpop.f32.mrb[63].mxu1  ;;  %1826 = vmatmul.mubr.f32.gmra.mrb[168].mxu1 %v1181_v22  ;;  %v1210_v22 = vld [vmem:[#allocation6 + $0x968] sm:$0xff] }
 0x291   : > { %2864 = vst [vmem:[%s4341_s12 + $0x70] sm:$0xff] %v2848_v24  ;;  %v2268_v29 = vadd.f32 %v2267_v28, %v1562_v27  ;;  %v2269_v31 = vpop.f32.mrb[63].mxu0  ;;  %2531 = vmatmul.mubr.f32.gmra.mrb[168].mxu0 %v1183_v23  ;;  %1830 = vmatprep.mubr.f32.mxu1 %v1186_v25  ;;  %v1212_v23 = vld [vmem:[#allocation6 + $0x978] sm:$0xff]  ;;  %v1211_v30 = vld [vmem:[#allocation6 + $0x970] sm:$0xff] }
 0x292   : > { %2535 = vmatprep.mubr.f32.mxu0 %v1188_v26 }
 0x293   : > { %v2849_v34 = vadd.f32 %v4338_v3, %v2268_v29  ;;  %v1567_v37 = vpop.f32.mrb[64].mxu1  ;;  %v1194_v3 = vld [vmem:[#allocation6 + $0x8e8] sm:$0xff]  ;;  %v1209_v29 = vld [vmem:[#allocation6 + $0x960] sm:$0xff] }
 0x294   : > { %v2272_v38 = vpop.f32.mrb[64].mxu0  ;;  %v1569_v41 = vpop.f32.mrb[65].mxu1  ;;  %1831 = vmatmul.mubr.f32.gmra.mrb[170].mxu1 %v1185_v32  ;;  %v1214_v32 = vld [vmem:[#allocation6 + $0x988] sm:$0xff] }
 0x295   : > { %2865 = vst [vmem:[%s4341_s12 + $0x78] sm:$0xff] %v2849_v34  ;;  %v2273_v40 = vadd.f32 %v2272_v38, %v1567_v37  ;;  %v2274_v42 = vpop.f32.mrb[65].mxu0  ;;  %2536 = vmatmul.mubr.f32.gmra.mrb[170].mxu0 %v1187_v33  ;;  %1835 = vmatprep.mubr.f32.mxu1 %v1190_v35  ;;  %v1216_v33 = vld [vmem:[#allocation6 + $0x998] sm:$0xff]  ;;  %v1215_v41 = vld [vmem:[#allocation6 + $0x990] sm:$0xff] }
 0x296   : > { %2540 = vmatprep.mubr.f32.mxu0 %v1192_v36 }
 0x297   : > { %v2869_v45 = vadd.f32 %v4376_v39, %v2273_v40  ;;  %v1572_v47 = vpop.f32.mrb[66].mxu1  ;;  %v1213_v40 = vld [vmem:[#allocation6 + $0x980] sm:$0xff] }
 0x298   : > { %v2277_v48 = vpop.f32.mrb[66].mxu0  ;;  %v1574_v6 = vpop.f32.mrb[67].mxu1  ;;  %1836 = vmatmul.mubr.f32.gmra.mrb[172].mxu1 %v1189_v43  ;;  %v1218_v43 = vld [vmem:[#allocation6 + $0x9a8] sm:$0xff] }
 0x299   : > { %3323 = vst [vmem:[%s4341_s12 + $0x80] sm:$0xff] %v2869_v45  ;;  %v2278_v49 = vadd.f32 %v2277_v48, %v1572_v47  ;;  %v2279_v50 = vpop.f32.mrb[67].mxu0  ;;  %2541 = vmatmul.mubr.f32.gmra.mrb[172].mxu0 %v1191_v44  ;;  %1840 = vmatprep.mubr.f32.mxu1 %v1194_v3  ;;  %v1220_v44 = vld [vmem:[#allocation6 + $0x9b8] sm:$0xff]  ;;  %v1219_v6 = vld [vmem:[#allocation6 + $0x9b0] sm:$0xff] }
 0x29a   : > { %2545 = vmatprep.mubr.f32.mxu0 %v1196_v46 }
 0x29b   : > { %v2870_v53 = vadd.f32 %v4376_v39, %v2278_v49  ;;  %v1577_v56 = vpop.f32.mrb[68].mxu1  ;;  %v1217_v49 = vld [vmem:[#allocation6 + $0x9a0] sm:$0xff] }
 0x29c   : > { %v2282_v57 = vpop.f32.mrb[68].mxu0  ;;  %v1579_v59 = vpop.f32.mrb[69].mxu1  ;;  %1841 = vmatmul.mubr.f32.gmra.mrb[174].mxu1 %v1193_v51  ;;  %v1222_v51 = vld [vmem:[#allocation6 + $0x9c8] sm:$0xff] }
 0x29d   : > { %3324 = vst [vmem:[%s4341_s12 + $0x88] sm:$0xff] %v2870_v53  ;;  %v2283_v58 = vadd.f32 %v2282_v57, %v1577_v56  ;;  %v2284_v60 = vpop.f32.mrb[69].mxu0  ;;  %2546 = vmatmul.mubr.f32.gmra.mrb[174].mxu0 %v1195_v52  ;;  %1845 = vmatprep.mubr.f32.mxu1 %v1198_v54  ;;  %v1224_v52 = vld [vmem:[#allocation6 + $0x9d8] sm:$0xff]  ;;  %v1223_v59 = vld [vmem:[#allocation6 + $0x9d0] sm:$0xff] }
 0x29e   : > { %2550 = vmatprep.mubr.f32.mxu0 %v1200_v55 }
 0x29f   : > { %v2871_v63 = vadd.f32 %v4376_v39, %v2283_v58  ;;  %v1582_v2 = vpop.f32.mrb[70].mxu1  ;;  %v1221_v58 = vld [vmem:[#allocation6 + $0x9c0] sm:$0xff] }
 0x2a0   : > { %v2287_v4 = vpop.f32.mrb[70].mxu0  ;;  %v1584_v7 = vpop.f32.mrb[71].mxu1  ;;  %1846 = vmatmul.mubr.f32.gmra.mrb[176].mxu1 %v1197_v61  ;;  %v1226_v61 = vld [vmem:[#allocation6 + $0x9e8] sm:$0xff] }
 0x2a1   : > { %3325 = vst [vmem:[%s4341_s12 + $0x90] sm:$0xff] %v2871_v63  ;;  %v2288_v5 = vadd.f32 %v2287_v4, %v1582_v2  ;;  %v2289_v8 = vpop.f32.mrb[71].mxu0  ;;  %2551 = vmatmul.mubr.f32.gmra.mrb[176].mxu0 %v1199_v62  ;;  %1850 = vmatprep.mubr.f32.mxu1 %v1202_v0  ;;  %v1228_v62 = vld [vmem:[#allocation6 + $0x9f8] sm:$0xff]  ;;  %v1227_v7 = vld [vmem:[#allocation6 + $0x9f0] sm:$0xff] }
 0x2a2   : > { %2555 = vmatprep.mubr.f32.mxu0 %v1204_v1 }
 0x2a3   : > { %v2872_v11 = vadd.f32 %v4376_v39, %v2288_v5  ;;  %v1587_v14 = vpop.f32.mrb[72].mxu1  ;;  %v1225_v5 = vld [vmem:[#allocation6 + $0x9e0] sm:$0xff] }
 0x2a4   : > { %v2292_v15 = vpop.f32.mrb[72].mxu0  ;;  %v1589_v17 = vpop.f32.mrb[73].mxu1  ;;  %1851 = vmatmul.mubr.f32.gmra.mrb[178].mxu1 %v1201_v9  ;;  %v1230_v9 = vld [vmem:[#allocation6 + $0xa08] sm:$0xff] }
 0x2a5   : > { %3326 = vst [vmem:[%s4341_s12 + $0x98] sm:$0xff] %v2872_v11  ;;  %v2293_v16 = vadd.f32 %v2292_v15, %v1587_v14  ;;  %v2294_v18 = vpop.f32.mrb[73].mxu0  ;;  %2556 = vmatmul.mubr.f32.gmra.mrb[178].mxu0 %v1203_v10  ;;  %1855 = vmatprep.mubr.f32.mxu1 %v1206_v12  ;;  %v1232_v10 = vld [vmem:[#allocation6 + $0xa18] sm:$0xff]  ;;  %v1231_v17 = vld [vmem:[#allocation6 + $0xa10] sm:$0xff] }
 0x2a6   : > { %2560 = vmatprep.mubr.f32.mxu0 %v1208_v13 }
 0x2a7   : > { %v2873_v21 = vadd.f32 %v4376_v39, %v2293_v16  ;;  %v1592_v24 = vpop.f32.mrb[74].mxu1  ;;  %v1229_v16 = vld [vmem:[#allocation6 + $0xa00] sm:$0xff] }
 0x2a8   : > { %v2297_v25 = vpop.f32.mrb[74].mxu0  ;;  %v1594_v27 = vpop.f32.mrb[75].mxu1  ;;  %1856 = vmatmul.mubr.f32.gmra.mrb[180].mxu1 %v1205_v19  ;;  %v1234_v19 = vld [vmem:[#allocation6 + $0xa28] sm:$0xff] }
 0x2a9   : > { %3327 = vst [vmem:[%s4341_s12 + $0xa0] sm:$0xff] %v2873_v21  ;;  %v2298_v26 = vadd.f32 %v2297_v25, %v1592_v24  ;;  %v2299_v28 = vpop.f32.mrb[75].mxu0  ;;  %2561 = vmatmul.mubr.f32.gmra.mrb[180].mxu0 %v1207_v20  ;;  %1860 = vmatprep.mubr.f32.mxu1 %v1210_v22  ;;  %v1236_v20 = vld [vmem:[#allocation6 + $0xa38] sm:$0xff]  ;;  %v1235_v27 = vld [vmem:[#allocation6 + $0xa30] sm:$0xff] }
 0x2aa   : > { %2565 = vmatprep.mubr.f32.mxu0 %v1212_v23 }
 0x2ab   : > { %v2874_v31 = vadd.f32 %v4376_v39, %v2298_v26  ;;  %v1597_v34 = vpop.f32.mrb[76].mxu1  ;;  %v1233_v26 = vld [vmem:[#allocation6 + $0xa20] sm:$0xff] }
 0x2ac   : > { %v2302_v35 = vpop.f32.mrb[76].mxu0  ;;  %v1599_v37 = vpop.f32.mrb[77].mxu1  ;;  %1861 = vmatmul.mubr.f32.gmra.mrb[182].mxu1 %v1209_v29  ;;  %v1238_v29 = vld [vmem:[#allocation6 + $0xa48] sm:$0xff] }
 0x2ad   : > { %3328 = vst [vmem:[%s4341_s12 + $0xa8] sm:$0xff] %v2874_v31  ;;  %v2303_v36 = vadd.f32 %v2302_v35, %v1597_v34  ;;  %v2304_v38 = vpop.f32.mrb[77].mxu0  ;;  %2566 = vmatmul.mubr.f32.gmra.mrb[182].mxu0 %v1211_v30  ;;  %1865 = vmatprep.mubr.f32.mxu1 %v1214_v32  ;;  %v1240_v30 = vld [vmem:[#allocation6 + $0xa58] sm:$0xff]  ;;  %v1239_v37 = vld [vmem:[#allocation6 + $0xa50] sm:$0xff] }
 0x2ae   : > { %2570 = vmatprep.mubr.f32.mxu0 %v1216_v33 }
 0x2af   : > { %v2875_v42 = vadd.f32 %v4376_v39, %v2303_v36  ;;  %v1602_v45 = vpop.f32.mrb[78].mxu1  ;;  %v1237_v36 = vld [vmem:[#allocation6 + $0xa40] sm:$0xff] }
 0x2b0   : > { %v2307_v3 = vpop.f32.mrb[78].mxu0  ;;  %v1604_v47 = vpop.f32.mrb[79].mxu1  ;;  %1866 = vmatmul.mubr.f32.gmra.mrb[184].mxu1 %v1213_v40  ;;  %v1242_v40 = vld [vmem:[#allocation6 + $0xa68] sm:$0xff] }
 0x2b1   : > { %3329 = vst [vmem:[%s4341_s12 + $0xb0] sm:$0xff] %v2875_v42  ;;  %v2308_v46 = vadd.f32 %v2307_v3, %v1602_v45  ;;  %v2309_v48 = vpop.f32.mrb[79].mxu0  ;;  %2571 = vmatmul.mubr.f32.gmra.mrb[184].mxu0 %v1215_v41  ;;  %1870 = vmatprep.mubr.f32.mxu1 %v1218_v43  ;;  %v1244_v41 = vld [vmem:[#allocation6 + $0xa78] sm:$0xff]  ;;  %v1243_v47 = vld [vmem:[#allocation6 + $0xa70] sm:$0xff] }
 0x2b2   : > { %2575 = vmatprep.mubr.f32.mxu0 %v1220_v44 }
 0x2b3   : > { %v2876_v50 = vadd.f32 %v4376_v39, %v2308_v46  ;;  %v1607_v53 = vpop.f32.mrb[80].mxu1  ;;  %v1241_v46 = vld [vmem:[#allocation6 + $0xa60] sm:$0xff] }
 0x2b4   : > { %v2312_v54 = vpop.f32.mrb[80].mxu0  ;;  %v1609_v56 = vpop.f32.mrb[81].mxu1  ;;  %1871 = vmatmul.mubr.f32.gmra.mrb[186].mxu1 %v1217_v49  ;;  %v1246_v49 = vld [vmem:[#allocation6 + $0xa88] sm:$0xff] }
 0x2b5   : > { %3330 = vst [vmem:[%s4341_s12 + $0xb8] sm:$0xff] %v2876_v50  ;;  %v2313_v55 = vadd.f32 %v2312_v54, %v1607_v53  ;;  %v2314_v57 = vpop.f32.mrb[81].mxu0  ;;  %2576 = vmatmul.mubr.f32.gmra.mrb[186].mxu0 %v1219_v6  ;;  %1875 = vmatprep.mubr.f32.mxu1 %v1222_v51  ;;  %v1248_v6 = vld [vmem:[#allocation6 + $0xa98] sm:$0xff]  ;;  %v1247_v56 = vld [vmem:[#allocation6 + $0xa90] sm:$0xff] }
 0x2b6   : > { %2580 = vmatprep.mubr.f32.mxu0 %v1224_v52 }
 0x2b7   : > { %v2877_v60 = vadd.f32 %v4376_v39, %v2313_v55  ;;  %v1612_v63 = vpop.f32.mrb[82].mxu1  ;;  %v1245_v55 = vld [vmem:[#allocation6 + $0xa80] sm:$0xff] }
 0x2b8   : > { %v2317_v0 = vpop.f32.mrb[82].mxu0  ;;  %v1614_v2 = vpop.f32.mrb[83].mxu1  ;;  %1876 = vmatmul.mubr.f32.gmra.mrb[188].mxu1 %v1221_v58  ;;  %v1250_v58 = vld [vmem:[#allocation6 + $0xaa8] sm:$0xff] }
 0x2b9   : > { %3331 = vst [vmem:[%s4341_s12 + $0xc0] sm:$0xff] %v2877_v60  ;;  %v2318_v1 = vadd.f32 %v2317_v0, %v1612_v63  ;;  %v2319_v4 = vpop.f32.mrb[83].mxu0  ;;  %2581 = vmatmul.mubr.f32.gmra.mrb[188].mxu0 %v1223_v59  ;;  %1880 = vmatprep.mubr.f32.mxu1 %v1226_v61  ;;  %v1252_v59 = vld [vmem:[#allocation6 + $0xab8] sm:$0xff]  ;;  %v1251_v2 = vld [vmem:[#allocation6 + $0xab0] sm:$0xff] }
 0x2ba   : > { %2585 = vmatprep.mubr.f32.mxu0 %v1228_v62 }
 0x2bb   : > { %v2878_v8 = vadd.f32 %v4376_v39, %v2318_v1  ;;  %v1617_v11 = vpop.f32.mrb[84].mxu1  ;;  %v1249_v1 = vld [vmem:[#allocation6 + $0xaa0] sm:$0xff] }
 0x2bc   : > { %v2322_v12 = vpop.f32.mrb[84].mxu0  ;;  %v1619_v14 = vpop.f32.mrb[85].mxu1  ;;  %1881 = vmatmul.mubr.f32.gmra.mrb[190].mxu1 %v1225_v5  ;;  %v1254_v5 = vld [vmem:[#allocation6 + $0xac8] sm:$0xff] }
 0x2bd   : > { %3332 = vst [vmem:[%s4341_s12 + $0xc8] sm:$0xff] %v2878_v8  ;;  %v2323_v13 = vadd.f32 %v2322_v12, %v1617_v11  ;;  %v2324_v15 = vpop.f32.mrb[85].mxu0  ;;  %2586 = vmatmul.mubr.f32.gmra.mrb[190].mxu0 %v1227_v7  ;;  %1885 = vmatprep.mubr.f32.mxu1 %v1230_v9  ;;  %v1256_v7 = vld [vmem:[#allocation6 + $0xad8] sm:$0xff]  ;;  %v1253_v14 = vld [vmem:[#allocation6 + $0xac0] sm:$0xff] }
 0x2be   : > { %2590 = vmatprep.mubr.f32.mxu0 %v1232_v10  ;;  %v4413_v10 = vstv %s4406_s14  ;;  %v1255_v15 = vld [vmem:[#allocation6 + $0xad0] sm:$0xff] }
 0x2bf   : > { %v2879_v18 = vadd.f32 %v4376_v39, %v2323_v13  ;;  %v1622_v21 = vpop.f32.mrb[86].mxu1 }
 0x2c0   : > { %v2327_v22 = vpop.f32.mrb[86].mxu0  ;;  %v1624_v24 = vpop.f32.mrb[87].mxu1  ;;  %1886 = vmatmul.mubr.f32.gmra.mrb[192].mxu1 %v1229_v16 }
 0x2c1   : > { %3333 = vst [vmem:[%s4341_s12 + $0xd0] sm:$0xff] %v2879_v18  ;;  %v2328_v23 = vadd.f32 %v2327_v22, %v1622_v21  ;;  %v2329_v25 = vpop.f32.mrb[87].mxu0  ;;  %2591 = vmatmul.mubr.f32.gmra.mrb[192].mxu0 %v1231_v17  ;;  %1890 = vmatprep.mubr.f32.mxu1 %v1234_v19  ;;  %v1260_v17 = vld [vmem:[#allocation6 + $0xaf8] sm:$0xff]  ;;  %v1259_v24 = vld [vmem:[#allocation6 + $0xaf0] sm:$0xff] }
 0x2c2   : > { %2595 = vmatprep.mubr.f32.mxu0 %v1236_v20 }
 0x2c3   : > { %v2880_v28 = vadd.f32 %v4376_v39, %v2328_v23  ;;  %v1627_v31 = vpop.f32.mrb[88].mxu1  ;;  %v1257_v23 = vld [vmem:[#allocation6 + $0xae0] sm:$0xff] }
 0x2c4   : > { %v2332_v32 = vpop.f32.mrb[88].mxu0  ;;  %v1629_v34 = vpop.f32.mrb[89].mxu1  ;;  %1891 = vmatmul.mubr.f32.gmra.mrb[194].mxu1 %v1233_v26  ;;  %v1262_v26 = vld [vmem:[#allocation6 + $0xb08] sm:$0xff] }
 0x2c5   : > { %3334 = vst [vmem:[%s4341_s12 + $0xd8] sm:$0xff] %v2880_v28  ;;  %v2333_v33 = vadd.f32 %v2332_v32, %v1627_v31  ;;  %v2334_v35 = vpop.f32.mrb[89].mxu0  ;;  %2596 = vmatmul.mubr.f32.gmra.mrb[194].mxu0 %v1235_v27  ;;  %1895 = vmatprep.mubr.f32.mxu1 %v1238_v29  ;;  %v1264_v27 = vld [vmem:[#allocation6 + $0xb18] sm:$0xff]  ;;  %v1263_v34 = vld [vmem:[#allocation6 + $0xb10] sm:$0xff] }
 0x2c6   : > { %2600 = vmatprep.mubr.f32.mxu0 %v1240_v30 }
 0x2c7   : > { %v2881_v38 = vadd.f32 %v4376_v39, %v2333_v33  ;;  %v1632_v42 = vpop.f32.mrb[90].mxu1  ;;  %v1261_v33 = vld [vmem:[#allocation6 + $0xb00] sm:$0xff] }
 0x2c8   : > { %v2337_v43 = vpop.f32.mrb[90].mxu0  ;;  %v1634_v45 = vpop.f32.mrb[91].mxu1  ;;  %1896 = vmatmul.mubr.f32.gmra.mrb[196].mxu1 %v1237_v36  ;;  %v1266_v36 = vld [vmem:[#allocation6 + $0xb28] sm:$0xff] }
 0x2c9   : > { %3335 = vst [vmem:[%s4341_s12 + $0xe0] sm:$0xff] %v2881_v38  ;;  %v2338_v44 = vadd.f32 %v2337_v43, %v1632_v42  ;;  %v2339_v3 = vpop.f32.mrb[91].mxu0  ;;  %2601 = vmatmul.mubr.f32.gmra.mrb[196].mxu0 %v1239_v37  ;;  %1900 = vmatprep.mubr.f32.mxu1 %v1242_v40  ;;  %v1268_v37 = vld [vmem:[#allocation6 + $0xb38] sm:$0xff]  ;;  %v1267_v45 = vld [vmem:[#allocation6 + $0xb30] sm:$0xff] }
 0x2ca   : > { %2605 = vmatprep.mubr.f32.mxu0 %v1244_v41 }
 0x2cb   : > { %v2882_v48 = vadd.f32 %v4376_v39, %v2338_v44  ;;  %v1637_v50 = vpop.f32.mrb[92].mxu1  ;;  %v1265_v44 = vld [vmem:[#allocation6 + $0xb20] sm:$0xff] }
 0x2cc   : > { %v2342_v51 = vpop.f32.mrb[92].mxu0  ;;  %v1639_v53 = vpop.f32.mrb[93].mxu1  ;;  %1901 = vmatmul.mubr.f32.gmra.mrb[198].mxu1 %v1241_v46  ;;  %v1270_v46 = vld [vmem:[#allocation6 + $0xb48] sm:$0xff] }
 0x2cd   : > { %3336 = vst [vmem:[%s4341_s12 + $0xe8] sm:$0xff] %v2882_v48  ;;  %v2343_v52 = vadd.f32 %v2342_v51, %v1637_v50  ;;  %v2344_v54 = vpop.f32.mrb[93].mxu0  ;;  %2606 = vmatmul.mubr.f32.gmra.mrb[198].mxu0 %v1243_v47  ;;  %1905 = vmatprep.mubr.f32.mxu1 %v1246_v49  ;;  %v1272_v47 = vld [vmem:[#allocation6 + $0xb58] sm:$0xff]  ;;  %v1271_v53 = vld [vmem:[#allocation6 + $0xb50] sm:$0xff] }
 0x2ce   : > { %2610 = vmatprep.mubr.f32.mxu0 %v1248_v6 }
 0x2cf   : > { %v2883_v57 = vadd.f32 %v4376_v39, %v2343_v52  ;;  %v1642_v60 = vpop.f32.mrb[94].mxu1  ;;  %v1269_v52 = vld [vmem:[#allocation6 + $0xb40] sm:$0xff] }
 0x2d0   : > { %v2347_v61 = vpop.f32.mrb[94].mxu0  ;;  %v1644_v63 = vpop.f32.mrb[95].mxu1  ;;  %1906 = vmatmul.mubr.f32.gmra.mrb[200].mxu1 %v1245_v55  ;;  %v1274_v55 = vld [vmem:[#allocation6 + $0xb68] sm:$0xff] }
 0x2d1   : > { %3337 = vst [vmem:[%s4341_s12 + $0xf0] sm:$0xff] %v2883_v57  ;;  %v2348_v62 = vadd.f32 %v2347_v61, %v1642_v60  ;;  %v2349_v0 = vpop.f32.mrb[95].mxu0  ;;  %2611 = vmatmul.mubr.f32.gmra.mrb[200].mxu0 %v1247_v56  ;;  %1910 = vmatprep.mubr.f32.mxu1 %v1250_v58  ;;  %v1276_v56 = vld [vmem:[#allocation6 + $0xb78] sm:$0xff]  ;;  %v1275_v63 = vld [vmem:[#allocation6 + $0xb70] sm:$0xff] }
 0x2d2   : > { %2615 = vmatprep.mubr.f32.mxu0 %v1252_v59 }
 0x2d3   : > { %v2884_v4 = vadd.f32 %v4376_v39, %v2348_v62  ;;  %v1647_v8 = vpop.f32.mrb[96].mxu1  ;;  %v1258_v39 = vld [vmem:[#allocation6 + $0xae8] sm:$0xff]  ;;  %v1273_v62 = vld [vmem:[#allocation6 + $0xb60] sm:$0xff] }
 0x2d4   : > { %v2352_v9 = vpop.f32.mrb[96].mxu0  ;;  %v1649_v12 = vpop.f32.mrb[97].mxu1  ;;  %1911 = vmatmul.mubr.f32.gmra.mrb[202].mxu1 %v1249_v1  ;;  %v1278_v1 = vld [vmem:[#allocation6 + $0xb88] sm:$0xff] }
 0x2d5   : > { %3338 = vst [vmem:[%s4341_s12 + $0xf8] sm:$0xff] %v2884_v4  ;;  %v2353_v11 = vadd.f32 %v2352_v9, %v1647_v8  ;;  %v2354_v13 = vpop.f32.mrb[97].mxu0  ;;  %2616 = vmatmul.mubr.f32.gmra.mrb[202].mxu0 %v1251_v2  ;;  %1915 = vmatprep.mubr.f32.mxu1 %v1254_v5  ;;  %v1280_v2 = vld [vmem:[#allocation6 + $0xb98] sm:$0xff]  ;;  %v1279_v12 = vld [vmem:[#allocation6 + $0xb90] sm:$0xff] }
 0x2d6   : > { %2620 = vmatprep.mubr.f32.mxu0 %v1256_v7 }
 0x2d7   : > { %v2905_v16 = vadd.f32 %v4413_v10, %v2353_v11  ;;  %v1652_v18 = vpop.f32.mrb[98].mxu1  ;;  %v1277_v11 = vld [vmem:[#allocation6 + $0xb80] sm:$0xff] }
 0x2d8   : > { %v2357_v19 = vpop.f32.mrb[98].mxu0  ;;  %v1654_v21 = vpop.f32.mrb[99].mxu1  ;;  %1916 = vmatmul.mubr.f32.gmra.mrb[204].mxu1 %v1253_v14  ;;  %v1282_v14 = vld [vmem:[#allocation6 + $0xba8] sm:$0xff] }
 0x2d9   : > { %3340 = vst [vmem:[%s4341_s12 + $0x100] sm:$0xff] %v2905_v16  ;;  %v2358_v20 = vadd.f32 %v2357_v19, %v1652_v18  ;;  %v2359_v22 = vpop.f32.mrb[99].mxu0  ;;  %2621 = vmatmul.mubr.f32.gmra.mrb[204].mxu0 %v1255_v15  ;;  %1920 = vmatprep.mubr.f32.mxu1 %v1258_v39  ;;  %v1284_v15 = vld [vmem:[#allocation6 + $0xbb8] sm:$0xff]  ;;  %v1283_v21 = vld [vmem:[#allocation6 + $0xbb0] sm:$0xff] }
 0x2da   : > { %2625 = vmatprep.mubr.f32.mxu0 %v1260_v17 }
 0x2db   : > { %v2906_v25 = vadd.f32 %v4413_v10, %v2358_v20  ;;  %v1657_v28 = vpop.f32.mrb[100].mxu1  ;;  %v1281_v20 = vld [vmem:[#allocation6 + $0xba0] sm:$0xff] }
 0x2dc   : > { %v2362_v29 = vpop.f32.mrb[100].mxu0  ;;  %v1659_v31 = vpop.f32.mrb[101].mxu1  ;;  %1921 = vmatmul.mubr.f32.gmra.mrb[206].mxu1 %v1257_v23  ;;  %v1286_v23 = vld [vmem:[#allocation6 + $0xbc8] sm:$0xff] }
 0x2dd   : > { %3341 = vst [vmem:[%s4341_s12 + $0x108] sm:$0xff] %v2906_v25  ;;  %v2363_v30 = vadd.f32 %v2362_v29, %v1657_v28  ;;  %v2364_v32 = vpop.f32.mrb[101].mxu0  ;;  %2626 = vmatmul.mubr.f32.gmra.mrb[206].mxu0 %v1259_v24  ;;  %1925 = vmatprep.mubr.f32.mxu1 %v1262_v26  ;;  %v1288_v24 = vld [vmem:[#allocation6 + $0xbd8] sm:$0xff]  ;;  %v1287_v31 = vld [vmem:[#allocation6 + $0xbd0] sm:$0xff] }
 0x2de   : > { %2630 = vmatprep.mubr.f32.mxu0 %v1264_v27 }
 0x2df   : > { %v2907_v35 = vadd.f32 %v4413_v10, %v2363_v30  ;;  %v1662_v38 = vpop.f32.mrb[102].mxu1  ;;  %v1285_v30 = vld [vmem:[#allocation6 + $0xbc0] sm:$0xff] }
 0x2e0   : > { %v2367_v40 = vpop.f32.mrb[102].mxu0  ;;  %v1664_v42 = vpop.f32.mrb[103].mxu1  ;;  %1926 = vmatmul.mubr.f32.gmra.mrb[208].mxu1 %v1261_v33  ;;  %v1290_v33 = vld [vmem:[#allocation6 + $0xbe8] sm:$0xff] }
 0x2e1   : > { %3342 = vst [vmem:[%s4341_s12 + $0x110] sm:$0xff] %v2907_v35  ;;  %v2368_v41 = vadd.f32 %v2367_v40, %v1662_v38  ;;  %v2369_v43 = vpop.f32.mrb[103].mxu0  ;;  %2631 = vmatmul.mubr.f32.gmra.mrb[208].mxu0 %v1263_v34  ;;  %1930 = vmatprep.mubr.f32.mxu1 %v1266_v36  ;;  %v1292_v34 = vld [vmem:[#allocation6 + $0xbf8] sm:$0xff]  ;;  %v1291_v42 = vld [vmem:[#allocation6 + $0xbf0] sm:$0xff] }
 0x2e2   : > { %2635 = vmatprep.mubr.f32.mxu0 %v1268_v37 }
 0x2e3   : > { %v2908_v3 = vadd.f32 %v4413_v10, %v2368_v41  ;;  %v1667_v48 = vpop.f32.mrb[104].mxu1  ;;  %v1289_v41 = vld [vmem:[#allocation6 + $0xbe0] sm:$0xff] }
 0x2e4   : > { %v2372_v49 = vpop.f32.mrb[104].mxu0  ;;  %v1669_v50 = vpop.f32.mrb[105].mxu1  ;;  %1931 = vmatmul.mubr.f32.gmra.mrb[210].mxu1 %v1265_v44  ;;  %v1294_v44 = vld [vmem:[#allocation6 + $0xc08] sm:$0xff] }
 0x2e5   : > { %3343 = vst [vmem:[%s4341_s12 + $0x118] sm:$0xff] %v2908_v3  ;;  %v2373_v6 = vadd.f32 %v2372_v49, %v1667_v48  ;;  %v2374_v51 = vpop.f32.mrb[105].mxu0  ;;  %2636 = vmatmul.mubr.f32.gmra.mrb[210].mxu0 %v1267_v45  ;;  %1935 = vmatprep.mubr.f32.mxu1 %v1270_v46  ;;  %v1296_v45 = vld [vmem:[#allocation6 + $0xc18] sm:$0xff]  ;;  %v1295_v50 = vld [vmem:[#allocation6 + $0xc10] sm:$0xff] }
 0x2e6   : > { %2640 = vmatprep.mubr.f32.mxu0 %v1272_v47 }
 0x2e7   : > { %v2909_v54 = vadd.f32 %v4413_v10, %v2373_v6  ;;  %v1672_v57 = vpop.f32.mrb[106].mxu1  ;;  %v1293_v6 = vld [vmem:[#allocation6 + $0xc00] sm:$0xff] }
 0x2e8   : > { %v2377_v58 = vpop.f32.mrb[106].mxu0  ;;  %v1674_v60 = vpop.f32.mrb[107].mxu1  ;;  %1936 = vmatmul.mubr.f32.gmra.mrb[212].mxu1 %v1269_v52  ;;  %v1298_v52 = vld [vmem:[#allocation6 + $0xc28] sm:$0xff] }
 0x2e9   : > { %3344 = vst [vmem:[%s4341_s12 + $0x120] sm:$0xff] %v2909_v54  ;;  %v2378_v59 = vadd.f32 %v2377_v58, %v1672_v57  ;;  %v2379_v61 = vpop.f32.mrb[107].mxu0  ;;  %2641 = vmatmul.mubr.f32.gmra.mrb[212].mxu0 %v1271_v53  ;;  %1940 = vmatprep.mubr.f32.mxu1 %v1274_v55  ;;  %v1300_v53 = vld [vmem:[#allocation6 + $0xc38] sm:$0xff]  ;;  %v1299_v60 = vld [vmem:[#allocation6 + $0xc30] sm:$0xff] }
 0x2ea   : > { %2645 = vmatprep.mubr.f32.mxu0 %v1276_v56 }
 0x2eb   : > { %v2910_v0 = vadd.f32 %v4413_v10, %v2378_v59  ;;  %v1677_v4 = vpop.f32.mrb[108].mxu1  ;;  %v1297_v59 = vld [vmem:[#allocation6 + $0xc20] sm:$0xff] }
 0x2ec   : > { %v2382_v5 = vpop.f32.mrb[108].mxu0  ;;  %v1679_v8 = vpop.f32.mrb[109].mxu1  ;;  %1941 = vmatmul.mubr.f32.gmra.mrb[214].mxu1 %v1273_v62  ;;  %v1302_v62 = vld [vmem:[#allocation6 + $0xc48] sm:$0xff] }
 0x2ed   : > { %3345 = vst [vmem:[%s4341_s12 + $0x128] sm:$0xff] %v2910_v0  ;;  %v2383_v7 = vadd.f32 %v2382_v5, %v1677_v4  ;;  %v2384_v9 = vpop.f32.mrb[109].mxu0  ;;  %2646 = vmatmul.mubr.f32.gmra.mrb[214].mxu0 %v1275_v63  ;;  %1945 = vmatprep.mubr.f32.mxu1 %v1278_v1  ;;  %v1304_v63 = vld [vmem:[#allocation6 + $0xc58] sm:$0xff]  ;;  %v1303_v8 = vld [vmem:[#allocation6 + $0xc50] sm:$0xff] }
 0x2ee   : > { %2650 = vmatprep.mubr.f32.mxu0 %v1280_v2 }
 0x2ef   : > { %v2911_v13 = vadd.f32 %v4413_v10, %v2383_v7  ;;  %v1682_v16 = vpop.f32.mrb[110].mxu1  ;;  %v1301_v7 = vld [vmem:[#allocation6 + $0xc40] sm:$0xff] }
 0x2f0   : > { %v2387_v39 = vpop.f32.mrb[110].mxu0  ;;  %v1684_v18 = vpop.f32.mrb[111].mxu1  ;;  %1946 = vmatmul.mubr.f32.gmra.mrb[216].mxu1 %v1277_v11  ;;  %v1306_v11 = vld [vmem:[#allocation6 + $0xc68] sm:$0xff] }
 0x2f1   : > { %3346 = vst [vmem:[%s4341_s12 + $0x130] sm:$0xff] %v2911_v13  ;;  %v2388_v17 = vadd.f32 %v2387_v39, %v1682_v16  ;;  %v2389_v19 = vpop.f32.mrb[111].mxu0  ;;  %2651 = vmatmul.mubr.f32.gmra.mrb[216].mxu0 %v1279_v12  ;;  %1950 = vmatprep.mubr.f32.mxu1 %v1282_v14  ;;  %v1308_v12 = vld [vmem:[#allocation6 + $0xc78] sm:$0xff]  ;;  %v1307_v18 = vld [vmem:[#allocation6 + $0xc70] sm:$0xff] }
 0x2f2   : > { %2655 = vmatprep.mubr.f32.mxu0 %v1284_v15 }
 0x2f3   : > { %v2912_v22 = vadd.f32 %v4413_v10, %v2388_v17  ;;  %v1687_v25 = vpop.f32.mrb[112].mxu1  ;;  %v1305_v17 = vld [vmem:[#allocation6 + $0xc60] sm:$0xff] }
 0x2f4   : > { %v2392_v26 = vpop.f32.mrb[112].mxu0  ;;  %v1689_v28 = vpop.f32.mrb[113].mxu1  ;;  %1951 = vmatmul.mubr.f32.gmra.mrb[218].mxu1 %v1281_v20  ;;  %v1310_v20 = vld [vmem:[#allocation6 + $0xc88] sm:$0xff] }
 0x2f5   : > { %3347 = vst [vmem:[%s4341_s12 + $0x138] sm:$0xff] %v2912_v22  ;;  %v2393_v27 = vadd.f32 %v2392_v26, %v1687_v25  ;;  %v2394_v29 = vpop.f32.mrb[113].mxu0  ;;  %2656 = vmatmul.mubr.f32.gmra.mrb[218].mxu0 %v1283_v21  ;;  %1955 = vmatprep.mubr.f32.mxu1 %v1286_v23  ;;  %v1312_v21 = vld [vmem:[#allocation6 + $0xc98] sm:$0xff]  ;;  %v1311_v28 = vld [vmem:[#allocation6 + $0xc90] sm:$0xff] }
 0x2f6   : > { %2660 = vmatprep.mubr.f32.mxu0 %v1288_v24 }
 0x2f7   : > { %v2913_v32 = vadd.f32 %v4413_v10, %v2393_v27  ;;  %v1692_v35 = vpop.f32.mrb[114].mxu1  ;;  %v1309_v27 = vld [vmem:[#allocation6 + $0xc80] sm:$0xff] }
 0x2f8   : > { %v2397_v36 = vpop.f32.mrb[114].mxu0  ;;  %v1694_v38 = vpop.f32.mrb[115].mxu1  ;;  %1956 = vmatmul.mubr.f32.gmra.mrb[220].mxu1 %v1285_v30  ;;  %v1314_v30 = vld [vmem:[#allocation6 + $0xca8] sm:$0xff] }
 0x2f9   : > { %3348 = vst [vmem:[%s4341_s12 + $0x140] sm:$0xff] %v2913_v32  ;;  %v2398_v37 = vadd.f32 %v2397_v36, %v1692_v35  ;;  %v2399_v40 = vpop.f32.mrb[115].mxu0  ;;  %2661 = vmatmul.mubr.f32.gmra.mrb[220].mxu0 %v1287_v31  ;;  %1960 = vmatprep.mubr.f32.mxu1 %v1290_v33  ;;  %v1316_v31 = vld [vmem:[#allocation6 + $0xcb8] sm:$0xff]  ;;  %v1315_v38 = vld [vmem:[#allocation6 + $0xcb0] sm:$0xff] }
 0x2fa   : > { %2665 = vmatprep.mubr.f32.mxu0 %v1292_v34 }
 0x2fb   : > { %v2914_v43 = vadd.f32 %v4413_v10, %v2398_v37  ;;  %v1697_v3 = vpop.f32.mrb[116].mxu1  ;;  %v1313_v37 = vld [vmem:[#allocation6 + $0xca0] sm:$0xff] }
 0x2fc   : > { %v2402_v46 = vpop.f32.mrb[116].mxu0  ;;  %v1699_v48 = vpop.f32.mrb[117].mxu1  ;;  %1961 = vmatmul.mubr.f32.gmra.mrb[222].mxu1 %v1289_v41  ;;  %v1318_v41 = vld [vmem:[#allocation6 + $0xcc8] sm:$0xff] }
 0x2fd   : > { %3349 = vst [vmem:[%s4341_s12 + $0x148] sm:$0xff] %v2914_v43  ;;  %v2403_v47 = vadd.f32 %v2402_v46, %v1697_v3  ;;  %v2404_v49 = vpop.f32.mrb[117].mxu0  ;;  %2666 = vmatmul.mubr.f32.gmra.mrb[222].mxu0 %v1291_v42  ;;  %1965 = vmatprep.mubr.f32.mxu1 %v1294_v44  ;;  %v1320_v42 = vld [vmem:[#allocation6 + $0xcd8] sm:$0xff]  ;;  %v1317_v48 = vld [vmem:[#allocation6 + $0xcc0] sm:$0xff] }
 0x2fe   : > { %2670 = vmatprep.mubr.f32.mxu0 %v1296_v45  ;;  %v4450_v45 = vstv %s4443_s22  ;;  %v1319_v49 = vld [vmem:[#allocation6 + $0xcd0] sm:$0xff] }
 0x2ff   : > { %v2915_v51 = vadd.f32 %v4413_v10, %v2403_v47  ;;  %v1702_v54 = vpop.f32.mrb[118].mxu1 }
 0x300   : > { %v2407_v55 = vpop.f32.mrb[118].mxu0  ;;  %v1704_v57 = vpop.f32.mrb[119].mxu1  ;;  %1966 = vmatmul.mubr.f32.gmra.mrb[224].mxu1 %v1293_v6 }
 0x301   : > { %3350 = vst [vmem:[%s4341_s12 + $0x150] sm:$0xff] %v2915_v51  ;;  %v2408_v56 = vadd.f32 %v2407_v55, %v1702_v54  ;;  %v2409_v58 = vpop.f32.mrb[119].mxu0  ;;  %2671 = vmatmul.mubr.f32.gmra.mrb[224].mxu0 %v1295_v50  ;;  %1970 = vmatprep.mubr.f32.mxu1 %v1298_v52  ;;  %v1324_v50 = vld [vmem:[#allocation6 + $0xcf8] sm:$0xff]  ;;  %v1323_v57 = vld [vmem:[#allocation6 + $0xcf0] sm:$0xff] }
 0x302   : > { %2675 = vmatprep.mubr.f32.mxu0 %v1300_v53 }
 0x303   : > { %v2916_v61 = vadd.f32 %v4413_v10, %v2408_v56  ;;  %v1707_v0 = vpop.f32.mrb[120].mxu1  ;;  %v1321_v56 = vld [vmem:[#allocation6 + $0xce0] sm:$0xff] }
 0x304   : > { %v2412_v1 = vpop.f32.mrb[120].mxu0  ;;  %v1709_v4 = vpop.f32.mrb[121].mxu1  ;;  %1971 = vmatmul.mubr.f32.gmra.mrb[226].mxu1 %v1297_v59  ;;  %v1326_v59 = vld [vmem:[#allocation6 + $0xd08] sm:$0xff] }
 0x305   : > { %3351 = vst [vmem:[%s4341_s12 + $0x158] sm:$0xff] %v2916_v61  ;;  %v2413_v2 = vadd.f32 %v2412_v1, %v1707_v0  ;;  %v2414_v5 = vpop.f32.mrb[121].mxu0  ;;  %2676 = vmatmul.mubr.f32.gmra.mrb[226].mxu0 %v1299_v60  ;;  %1975 = vmatprep.mubr.f32.mxu1 %v1302_v62  ;;  %v1328_v60 = vld [vmem:[#allocation6 + $0xd18] sm:$0xff]  ;;  %v1327_v4 = vld [vmem:[#allocation6 + $0xd10] sm:$0xff] }
 0x306   : > { %2680 = vmatprep.mubr.f32.mxu0 %v1304_v63 }
 0x307   : > { %v2917_v9 = vadd.f32 %v4413_v10, %v2413_v2  ;;  %v1712_v13 = vpop.f32.mrb[122].mxu1  ;;  %v1325_v2 = vld [vmem:[#allocation6 + $0xd00] sm:$0xff] }
 0x308   : > { %v2417_v14 = vpop.f32.mrb[122].mxu0  ;;  %v1714_v16 = vpop.f32.mrb[123].mxu1  ;;  %1976 = vmatmul.mubr.f32.gmra.mrb[228].mxu1 %v1301_v7  ;;  %v1330_v7 = vld [vmem:[#allocation6 + $0xd28] sm:$0xff] }
 0x309   : > { %3352 = vst [vmem:[%s4341_s12 + $0x160] sm:$0xff] %v2917_v9  ;;  %v2418_v15 = vadd.f32 %v2417_v14, %v1712_v13  ;;  %v2419_v39 = vpop.f32.mrb[123].mxu0  ;;  %2681 = vmatmul.mubr.f32.gmra.mrb[228].mxu0 %v1303_v8  ;;  %1980 = vmatprep.mubr.f32.mxu1 %v1306_v11  ;;  %v1332_v8 = vld [vmem:[#allocation6 + $0xd38] sm:$0xff]  ;;  %v1331_v16 = vld [vmem:[#allocation6 + $0xd30] sm:$0xff] }
 0x30a   : > { %2685 = vmatprep.mubr.f32.mxu0 %v1308_v12 }
 0x30b   : > { %v2918_v19 = vadd.f32 %v4413_v10, %v2418_v15  ;;  %v1717_v22 = vpop.f32.mrb[124].mxu1  ;;  %v1329_v15 = vld [vmem:[#allocation6 + $0xd20] sm:$0xff] }
 0x30c   : > { %v2422_v23 = vpop.f32.mrb[124].mxu0  ;;  %v1719_v25 = vpop.f32.mrb[125].mxu1  ;;  %1981 = vmatmul.mubr.f32.gmra.mrb[230].mxu1 %v1305_v17  ;;  %v1334_v17 = vld [vmem:[#allocation6 + $0xd48] sm:$0xff] }
 0x30d   : > { %3353 = vst [vmem:[%s4341_s12 + $0x168] sm:$0xff] %v2918_v19  ;;  %v2423_v24 = vadd.f32 %v2422_v23, %v1717_v22  ;;  %v2424_v26 = vpop.f32.mrb[125].mxu0  ;;  %2686 = vmatmul.mubr.f32.gmra.mrb[230].mxu0 %v1307_v18  ;;  %1985 = vmatprep.mubr.f32.mxu1 %v1310_v20  ;;  %v1336_v18 = vld [vmem:[#allocation6 + $0xd58] sm:$0xff]  ;;  %v1335_v25 = vld [vmem:[#allocation6 + $0xd50] sm:$0xff] }
 0x30e   : > { %2690 = vmatprep.mubr.f32.mxu0 %v1312_v21 }
 0x30f   : > { %v2919_v29 = vadd.f32 %v4413_v10, %v2423_v24  ;;  %v1722_v32 = vpop.f32.mrb[126].mxu1  ;;  %v1333_v24 = vld [vmem:[#allocation6 + $0xd40] sm:$0xff] }
 0x310   : > { %v2427_v33 = vpop.f32.mrb[126].mxu0  ;;  %v1724_v35 = vpop.f32.mrb[127].mxu1  ;;  %1986 = vmatmul.mubr.f32.gmra.mrb[232].mxu1 %v1309_v27  ;;  %v1338_v27 = vld [vmem:[#allocation6 + $0xd68] sm:$0xff] }
 0x311   : > { %3354 = vst [vmem:[%s4341_s12 + $0x170] sm:$0xff] %v2919_v29  ;;  %v2428_v34 = vadd.f32 %v2427_v33, %v1722_v32  ;;  %v2429_v36 = vpop.f32.mrb[127].mxu0  ;;  %2691 = vmatmul.mubr.f32.gmra.mrb[232].mxu0 %v1311_v28  ;;  %1990 = vmatprep.mubr.f32.mxu1 %v1314_v30  ;;  %v1340_v28 = vld [vmem:[#allocation6 + $0xd78] sm:$0xff]  ;;  %v1339_v35 = vld [vmem:[#allocation6 + $0xd70] sm:$0xff] }
 0x312   : > { %2695 = vmatprep.mubr.f32.mxu0 %v1316_v31 }
 0x313   : > { %v2920_v40 = vadd.f32 %v4413_v10, %v2428_v34  ;;  %v1727_v43 = vpop.f32.mrb[128].mxu1  ;;  %v1322_v10 = vld [vmem:[#allocation6 + $0xce8] sm:$0xff]  ;;  %v1337_v34 = vld [vmem:[#allocation6 + $0xd60] sm:$0xff] }
 0x314   : > { %v2432_v44 = vpop.f32.mrb[128].mxu0  ;;  %v1729_v46 = vpop.f32.mrb[129].mxu1  ;;  %1991 = vmatmul.mubr.f32.gmra.mrb[234].mxu1 %v1313_v37  ;;  %v1342_v37 = vld [vmem:[#allocation6 + $0xd88] sm:$0xff] }
 0x315   : > { %3355 = vst [vmem:[%s4341_s12 + $0x178] sm:$0xff] %v2920_v40  ;;  %v2433_v3 = vadd.f32 %v2432_v44, %v1727_v43  ;;  %v2434_v47 = vpop.f32.mrb[129].mxu0  ;;  %2696 = vmatmul.mubr.f32.gmra.mrb[234].mxu0 %v1315_v38  ;;  %1995 = vmatprep.mubr.f32.mxu1 %v1318_v41  ;;  %v1344_v38 = vld [vmem:[#allocation6 + $0xd98] sm:$0xff]  ;;  %v1343_v46 = vld [vmem:[#allocation6 + $0xd90] sm:$0xff] }
 0x316   : > { %2700 = vmatprep.mubr.f32.mxu0 %v1320_v42 }
 0x317   : > { %v2941_v6 = vadd.f32 %v4450_v45, %v2433_v3  ;;  %v1732_v51 = vpop.f32.mrb[130].mxu1  ;;  %v1341_v3 = vld [vmem:[#allocation6 + $0xd80] sm:$0xff] }
 0x318   : > { %v2437_v52 = vpop.f32.mrb[130].mxu0  ;;  %v1734_v54 = vpop.f32.mrb[131].mxu1  ;;  %1996 = vmatmul.mubr.f32.gmra.mrb[236].mxu1 %v1317_v48  ;;  %v1346_v48 = vld [vmem:[#allocation6 + $0xda8] sm:$0xff] }
 0x319   : > { %3357 = vst [vmem:[%s4341_s12 + $0x180] sm:$0xff] %v2941_v6  ;;  %v2438_v53 = vadd.f32 %v2437_v52, %v1732_v51  ;;  %v2439_v55 = vpop.f32.mrb[131].mxu0  ;;  %2701 = vmatmul.mubr.f32.gmra.mrb[236].mxu0 %v1319_v49  ;;  %2000 = vmatprep.mubr.f32.mxu1 %v1322_v10  ;;  %v1348_v49 = vld [vmem:[#allocation6 + $0xdb8] sm:$0xff]  ;;  %v1347_v54 = vld [vmem:[#allocation6 + $0xdb0] sm:$0xff] }
 0x31a   : > { %2705 = vmatprep.mubr.f32.mxu0 %v1324_v50 }
 0x31b   : > { %v2942_v58 = vadd.f32 %v4450_v45, %v2438_v53  ;;  %v1737_v61 = vpop.f32.mrb[132].mxu1  ;;  %v1345_v53 = vld [vmem:[#allocation6 + $0xda0] sm:$0xff] }
 0x31c   : > { %v2442_v62 = vpop.f32.mrb[132].mxu0  ;;  %v1739_v0 = vpop.f32.mrb[133].mxu1  ;;  %2001 = vmatmul.mubr.f32.gmra.mrb[238].mxu1 %v1321_v56  ;;  %v1350_v56 = vld [vmem:[#allocation6 + $0xdc8] sm:$0xff] }
 0x31d   : > { %3358 = vst [vmem:[%s4341_s12 + $0x188] sm:$0xff] %v2942_v58  ;;  %v2443_v63 = vadd.f32 %v2442_v62, %v1737_v61  ;;  %v2444_v1 = vpop.f32.mrb[133].mxu0  ;;  %2706 = vmatmul.mubr.f32.gmra.mrb[238].mxu0 %v1323_v57  ;;  %2005 = vmatprep.mubr.f32.mxu1 %v1326_v59  ;;  %v1352_v57 = vld [vmem:[#allocation6 + $0xdd8] sm:$0xff]  ;;  %v1351_v0 = vld [vmem:[#allocation6 + $0xdd0] sm:$0xff] }
 0x31e   : > { %2710 = vmatprep.mubr.f32.mxu0 %v1328_v60 }
 0x31f   : > { %v2943_v5 = vadd.f32 %v4450_v45, %v2443_v63  ;;  %v1742_v9 = vpop.f32.mrb[134].mxu1  ;;  %v1349_v63 = vld [vmem:[#allocation6 + $0xdc0] sm:$0xff] }
 0x320   : > { %v2447_v11 = vpop.f32.mrb[134].mxu0  ;;  %v1744_v13 = vpop.f32.mrb[135].mxu1  ;;  %2006 = vmatmul.mubr.f32.gmra.mrb[240].mxu1 %v1325_v2  ;;  %v1354_v2 = vld [vmem:[#allocation6 + $0xde8] sm:$0xff] }
 0x321   : > { %3359 = vst [vmem:[%s4341_s12 + $0x190] sm:$0xff] %v2943_v5  ;;  %v2448_v12 = vadd.f32 %v2447_v11, %v1742_v9  ;;  %v2449_v14 = vpop.f32.mrb[135].mxu0  ;;  %2711 = vmatmul.mubr.f32.gmra.mrb[240].mxu0 %v1327_v4  ;;  %2010 = vmatprep.mubr.f32.mxu1 %v1330_v7  ;;  %v1356_v4 = vld [vmem:[#allocation6 + $0xdf8] sm:$0xff]  ;;  %v1355_v13 = vld [vmem:[#allocation6 + $0xdf0] sm:$0xff] }
 0x322   : > { %2715 = vmatprep.mubr.f32.mxu0 %v1332_v8 }
 0x323   : > { %v2944_v39 = vadd.f32 %v4450_v45, %v2448_v12  ;;  %v1747_v19 = vpop.f32.mrb[136].mxu1  ;;  %v1353_v12 = vld [vmem:[#allocation6 + $0xde0] sm:$0xff] }
 0x324   : > { %v2452_v20 = vpop.f32.mrb[136].mxu0  ;;  %v1749_v22 = vpop.f32.mrb[137].mxu1  ;;  %2011 = vmatmul.mubr.f32.gmra.mrb[242].mxu1 %v1329_v15  ;;  %v1358_v15 = vld [vmem:[#allocation6 + $0xe08] sm:$0xff] }
 0x325   : > { %3360 = vst [vmem:[%s4341_s12 + $0x198] sm:$0xff] %v2944_v39  ;;  %v2453_v21 = vadd.f32 %v2452_v20, %v1747_v19  ;;  %v2454_v23 = vpop.f32.mrb[137].mxu0  ;;  %2716 = vmatmul.mubr.f32.gmra.mrb[242].mxu0 %v1331_v16  ;;  %2015 = vmatprep.mubr.f32.mxu1 %v1334_v17  ;;  %v1360_v16 = vld [vmem:[#allocation6 + $0xe18] sm:$0xff]  ;;  %v1359_v22 = vld [vmem:[#allocation6 + $0xe10] sm:$0xff] }
 0x326   : > { %2720 = vmatprep.mubr.f32.mxu0 %v1336_v18 }
 0x327   : > { %v2945_v26 = vadd.f32 %v4450_v45, %v2453_v21  ;;  %v1752_v29 = vpop.f32.mrb[138].mxu1  ;;  %v1357_v21 = vld [vmem:[#allocation6 + $0xe00] sm:$0xff] }
 0x328   : > { %v2457_v30 = vpop.f32.mrb[138].mxu0  ;;  %v1754_v32 = vpop.f32.mrb[139].mxu1  ;;  %2016 = vmatmul.mubr.f32.gmra.mrb[244].mxu1 %v1333_v24  ;;  %v1362_v24 = vld [vmem:[#allocation6 + $0xe28] sm:$0xff] }
 0x329   : > { %3361 = vst [vmem:[%s4341_s12 + $0x1a0] sm:$0xff] %v2945_v26  ;;  %v2458_v31 = vadd.f32 %v2457_v30, %v1752_v29  ;;  %v2459_v33 = vpop.f32.mrb[139].mxu0  ;;  %2721 = vmatmul.mubr.f32.gmra.mrb[244].mxu0 %v1335_v25  ;;  %2020 = vmatprep.mubr.f32.mxu1 %v1338_v27  ;;  %v1364_v25 = vld [vmem:[#allocation6 + $0xe38] sm:$0xff]  ;;  %v1363_v32 = vld [vmem:[#allocation6 + $0xe30] sm:$0xff] }
 0x32a   : > { %2725 = vmatprep.mubr.f32.mxu0 %v1340_v28 }
 0x32b   : > { %v2946_v36 = vadd.f32 %v4450_v45, %v2458_v31  ;;  %v1757_v40 = vpop.f32.mrb[140].mxu1  ;;  %v1361_v31 = vld [vmem:[#allocation6 + $0xe20] sm:$0xff] }
 0x32c   : > { %v2462_v41 = vpop.f32.mrb[140].mxu0  ;;  %v1759_v43 = vpop.f32.mrb[141].mxu1  ;;  %2021 = vmatmul.mubr.f32.gmra.mrb[246].mxu1 %v1337_v34  ;;  %v1366_v34 = vld [vmem:[#allocation6 + $0xe48] sm:$0xff] }
 0x32d   : > { %3362 = vst [vmem:[%s4341_s12 + $0x1a8] sm:$0xff] %v2946_v36  ;;  %v2463_v42 = vadd.f32 %v2462_v41, %v1757_v40  ;;  %v2464_v44 = vpop.f32.mrb[141].mxu0  ;;  %2726 = vmatmul.mubr.f32.gmra.mrb[246].mxu0 %v1339_v35  ;;  %2025 = vmatprep.mubr.f32.mxu1 %v1342_v37  ;;  %v1368_v35 = vld [vmem:[#allocation6 + $0xe58] sm:$0xff]  ;;  %v1367_v43 = vld [vmem:[#allocation6 + $0xe50] sm:$0xff] }
 0x32e   : > { %2730 = vmatprep.mubr.f32.mxu0 %v1344_v38 }
 0x32f   : > { %v2947_v47 = vadd.f32 %v4450_v45, %v2463_v42  ;;  %v1762_v6 = vpop.f32.mrb[142].mxu1  ;;  %v1365_v42 = vld [vmem:[#allocation6 + $0xe40] sm:$0xff] }
 0x330   : > { %v2467_v10 = vpop.f32.mrb[142].mxu0  ;;  %v1764_v51 = vpop.f32.mrb[143].mxu1  ;;  %2026 = vmatmul.mubr.f32.gmra.mrb[248].mxu1 %v1341_v3  ;;  %v1370_v3 = vld [vmem:[#allocation6 + $0xe68] sm:$0xff] }
 0x331   : > { %3363 = vst [vmem:[%s4341_s12 + $0x1b0] sm:$0xff] %v2947_v47  ;;  %v2468_v50 = vadd.f32 %v2467_v10, %v1762_v6  ;;  %v2469_v52 = vpop.f32.mrb[143].mxu0  ;;  %2731 = vmatmul.mubr.f32.gmra.mrb[248].mxu0 %v1343_v46  ;;  %2030 = vmatprep.mubr.f32.mxu1 %v1346_v48  ;;  %v1372_v46 = vld [vmem:[#allocation6 + $0xe78] sm:$0xff]  ;;  %v1371_v51 = vld [vmem:[#allocation6 + $0xe70] sm:$0xff] }
 0x332   : > { %2735 = vmatprep.mubr.f32.mxu0 %v1348_v49 }
 0x333   : > { %v2948_v55 = vadd.f32 %v4450_v45, %v2468_v50  ;;  %v1767_v58 = vpop.f32.mrb[144].mxu1  ;;  %v1369_v50 = vld [vmem:[#allocation6 + $0xe60] sm:$0xff] }
 0x334   : > { %v2472_v59 = vpop.f32.mrb[144].mxu0  ;;  %v1769_v61 = vpop.f32.mrb[145].mxu1  ;;  %2031 = vmatmul.mubr.f32.gmra.mrb[250].mxu1 %v1345_v53  ;;  %v1374_v53 = vld [vmem:[#allocation6 + $0xe88] sm:$0xff] }
 0x335   : > { %3364 = vst [vmem:[%s4341_s12 + $0x1b8] sm:$0xff] %v2948_v55  ;;  %v2473_v60 = vadd.f32 %v2472_v59, %v1767_v58  ;;  %v2474_v62 = vpop.f32.mrb[145].mxu0  ;;  %2736 = vmatmul.mubr.f32.gmra.mrb[250].mxu0 %v1347_v54  ;;  %2035 = vmatprep.mubr.f32.mxu1 %v1350_v56  ;;  %v1376_v54 = vld [vmem:[#allocation6 + $0xe98] sm:$0xff]  ;;  %v1375_v61 = vld [vmem:[#allocation6 + $0xe90] sm:$0xff] }
 0x336   : > { %2740 = vmatprep.mubr.f32.mxu0 %v1352_v57 }
 0x337   : > { %v2949_v1 = vadd.f32 %v4450_v45, %v2473_v60  ;;  %v1772_v5 = vpop.f32.mrb[146].mxu1  ;;  %v1373_v60 = vld [vmem:[#allocation6 + $0xe80] sm:$0xff] }
 0x338   : > { %v2477_v7 = vpop.f32.mrb[146].mxu0  ;;  %v1774_v9 = vpop.f32.mrb[147].mxu1  ;;  %2036 = vmatmul.mubr.f32.gmra.mrb[252].mxu1 %v1349_v63  ;;  %v1378_v63 = vld [vmem:[#allocation6 + $0xea8] sm:$0xff] }
 0x339   : > { %3365 = vst [vmem:[%s4341_s12 + $0x1c0] sm:$0xff] %v2949_v1  ;;  %v2478_v8 = vadd.f32 %v2477_v7, %v1772_v5  ;;  %v2479_v11 = vpop.f32.mrb[147].mxu0  ;;  %2741 = vmatmul.mubr.f32.gmra.mrb[252].mxu0 %v1351_v0  ;;  %2040 = vmatprep.mubr.f32.mxu1 %v1354_v2  ;;  %v1380_v0 = vld [vmem:[#allocation6 + $0xeb8] sm:$0xff]  ;;  %v1379_v9 = vld [vmem:[#allocation6 + $0xeb0] sm:$0xff] }
 0x33a   : > { %2745 = vmatprep.mubr.f32.mxu0 %v1356_v4 }
 0x33b   : > { %v2950_v14 = vadd.f32 %v4450_v45, %v2478_v8  ;;  %v1777_v39 = vpop.f32.mrb[148].mxu1  ;;  %v1377_v8 = vld [vmem:[#allocation6 + $0xea0] sm:$0xff] }
 0x33c   : > { %v2482_v17 = vpop.f32.mrb[148].mxu0  ;;  %v1779_v19 = vpop.f32.mrb[149].mxu1  ;;  %2041 = vmatmul.mubr.f32.gmra.mrb[254].mxu1 %v1353_v12  ;;  %v1382_v12 = vld [vmem:[#allocation6 + $0xec8] sm:$0xff] }
 0x33d   : > { %3366 = vst [vmem:[%s4341_s12 + $0x1c8] sm:$0xff] %v2950_v14  ;;  %v2483_v18 = vadd.f32 %v2482_v17, %v1777_v39  ;;  %v2484_v20 = vpop.f32.mrb[149].mxu0  ;;  %2746 = vmatmul.mubr.f32.gmra.mrb[254].mxu0 %v1355_v13  ;;  %2045 = vmatprep.mubr.f32.mxu1 %v1358_v15  ;;  %v1384_v13 = vld [vmem:[#allocation6 + $0xed8] sm:$0xff]  ;;  %v1381_v19 = vld [vmem:[#allocation6 + $0xec0] sm:$0xff] }
 0x33e   : > { %2750 = vmatprep.mubr.f32.mxu0 %v1360_v16  ;;  %v4487_v16 = vstv %s4480_s24  ;;  %v1383_v20 = vld [vmem:[#allocation6 + $0xed0] sm:$0xff] }
 0x33f   : > { %v2951_v23 = vadd.f32 %v4450_v45, %v2483_v18  ;;  %v1782_v26 = vpop.f32.mrb[150].mxu1 }
 0x340   : > { %v2487_v27 = vpop.f32.mrb[150].mxu0  ;;  %v1784_v29 = vpop.f32.mrb[151].mxu1  ;;  %2046 = vmatmul.mubr.f32.gmra.mrb[0].mxu1 %v1357_v21 }
 0x341   : > { %3367 = vst [vmem:[%s4341_s12 + $0x1d0] sm:$0xff] %v2951_v23  ;;  %v2488_v28 = vadd.f32 %v2487_v27, %v1782_v26  ;;  %v2489_v30 = vpop.f32.mrb[151].mxu0  ;;  %2751 = vmatmul.mubr.f32.gmra.mrb[0].mxu0 %v1359_v22  ;;  %2050 = vmatprep.mubr.f32.mxu1 %v1362_v24  ;;  %v1388_v22 = vld [vmem:[#allocation6 + $0xef8] sm:$0xff]  ;;  %v1387_v29 = vld [vmem:[#allocation6 + $0xef0] sm:$0xff] }
 0x342   : > { %2755 = vmatprep.mubr.f32.mxu0 %v1364_v25 }
 0x343   : > { %v2952_v33 = vadd.f32 %v4450_v45, %v2488_v28  ;;  %v1787_v36 = vpop.f32.mrb[152].mxu1  ;;  %v1385_v28 = vld [vmem:[#allocation6 + $0xee0] sm:$0xff] }
 0x344   : > { %v2492_v37 = vpop.f32.mrb[152].mxu0  ;;  %v1789_v40 = vpop.f32.mrb[153].mxu1  ;;  %2051 = vmatmul.mubr.f32.gmra.mrb[2].mxu1 %v1361_v31  ;;  %v1390_v31 = vld [vmem:[#allocation6 + $0xf08] sm:$0xff] }
 0x345   : > { %3368 = vst [vmem:[%s4341_s12 + $0x1d8] sm:$0xff] %v2952_v33  ;;  %v2493_v38 = vadd.f32 %v2492_v37, %v1787_v36  ;;  %v2494_v41 = vpop.f32.mrb[153].mxu0  ;;  %2756 = vmatmul.mubr.f32.gmra.mrb[2].mxu0 %v1363_v32  ;;  %2055 = vmatprep.mubr.f32.mxu1 %v1366_v34  ;;  %v1392_v32 = vld [vmem:[#allocation6 + $0xf18] sm:$0xff]  ;;  %v1391_v40 = vld [vmem:[#allocation6 + $0xf10] sm:$0xff] }
 0x346   : > { %2760 = vmatprep.mubr.f32.mxu0 %v1368_v35 }
 0x347   : > { %v2953_v44 = vadd.f32 %v4450_v45, %v2493_v38  ;;  %v1792_v47 = vpop.f32.mrb[154].mxu1  ;;  %v1389_v38 = vld [vmem:[#allocation6 + $0xf00] sm:$0xff] }
 0x348   : > { %v2497_v48 = vpop.f32.mrb[154].mxu0  ;;  %v1794_v6 = vpop.f32.mrb[155].mxu1  ;;  %2056 = vmatmul.mubr.f32.gmra.mrb[4].mxu1 %v1365_v42  ;;  %v1394_v42 = vld [vmem:[#allocation6 + $0xf28] sm:$0xff] }
 0x349   : > { %3369 = vst [vmem:[%s4341_s12 + $0x1e0] sm:$0xff] %v2953_v44  ;;  %v2498_v49 = vadd.f32 %v2497_v48, %v1792_v47  ;;  %v2499_v10 = vpop.f32.mrb[155].mxu0  ;;  %2761 = vmatmul.mubr.f32.gmra.mrb[4].mxu0 %v1367_v43  ;;  %2060 = vmatprep.mubr.f32.mxu1 %v1370_v3  ;;  %v1396_v43 = vld [vmem:[#allocation6 + $0xf38] sm:$0xff]  ;;  %v1395_v6 = vld [vmem:[#allocation6 + $0xf30] sm:$0xff] }
 0x34a   : > { %2765 = vmatprep.mubr.f32.mxu0 %v1372_v46 }
 0x34b   : > { %v2954_v52 = vadd.f32 %v4450_v45, %v2498_v49  ;;  %v1797_v55 = vpop.f32.mrb[156].mxu1  ;;  %v1393_v49 = vld [vmem:[#allocation6 + $0xf20] sm:$0xff] }
 0x34c   : > { %v2502_v56 = vpop.f32.mrb[156].mxu0  ;;  %v1799_v58 = vpop.f32.mrb[157].mxu1  ;;  %2061 = vmatmul.mubr.f32.gmra.mrb[6].mxu1 %v1369_v50  ;;  %v1398_v50 = vld [vmem:[#allocation6 + $0xf48] sm:$0xff] }
 0x34d   : > { %3370 = vst [vmem:[%s4341_s12 + $0x1e8] sm:$0xff] %v2954_v52  ;;  %v2503_v57 = vadd.f32 %v2502_v56, %v1797_v55  ;;  %v2504_v59 = vpop.f32.mrb[157].mxu0  ;;  %2766 = vmatmul.mubr.f32.gmra.mrb[6].mxu0 %v1371_v51  ;;  %2065 = vmatprep.mubr.f32.mxu1 %v1374_v53  ;;  %v1400_v51 = vld [vmem:[#allocation6 + $0xf58] sm:$0xff]  ;;  %v1399_v58 = vld [vmem:[#allocation6 + $0xf50] sm:$0xff] }
 0x34e   : > { %2770 = vmatprep.mubr.f32.mxu0 %v1376_v54 }
 0x34f   : > { %v2955_v62 = vadd.f32 %v4450_v45, %v2503_v57  ;;  %v1802_v1 = vpop.f32.mrb[158].mxu1  ;;  %v1397_v57 = vld [vmem:[#allocation6 + $0xf40] sm:$0xff] }
 0x350   : > { %v2507_v2 = vpop.f32.mrb[158].mxu0  ;;  %v1804_v5 = vpop.f32.mrb[159].mxu1  ;;  %2066 = vmatmul.mubr.f32.gmra.mrb[8].mxu1 %v1373_v60  ;;  %v1402_v60 = vld [vmem:[#allocation6 + $0xf68] sm:$0xff] }
 0x351   : > { %3371 = vst [vmem:[%s4341_s12 + $0x1f0] sm:$0xff] %v2955_v62  ;;  %v2508_v4 = vadd.f32 %v2507_v2, %v1802_v1  ;;  %v2509_v7 = vpop.f32.mrb[159].mxu0  ;;  %2771 = vmatmul.mubr.f32.gmra.mrb[8].mxu0 %v1375_v61  ;;  %2070 = vmatprep.mubr.f32.mxu1 %v1378_v63  ;;  %v1404_v61 = vld [vmem:[#allocation6 + $0xf78] sm:$0xff]  ;;  %v1403_v5 = vld [vmem:[#allocation6 + $0xf70] sm:$0xff] }
 0x352   : > { %2775 = vmatprep.mubr.f32.mxu0 %v1380_v0 }
 0x353   : > { %v2956_v11 = vadd.f32 %v4450_v45, %v2508_v4  ;;  %v1807_v14 = vpop.f32.mrb[160].mxu1  ;;  %v1386_v45 = vld [vmem:[#allocation6 + $0xee8] sm:$0xff]  ;;  %v1401_v4 = vld [vmem:[#allocation6 + $0xf60] sm:$0xff] }
 0x354   : > { %v2512_v15 = vpop.f32.mrb[160].mxu0  ;;  %v1809_v17 = vpop.f32.mrb[161].mxu1  ;;  %2071 = vmatmul.mubr.f32.gmra.mrb[10].mxu1 %v1377_v8  ;;  %v1406_v8 = vld [vmem:[#allocation6 + $0xf88] sm:$0xff] }
 0x355   : > { %3372 = vst [vmem:[%s4341_s12 + $0x1f8] sm:$0xff] %v2956_v11  ;;  %v2513_v39 = vadd.f32 %v2512_v15, %v1807_v14  ;;  %v2514_v18 = vpop.f32.mrb[161].mxu0  ;;  %2776 = vmatmul.mubr.f32.gmra.mrb[10].mxu0 %v1379_v9  ;;  %2075 = vmatprep.mubr.f32.mxu1 %v1382_v12  ;;  %v1408_v9 = vld [vmem:[#allocation6 + $0xf98] sm:$0xff]  ;;  %v1407_v17 = vld [vmem:[#allocation6 + $0xf90] sm:$0xff] }
 0x356   : > { %2780 = vmatprep.mubr.f32.mxu0 %v1384_v13 }
 0x357   : > { %v2977_v21 = vadd.f32 %v4487_v16, %v2513_v39  ;;  %v1812_v23 = vpop.f32.mrb[162].mxu1  ;;  %v1405_v39 = vld [vmem:[#allocation6 + $0xf80] sm:$0xff] }
 0x358   : > { %v2517_v24 = vpop.f32.mrb[162].mxu0  ;;  %v1814_v26 = vpop.f32.mrb[163].mxu1  ;;  %2076 = vmatmul.mubr.f32.gmra.mrb[12].mxu1 %v1381_v19  ;;  %v1410_v19 = vld [vmem:[#allocation6 + $0xfa8] sm:$0xff] }
 0x359   : > { %3374 = vst [vmem:[%s4341_s12 + $0x200] sm:$0xff] %v2977_v21  ;;  %v2518_v25 = vadd.f32 %v2517_v24, %v1812_v23  ;;  %v2519_v27 = vpop.f32.mrb[163].mxu0  ;;  %2781 = vmatmul.mubr.f32.gmra.mrb[12].mxu0 %v1383_v20  ;;  %2080 = vmatprep.mubr.f32.mxu1 %v1386_v45  ;;  %v1412_v20 = vld [vmem:[#allocation6 + $0xfb8] sm:$0xff]  ;;  %v1411_v26 = vld [vmem:[#allocation6 + $0xfb0] sm:$0xff] }
 0x35a   : > { %2785 = vmatprep.mubr.f32.mxu0 %v1388_v22 }
 0x35b   : > { %v2978_v30 = vadd.f32 %v4487_v16, %v2518_v25  ;;  %v1817_v33 = vpop.f32.mrb[164].mxu1  ;;  %v1409_v25 = vld [vmem:[#allocation6 + $0xfa0] sm:$0xff] }
 0x35c   : > { %v2522_v34 = vpop.f32.mrb[164].mxu0  ;;  %v1819_v36 = vpop.f32.mrb[165].mxu1  ;;  %2081 = vmatmul.mubr.f32.gmra.mrb[14].mxu1 %v1385_v28  ;;  %v1414_v28 = vld [vmem:[#allocation6 + $0xfc8] sm:$0xff] }
 0x35d   : > { %3375 = vst [vmem:[%s4341_s12 + $0x208] sm:$0xff] %v2978_v30  ;;  %v2523_v35 = vadd.f32 %v2522_v34, %v1817_v33  ;;  %v2524_v37 = vpop.f32.mrb[165].mxu0  ;;  %2786 = vmatmul.mubr.f32.gmra.mrb[14].mxu0 %v1387_v29  ;;  %2085 = vmatprep.mubr.f32.mxu1 %v1390_v31  ;;  %v1416_v29 = vld [vmem:[#allocation6 + $0xfd8] sm:$0xff]  ;;  %v1415_v36 = vld [vmem:[#allocation6 + $0xfd0] sm:$0xff] }
 0x35e   : > { %2790 = vmatprep.mubr.f32.mxu0 %v1392_v32 }
 0x35f   : > { %v2979_v41 = vadd.f32 %v4487_v16, %v2523_v35  ;;  %v1822_v44 = vpop.f32.mrb[166].mxu1  ;;  %v1413_v35 = vld [vmem:[#allocation6 + $0xfc0] sm:$0xff] }
 0x360   : > { %v2527_v3 = vpop.f32.mrb[166].mxu0  ;;  %v1824_v47 = vpop.f32.mrb[167].mxu1  ;;  %2086 = vmatmul.mubr.f32.gmra.mrb[16].mxu1 %v1389_v38  ;;  %v1418_v38 = vld [vmem:[#allocation6 + $0xfe8] sm:$0xff] }
 0x361   : > { %3376 = vst [vmem:[%s4341_s12 + $0x210] sm:$0xff] %v2979_v41  ;;  %v2528_v46 = vadd.f32 %v2527_v3, %v1822_v44  ;;  %v2529_v48 = vpop.f32.mrb[167].mxu0  ;;  %2791 = vmatmul.mubr.f32.gmra.mrb[16].mxu0 %v1391_v40  ;;  %2090 = vmatprep.mubr.f32.mxu1 %v1394_v42  ;;  %v1420_v40 = vld [vmem:[#allocation6 + $0xff8] sm:$0xff]  ;;  %v1419_v47 = vld [vmem:[#allocation6 + $0xff0] sm:$0xff] }
 0x362   : > { %2795 = vmatprep.mubr.f32.mxu0 %v1396_v43 }
 0x363   : > { %v2980_v10 = vadd.f32 %v4487_v16, %v2528_v46  ;;  %v1827_v52 = vpop.f32.mrb[168].mxu1  ;;  %v1417_v46 = vld [vmem:[#allocation6 + $0xfe0] sm:$0xff] }
 0x364   : > { %v2532_v53 = vpop.f32.mrb[168].mxu0  ;;  %v1829_v55 = vpop.f32.mrb[169].mxu1  ;;  %2091 = vmatmul.mubr.f32.gmra.mrb[18].mxu1 %v1393_v49 }
 0x365   : > { %3377 = vst [vmem:[%s4341_s12 + $0x218] sm:$0xff] %v2980_v10  ;;  %v2533_v54 = vadd.f32 %v2532_v53, %v1827_v52  ;;  %v2534_v56 = vpop.f32.mrb[169].mxu0  ;;  %2796 = vmatmul.mubr.f32.gmra.mrb[18].mxu0 %v1395_v6  ;;  %2095 = vmatprep.mubr.f32.mxu1 %v1398_v50 }
 0x366   : > { %2800 = vmatprep.mubr.f32.mxu0 %v1400_v51 }
 0x367   : > { %v2981_v59 = vadd.f32 %v4487_v16, %v2533_v54  ;;  %v1832_v62 = vpop.f32.mrb[170].mxu1 }
 0x368   : > { %v2537_v63 = vpop.f32.mrb[170].mxu0  ;;  %v1834_v1 = vpop.f32.mrb[171].mxu1  ;;  %2096 = vmatmul.mubr.f32.gmra.mrb[20].mxu1 %v1397_v57 }
 0x369   : > { %3378 = vst [vmem:[%s4341_s12 + $0x220] sm:$0xff] %v2981_v59  ;;  %v2538_v0 = vadd.f32 %v2537_v63, %v1832_v62  ;;  %v2539_v2 = vpop.f32.mrb[171].mxu0  ;;  %2801 = vmatmul.mubr.f32.gmra.mrb[20].mxu0 %v1399_v58  ;;  %2100 = vmatprep.mubr.f32.mxu1 %v1402_v60 }
 0x36a   : > { %2805 = vmatprep.mubr.f32.mxu0 %v1404_v61 }
 0x36b   : > { %v2982_v7 = vadd.f32 %v4487_v16, %v2538_v0  ;;  %v1837_v11 = vpop.f32.mrb[172].mxu1 }
 0x36c   : > { %v2542_v12 = vpop.f32.mrb[172].mxu0  ;;  %v1839_v14 = vpop.f32.mrb[173].mxu1  ;;  %2101 = vmatmul.mubr.f32.gmra.mrb[22].mxu1 %v1401_v4 }
 0x36d   : > { %3379 = vst [vmem:[%s4341_s12 + $0x228] sm:$0xff] %v2982_v7  ;;  %v2543_v13 = vadd.f32 %v2542_v12, %v1837_v11  ;;  %v2544_v15 = vpop.f32.mrb[173].mxu0  ;;  %2806 = vmatmul.mubr.f32.gmra.mrb[22].mxu0 %v1403_v5  ;;  %2105 = vmatprep.mubr.f32.mxu1 %v1406_v8 }
 0x36e   : > { %2810 = vmatprep.mubr.f32.mxu0 %v1408_v9 }
 0x36f   : > { %v2983_v18 = vadd.f32 %v4487_v16, %v2543_v13  ;;  %v1842_v21 = vpop.f32.mrb[174].mxu1 }
 0x370   : > { %v2547_v45 = vpop.f32.mrb[174].mxu0  ;;  %v1844_v23 = vpop.f32.mrb[175].mxu1  ;;  %2106 = vmatmul.mubr.f32.gmra.mrb[24].mxu1 %v1405_v39 }
 0x371   : > { %3380 = vst [vmem:[%s4341_s12 + $0x230] sm:$0xff] %v2983_v18  ;;  %v2548_v22 = vadd.f32 %v2547_v45, %v1842_v21  ;;  %v2549_v24 = vpop.f32.mrb[175].mxu0  ;;  %2811 = vmatmul.mubr.f32.gmra.mrb[24].mxu0 %v1407_v17  ;;  %2110 = vmatprep.mubr.f32.mxu1 %v1410_v19  ;;  %v4521_v23 = vstv %s3390_s26 }
 0x372   : > { %2815 = vmatprep.mubr.f32.mxu0 %v1412_v20 }
 0x373   : > { %v2984_v27 = vadd.f32 %v4487_v16, %v2548_v22  ;;  %v1847_v30 = vpop.f32.mrb[176].mxu1 }
 0x374   : > { %v2552_v31 = vpop.f32.mrb[176].mxu0  ;;  %v1849_v33 = vpop.f32.mrb[177].mxu1  ;;  %2111 = vmatmul.mubr.f32.gmra.mrb[26].mxu1 %v1409_v25 }
 0x375   : > { %3381 = vst [vmem:[%s4341_s12 + $0x238] sm:$0xff] %v2984_v27  ;;  %v2553_v32 = vadd.f32 %v2552_v31, %v1847_v30  ;;  %v2554_v34 = vpop.f32.mrb[177].mxu0  ;;  %2816 = vmatmul.mubr.f32.gmra.mrb[26].mxu0 %v1411_v26  ;;  %2115 = vmatprep.mubr.f32.mxu1 %v1414_v28 }
 0x376   : > { %2820 = vmatprep.mubr.f32.mxu0 %v1416_v29 }
 0x377   : > { %v2985_v37 = vadd.f32 %v4487_v16, %v2553_v32  ;;  %v1852_v41 = vpop.f32.mrb[178].mxu1 }
 0x378   : > { %v2557_v42 = vpop.f32.mrb[178].mxu0  ;;  %v1854_v44 = vpop.f32.mrb[179].mxu1  ;;  %2116 = vmatmul.mubr.f32.gmra.mrb[28].mxu1 %v1413_v35 }
 0x379   : > { %3382 = vst [vmem:[%s4341_s12 + $0x240] sm:$0xff] %v2985_v37  ;;  %v2558_v43 = vadd.f32 %v2557_v42, %v1852_v41  ;;  %v2559_v3 = vpop.f32.mrb[179].mxu0  ;;  %2821 = vmatmul.mubr.f32.gmra.mrb[28].mxu0 %v1415_v36  ;;  %2120 = vmatprep.mubr.f32.mxu1 %v1418_v38 }
 0x37a   : > { %2825 = vmatprep.mubr.f32.mxu0 %v1420_v40 }
 0x37b   : > { %v2986_v48 = vadd.f32 %v4487_v16, %v2558_v43  ;;  %v1857_v49 = vpop.f32.mrb[180].mxu1 }
 0x37c   : > { %v2562_v6 = vpop.f32.mrb[180].mxu0  ;;  %v1859_v50 = vpop.f32.mrb[181].mxu1  ;;  %2121 = vmatmul.mubr.f32.gmra.mrb[30].mxu1 %v1417_v46 }
 0x37d   : > { %3383 = vst [vmem:[%s4341_s12 + $0x248] sm:$0xff] %v2986_v48  ;;  %v2563_v10 = vadd.f32 %v2562_v6, %v1857_v49  ;;  %v2564_v51 = vpop.f32.mrb[181].mxu0  ;;  %2826 = vmatmul.mubr.f32.gmra.mrb[30].mxu0 %v1419_v47 }
 0x37f   : > { %v2987_v52 = vadd.f32 %v4487_v16, %v2563_v10  ;;  %v1862_v53 = vpop.f32.mrb[182].mxu1 }
 0x380   : > { %v2567_v54 = vpop.f32.mrb[182].mxu0  ;;  %v1864_v56 = vpop.f32.mrb[183].mxu1 }
 0x381   : > { %3384 = vst [vmem:[%s4341_s12 + $0x250] sm:$0xff] %v2987_v52  ;;  %v2568_v55 = vadd.f32 %v2567_v54, %v1862_v53  ;;  %v2569_v57 = vpop.f32.mrb[183].mxu0 }
 0x383   : > { %v2988_v58 = vadd.f32 %v4487_v16, %v2568_v55  ;;  %v1867_v59 = vpop.f32.mrb[184].mxu1 }
 0x384   : > { %v2572_v60 = vpop.f32.mrb[184].mxu0  ;;  %v1869_v62 = vpop.f32.mrb[185].mxu1 }
 0x385   : > { %3385 = vst [vmem:[%s4341_s12 + $0x258] sm:$0xff] %v2988_v58  ;;  %v2573_v61 = vadd.f32 %v2572_v60, %v1867_v59  ;;  %v2574_v63 = vpop.f32.mrb[185].mxu0 }
 0x387   : > { %v2989_v0 = vadd.f32 %v4487_v16, %v2573_v61  ;;  %v1872_v1 = vpop.f32.mrb[186].mxu1 }
 0x388   : > { %v2577_v2 = vpop.f32.mrb[186].mxu0  ;;  %v1874_v5 = vpop.f32.mrb[187].mxu1 }
 0x389   : > { %3386 = vst [vmem:[%s4341_s12 + $0x260] sm:$0xff] %v2989_v0  ;;  %v2578_v4 = vadd.f32 %v2577_v2, %v1872_v1  ;;  %v2579_v7 = vpop.f32.mrb[187].mxu0 }
 0x38b   : > { %v2990_v8 = vadd.f32 %v4487_v16, %v2578_v4  ;;  %v1877_v9 = vpop.f32.mrb[188].mxu1 }
 0x38c   : > { %v2582_v11 = vpop.f32.mrb[188].mxu0  ;;  %v1879_v13 = vpop.f32.mrb[189].mxu1 }
 0x38d   : > { %3387 = vst [vmem:[%s4341_s12 + $0x268] sm:$0xff] %v2990_v8  ;;  %v2583_v12 = vadd.f32 %v2582_v11, %v1877_v9  ;;  %v2584_v14 = vpop.f32.mrb[189].mxu0 }
 0x38f   : > { %v2991_v15 = vadd.f32 %v4487_v16, %v2583_v12  ;;  %v1882_v39 = vpop.f32.mrb[190].mxu1 }
 0x390   : > { %v2587_v17 = vpop.f32.mrb[190].mxu0  ;;  %v1884_v19 = vpop.f32.mrb[191].mxu1 }
 0x391   : > { %3388 = vst [vmem:[%s4341_s12 + $0x270] sm:$0xff] %v2991_v15  ;;  %v2588_v18 = vadd.f32 %v2587_v17, %v1882_v39  ;;  %v2589_v20 = vpop.f32.mrb[191].mxu0 }
 0x393   : > { %v2992_v21 = vadd.f32 %v4487_v16, %v2588_v18  ;;  %v1887_v45 = vpop.f32.mrb[192].mxu1 }
 0x394   : > { %v2592_v22 = vpop.f32.mrb[192].mxu0  ;;  %v1889_v25 = vpop.f32.mrb[193].mxu1 }
 0x395   : > { %3389 = vst [vmem:[%s4341_s12 + $0x278] sm:$0xff] %v2992_v21  ;;  %v2593_v24 = vadd.f32 %v2592_v22, %v1887_v45  ;;  %v2594_v26 = vpop.f32.mrb[193].mxu0 }
 0x397   : > { %v3013_v27 = vadd.f32 %v4521_v23, %v2593_v24  ;;  %v1892_v28 = vpop.f32.mrb[194].mxu1 }
 0x398   : > { %v2597_v29 = vpop.f32.mrb[194].mxu0  ;;  %v1894_v31 = vpop.f32.mrb[195].mxu1 }
 0x399   : > { %3391 = vst [vmem:[%s4341_s12 + $0x280] sm:$0xff] %v3013_v27  ;;  %v2598_v30 = vadd.f32 %v2597_v29, %v1892_v28  ;;  %v2599_v32 = vpop.f32.mrb[195].mxu0 }
 0x39b   : > { %v3014_v16 = vadd.f32 %v4521_v23, %v2598_v30  ;;  %v1897_v33 = vpop.f32.mrb[196].mxu1 }
 0x39c   : > { %v2602_v34 = vpop.f32.mrb[196].mxu0  ;;  %v1899_v36 = vpop.f32.mrb[197].mxu1 }
 0x39d   : > { %3392 = vst [vmem:[%s4341_s12 + $0x288] sm:$0xff] %v3014_v16  ;;  %v2603_v35 = vadd.f32 %v2602_v34, %v1897_v33  ;;  %v2604_v37 = vpop.f32.mrb[197].mxu0 }
 0x39f   : > { %v3015_v38 = vadd.f32 %v4521_v23, %v2603_v35  ;;  %v1902_v40 = vpop.f32.mrb[198].mxu1 }
 0x3a0   : > { %v2607_v41 = vpop.f32.mrb[198].mxu0  ;;  %v1904_v43 = vpop.f32.mrb[199].mxu1 }
 0x3a1   : > { %3393 = vst [vmem:[%s4341_s12 + $0x290] sm:$0xff] %v3015_v38  ;;  %v2608_v42 = vadd.f32 %v2607_v41, %v1902_v40  ;;  %v2609_v44 = vpop.f32.mrb[199].mxu0 }
 0x3a3   : > { %v3016_v3 = vadd.f32 %v4521_v23, %v2608_v42  ;;  %v1907_v46 = vpop.f32.mrb[200].mxu1 }
 0x3a4   : > { %v2612_v47 = vpop.f32.mrb[200].mxu0  ;;  %v1909_v49 = vpop.f32.mrb[201].mxu1 }
 0x3a5   : > { %3394 = vst [vmem:[%s4341_s12 + $0x298] sm:$0xff] %v3016_v3  ;;  %v2613_v48 = vadd.f32 %v2612_v47, %v1907_v46  ;;  %v2614_v6 = vpop.f32.mrb[201].mxu0 }
 0x3a7   : > { %v3017_v10 = vadd.f32 %v4521_v23, %v2613_v48  ;;  %v1912_v50 = vpop.f32.mrb[202].mxu1 }
 0x3a8   : > { %v2617_v51 = vpop.f32.mrb[202].mxu0  ;;  %v1914_v53 = vpop.f32.mrb[203].mxu1 }
 0x3a9   : > { %3395 = vst [vmem:[%s4341_s12 + $0x2a0] sm:$0xff] %v3017_v10  ;;  %v2618_v52 = vadd.f32 %v2617_v51, %v1912_v50  ;;  %v2619_v54 = vpop.f32.mrb[203].mxu0 }
 0x3ab   : > { %v3018_v55 = vadd.f32 %v4521_v23, %v2618_v52  ;;  %v1917_v56 = vpop.f32.mrb[204].mxu1 }
 0x3ac   : > { %v2622_v57 = vpop.f32.mrb[204].mxu0  ;;  %v1919_v59 = vpop.f32.mrb[205].mxu1 }
 0x3ad   : > { %3396 = vst [vmem:[%s4341_s12 + $0x2a8] sm:$0xff] %v3018_v55  ;;  %v2623_v58 = vadd.f32 %v2622_v57, %v1917_v56  ;;  %v2624_v60 = vpop.f32.mrb[205].mxu0  ;;  %v4555_v55 = vstv %s3407_s6 }
 0x3af   : > { %v3019_v61 = vadd.f32 %v4521_v23, %v2623_v58  ;;  %v1922_v62 = vpop.f32.mrb[206].mxu1 }
 0x3b0   : > { %v2627_v63 = vpop.f32.mrb[206].mxu0  ;;  %v1924_v1 = vpop.f32.mrb[207].mxu1 }
 0x3b1   : > { %3397 = vst [vmem:[%s4341_s12 + $0x2b0] sm:$0xff] %v3019_v61  ;;  %v2628_v0 = vadd.f32 %v2627_v63, %v1922_v62  ;;  %v2629_v2 = vpop.f32.mrb[207].mxu0 }
 0x3b3   : > { %v3020_v4 = vadd.f32 %v4521_v23, %v2628_v0  ;;  %v1927_v5 = vpop.f32.mrb[208].mxu1 }
 0x3b4   : > { %v2632_v7 = vpop.f32.mrb[208].mxu0  ;;  %v1929_v9 = vpop.f32.mrb[209].mxu1 }
 0x3b5   : > { %3398 = vst [vmem:[%s4341_s12 + $0x2b8] sm:$0xff] %v3020_v4  ;;  %v2633_v8 = vadd.f32 %v2632_v7, %v1927_v5  ;;  %v2634_v11 = vpop.f32.mrb[209].mxu0 }
 0x3b7   : > { %v3021_v12 = vadd.f32 %v4521_v23, %v2633_v8  ;;  %v1932_v13 = vpop.f32.mrb[210].mxu1 }
 0x3b8   : > { %v2637_v14 = vpop.f32.mrb[210].mxu0  ;;  %v1934_v39 = vpop.f32.mrb[211].mxu1 }
 0x3b9   : > { %3399 = vst [vmem:[%s4341_s12 + $0x2c0] sm:$0xff] %v3021_v12  ;;  %v2638_v15 = vadd.f32 %v2637_v14, %v1932_v13  ;;  %v2639_v17 = vpop.f32.mrb[211].mxu0 }
 0x3bb   : > { %v3022_v18 = vadd.f32 %v4521_v23, %v2638_v15  ;;  %v1937_v19 = vpop.f32.mrb[212].mxu1 }
 0x3bc   : > { %v2642_v20 = vpop.f32.mrb[212].mxu0  ;;  %v1939_v45 = vpop.f32.mrb[213].mxu1 }
 0x3bd   : > { %3400 = vst [vmem:[%s4341_s12 + $0x2c8] sm:$0xff] %v3022_v18  ;;  %v2643_v21 = vadd.f32 %v2642_v20, %v1937_v19  ;;  %v2644_v22 = vpop.f32.mrb[213].mxu0 }
 0x3bf   : > { %v3023_v24 = vadd.f32 %v4521_v23, %v2643_v21  ;;  %v1942_v25 = vpop.f32.mrb[214].mxu1 }
 0x3c0   : > { %v2647_v26 = vpop.f32.mrb[214].mxu0  ;;  %v1944_v28 = vpop.f32.mrb[215].mxu1 }
 0x3c1   : > { %3401 = vst [vmem:[%s4341_s12 + $0x2d0] sm:$0xff] %v3023_v24  ;;  %v2648_v27 = vadd.f32 %v2647_v26, %v1942_v25  ;;  %v2649_v29 = vpop.f32.mrb[215].mxu0 }
 0x3c3   : > { %v3024_v30 = vadd.f32 %v4521_v23, %v2648_v27  ;;  %v1947_v31 = vpop.f32.mrb[216].mxu1 }
 0x3c4   : > { %v2652_v32 = vpop.f32.mrb[216].mxu0  ;;  %v1949_v33 = vpop.f32.mrb[217].mxu1 }
 0x3c5   : > { %3402 = vst [vmem:[%s4341_s12 + $0x2d8] sm:$0xff] %v3024_v30  ;;  %v2653_v16 = vadd.f32 %v2652_v32, %v1947_v31  ;;  %v2654_v34 = vpop.f32.mrb[217].mxu0 }
 0x3c7   : > { %v3025_v35 = vadd.f32 %v4521_v23, %v2653_v16  ;;  %v1952_v36 = vpop.f32.mrb[218].mxu1 }
 0x3c8   : > { %v2657_v37 = vpop.f32.mrb[218].mxu0  ;;  %v1954_v40 = vpop.f32.mrb[219].mxu1 }
 0x3c9   : > { %3403 = vst [vmem:[%s4341_s12 + $0x2e0] sm:$0xff] %v3025_v35  ;;  %v2658_v38 = vadd.f32 %v2657_v37, %v1952_v36  ;;  %v2659_v41 = vpop.f32.mrb[219].mxu0 }
 0x3cb   : > { %v3026_v42 = vadd.f32 %v4521_v23, %v2658_v38  ;;  %v1957_v43 = vpop.f32.mrb[220].mxu1 }
 0x3cc   : > { %v2662_v44 = vpop.f32.mrb[220].mxu0  ;;  %v1959_v46 = vpop.f32.mrb[221].mxu1 }
 0x3cd   : > { %3404 = vst [vmem:[%s4341_s12 + $0x2e8] sm:$0xff] %v3026_v42  ;;  %v2663_v3 = vadd.f32 %v2662_v44, %v1957_v43  ;;  %v2664_v47 = vpop.f32.mrb[221].mxu0 }
 0x3cf   : > { %v3027_v48 = vadd.f32 %v4521_v23, %v2663_v3  ;;  %v1962_v49 = vpop.f32.mrb[222].mxu1 }
 0x3d0   : > { %v2667_v6 = vpop.f32.mrb[222].mxu0  ;;  %v1964_v50 = vpop.f32.mrb[223].mxu1 }
 0x3d1   : > { %3405 = vst [vmem:[%s4341_s12 + $0x2f0] sm:$0xff] %v3027_v48  ;;  %v2668_v10 = vadd.f32 %v2667_v6, %v1962_v49  ;;  %v2669_v51 = vpop.f32.mrb[223].mxu0 }
 0x3d3   : > { %v3028_v52 = vadd.f32 %v4521_v23, %v2668_v10  ;;  %v1967_v53 = vpop.f32.mrb[224].mxu1 }
 0x3d4   : > { %v2672_v54 = vpop.f32.mrb[224].mxu0  ;;  %v1969_v57 = vpop.f32.mrb[225].mxu1 }
 0x3d5   : > { %3406 = vst [vmem:[%s4341_s12 + $0x2f8] sm:$0xff] %v3028_v52  ;;  %v2673_v56 = vadd.f32 %v2672_v54, %v1967_v53  ;;  %v2674_v58 = vpop.f32.mrb[225].mxu0 }
 0x3d7   : > { %v3049_v59 = vadd.f32 %v4555_v55, %v2673_v56  ;;  %v1972_v60 = vpop.f32.mrb[226].mxu1 }
 0x3d8   : > { %v2677_v61 = vpop.f32.mrb[226].mxu0  ;;  %v1974_v63 = vpop.f32.mrb[227].mxu1 }
 0x3d9   : > { %3408 = vst [vmem:[%s4341_s12 + $0x300] sm:$0xff] %v3049_v59  ;;  %v2678_v62 = vadd.f32 %v2677_v61, %v1972_v60  ;;  %v2679_v0 = vpop.f32.mrb[227].mxu0 }
 0x3db   : > { %v3050_v23 = vadd.f32 %v4555_v55, %v2678_v62  ;;  %v1977_v1 = vpop.f32.mrb[228].mxu1 }
 0x3dc   : > { %v2682_v2 = vpop.f32.mrb[228].mxu0  ;;  %v1979_v5 = vpop.f32.mrb[229].mxu1 }
 0x3dd   : > { %3409 = vst [vmem:[%s4341_s12 + $0x308] sm:$0xff] %v3050_v23  ;;  %v2683_v4 = vadd.f32 %v2682_v2, %v1977_v1  ;;  %v2684_v7 = vpop.f32.mrb[229].mxu0 }
 0x3df   : > { %v3051_v8 = vadd.f32 %v4555_v55, %v2683_v4  ;;  %v1982_v9 = vpop.f32.mrb[230].mxu1 }
 0x3e0   : > { %v2687_v11 = vpop.f32.mrb[230].mxu0  ;;  %v1984_v13 = vpop.f32.mrb[231].mxu1 }
 0x3e1   : > { %3410 = vst [vmem:[%s4341_s12 + $0x310] sm:$0xff] %v3051_v8  ;;  %v2688_v12 = vadd.f32 %v2687_v11, %v1982_v9  ;;  %v2689_v14 = vpop.f32.mrb[231].mxu0 }
 0x3e3   : > { %v3052_v15 = vadd.f32 %v4555_v55, %v2688_v12  ;;  %v1987_v39 = vpop.f32.mrb[232].mxu1 }
 0x3e4   : > { %v2692_v17 = vpop.f32.mrb[232].mxu0  ;;  %v1989_v19 = vpop.f32.mrb[233].mxu1 }
 0x3e5   : > { %3411 = vst [vmem:[%s4341_s12 + $0x318] sm:$0xff] %v3052_v15  ;;  %v2693_v18 = vadd.f32 %v2692_v17, %v1987_v39  ;;  %v2694_v20 = vpop.f32.mrb[233].mxu0 }
 0x3e7   : > { %v3053_v21 = vadd.f32 %v4555_v55, %v2693_v18  ;;  %v1992_v45 = vpop.f32.mrb[234].mxu1 }
 0x3e8   : > { %v2697_v22 = vpop.f32.mrb[234].mxu0  ;;  %v1994_v25 = vpop.f32.mrb[235].mxu1 }
 0x3e9   : > { %3412 = vst [vmem:[%s4341_s12 + $0x320] sm:$0xff] %v3053_v21  ;;  %v2698_v24 = vadd.f32 %v2697_v22, %v1992_v45  ;;  %v2699_v26 = vpop.f32.mrb[235].mxu0 }
 0x3eb   : > { %v3054_v27 = vadd.f32 %v4555_v55, %v2698_v24  ;;  %v1997_v28 = vpop.f32.mrb[236].mxu1 }
 0x3ec   : > { %v2702_v29 = vpop.f32.mrb[236].mxu0  ;;  %v1999_v31 = vpop.f32.mrb[237].mxu1 }
 0x3ed   : > { %3413 = vst [vmem:[%s4341_s12 + $0x328] sm:$0xff] %v3054_v27  ;;  %v2703_v30 = vadd.f32 %v2702_v29, %v1997_v28  ;;  %v2704_v32 = vpop.f32.mrb[237].mxu0  ;;  %v4589_v27 = vstv %s3424_s9 }
 0x3ef   : > { %v3055_v16 = vadd.f32 %v4555_v55, %v2703_v30  ;;  %v2002_v33 = vpop.f32.mrb[238].mxu1 }
 0x3f0   : > { %v2707_v34 = vpop.f32.mrb[238].mxu0  ;;  %v2004_v36 = vpop.f32.mrb[239].mxu1 }
 0x3f1   : > { %3414 = vst [vmem:[%s4341_s12 + $0x330] sm:$0xff] %v3055_v16  ;;  %v2708_v35 = vadd.f32 %v2707_v34, %v2002_v33  ;;  %v2709_v37 = vpop.f32.mrb[239].mxu0 }
 0x3f3   : > { %v3056_v38 = vadd.f32 %v4555_v55, %v2708_v35  ;;  %v2007_v40 = vpop.f32.mrb[240].mxu1 }
 0x3f4   : > { %v2712_v41 = vpop.f32.mrb[240].mxu0  ;;  %v2009_v43 = vpop.f32.mrb[241].mxu1 }
 0x3f5   : > { %3415 = vst [vmem:[%s4341_s12 + $0x338] sm:$0xff] %v3056_v38  ;;  %v2713_v42 = vadd.f32 %v2712_v41, %v2007_v40  ;;  %v2714_v44 = vpop.f32.mrb[241].mxu0 }
 0x3f7   : > { %v3057_v3 = vadd.f32 %v4555_v55, %v2713_v42  ;;  %v2012_v46 = vpop.f32.mrb[242].mxu1 }
 0x3f8   : > { %v2717_v47 = vpop.f32.mrb[242].mxu0  ;;  %v2014_v49 = vpop.f32.mrb[243].mxu1 }
 0x3f9   : > { %3416 = vst [vmem:[%s4341_s12 + $0x340] sm:$0xff] %v3057_v3  ;;  %v2718_v48 = vadd.f32 %v2717_v47, %v2012_v46  ;;  %v2719_v6 = vpop.f32.mrb[243].mxu0 }
 0x3fb   : > { %v3058_v10 = vadd.f32 %v4555_v55, %v2718_v48  ;;  %v2017_v50 = vpop.f32.mrb[244].mxu1 }
 0x3fc   : > { %v2722_v51 = vpop.f32.mrb[244].mxu0  ;;  %v2019_v53 = vpop.f32.mrb[245].mxu1 }
 0x3fd   : > { %3417 = vst [vmem:[%s4341_s12 + $0x348] sm:$0xff] %v3058_v10  ;;  %v2723_v52 = vadd.f32 %v2722_v51, %v2017_v50  ;;  %v2724_v54 = vpop.f32.mrb[245].mxu0 }
 0x3ff   : > { %v3059_v56 = vadd.f32 %v4555_v55, %v2723_v52  ;;  %v2022_v57 = vpop.f32.mrb[246].mxu1 }
 0x400   : > { %v2727_v58 = vpop.f32.mrb[246].mxu0  ;;  %v2024_v60 = vpop.f32.mrb[247].mxu1 }
 0x401   : > { %3418 = vst [vmem:[%s4341_s12 + $0x350] sm:$0xff] %v3059_v56  ;;  %v2728_v59 = vadd.f32 %v2727_v58, %v2022_v57  ;;  %v2729_v61 = vpop.f32.mrb[247].mxu0 }
 0x403   : > { %v3060_v62 = vadd.f32 %v4555_v55, %v2728_v59  ;;  %v2027_v63 = vpop.f32.mrb[248].mxu1 }
 0x404   : > { %v2732_v0 = vpop.f32.mrb[248].mxu0  ;;  %v2029_v1 = vpop.f32.mrb[249].mxu1 }
 0x405   : > { %3419 = vst [vmem:[%s4341_s12 + $0x358] sm:$0xff] %v3060_v62  ;;  %v2733_v23 = vadd.f32 %v2732_v0, %v2027_v63  ;;  %v2734_v2 = vpop.f32.mrb[249].mxu0 }
 0x407   : > { %v3061_v4 = vadd.f32 %v4555_v55, %v2733_v23  ;;  %v2032_v5 = vpop.f32.mrb[250].mxu1 }
 0x408   : > { %v2737_v7 = vpop.f32.mrb[250].mxu0  ;;  %v2034_v9 = vpop.f32.mrb[251].mxu1 }
 0x409   : > { %3420 = vst [vmem:[%s4341_s12 + $0x360] sm:$0xff] %v3061_v4  ;;  %v2738_v8 = vadd.f32 %v2737_v7, %v2032_v5  ;;  %v2739_v11 = vpop.f32.mrb[251].mxu0 }
 0x40b   : > { %v3062_v12 = vadd.f32 %v4555_v55, %v2738_v8  ;;  %v2037_v13 = vpop.f32.mrb[252].mxu1 }
 0x40c   : > { %v2742_v14 = vpop.f32.mrb[252].mxu0  ;;  %v2039_v39 = vpop.f32.mrb[253].mxu1 }
 0x40d   : > { %3421 = vst [vmem:[%s4341_s12 + $0x368] sm:$0xff] %v3062_v12  ;;  %v2743_v15 = vadd.f32 %v2742_v14, %v2037_v13  ;;  %v2744_v17 = vpop.f32.mrb[253].mxu0 }
 0x40f   : > { %v3063_v18 = vadd.f32 %v4555_v55, %v2743_v15  ;;  %v2042_v19 = vpop.f32.mrb[254].mxu1 }
 0x410   : > { %v2747_v20 = vpop.f32.mrb[254].mxu0  ;;  %v2044_v45 = vpop.f32.mrb[255].mxu1 }
 0x411   : > { %3422 = vst [vmem:[%s4341_s12 + $0x370] sm:$0xff] %v3063_v18  ;;  %v2748_v21 = vadd.f32 %v2747_v20, %v2042_v19  ;;  %v2749_v22 = vpop.f32.mrb[255].mxu0 }
 0x413   : > { %v3064_v24 = vadd.f32 %v4555_v55, %v2748_v21  ;;  %v2047_v25 = vpop.f32.mrb[0].mxu1 }
 0x414   : > { %v2752_v26 = vpop.f32.mrb[0].mxu0  ;;  %v2049_v29 = vpop.f32.mrb[1].mxu1 }
 0x415   : > { %3423 = vst [vmem:[%s4341_s12 + $0x378] sm:$0xff] %v3064_v24  ;;  %v2753_v28 = vadd.f32 %v2752_v26, %v2047_v25  ;;  %v2754_v30 = vpop.f32.mrb[1].mxu0 }
 0x417   : > { %v3085_v31 = vadd.f32 %v4589_v27, %v2753_v28  ;;  %v2052_v32 = vpop.f32.mrb[2].mxu1 }
 0x418   : > { %v2757_v16 = vpop.f32.mrb[2].mxu0  ;;  %v2054_v34 = vpop.f32.mrb[3].mxu1 }
 0x419   : > { %3425 = vst [vmem:[%s4341_s12 + $0x380] sm:$0xff] %v3085_v31  ;;  %v2758_v33 = vadd.f32 %v2757_v16, %v2052_v32  ;;  %v2759_v35 = vpop.f32.mrb[3].mxu0 }
 0x41b   : > { %v3086_v55 = vadd.f32 %v4589_v27, %v2758_v33  ;;  %v2057_v36 = vpop.f32.mrb[4].mxu1 }
 0x41c   : > { %v2762_v37 = vpop.f32.mrb[4].mxu0  ;;  %v2059_v40 = vpop.f32.mrb[5].mxu1 }
 0x41d   : > { %3426 = vst [vmem:[%s4341_s12 + $0x388] sm:$0xff] %v3086_v55  ;;  %v2763_v38 = vadd.f32 %v2762_v37, %v2057_v36  ;;  %v2764_v41 = vpop.f32.mrb[5].mxu0 }
 0x41f   : > { %v3087_v42 = vadd.f32 %v4589_v27, %v2763_v38  ;;  %v2062_v43 = vpop.f32.mrb[6].mxu1 }
 0x420   : > { %v2767_v44 = vpop.f32.mrb[6].mxu0  ;;  %v2064_v46 = vpop.f32.mrb[7].mxu1 }
 0x421   : > { %3427 = vst [vmem:[%s4341_s12 + $0x390] sm:$0xff] %v3087_v42  ;;  %v2768_v3 = vadd.f32 %v2767_v44, %v2062_v43  ;;  %v2769_v47 = vpop.f32.mrb[7].mxu0 }
 0x423   : > { %v3088_v48 = vadd.f32 %v4589_v27, %v2768_v3  ;;  %v2067_v49 = vpop.f32.mrb[8].mxu1 }
 0x424   : > { %v2772_v6 = vpop.f32.mrb[8].mxu0  ;;  %v2069_v50 = vpop.f32.mrb[9].mxu1 }
 0x425   : > { %3428 = vst [vmem:[%s4341_s12 + $0x398] sm:$0xff] %v3088_v48  ;;  %v2773_v10 = vadd.f32 %v2772_v6, %v2067_v49  ;;  %v2774_v51 = vpop.f32.mrb[9].mxu0 }
 0x427   : > { %v3089_v52 = vadd.f32 %v4589_v27, %v2773_v10  ;;  %v2072_v53 = vpop.f32.mrb[10].mxu1 }
 0x428   : > { %v2777_v54 = vpop.f32.mrb[10].mxu0  ;;  %v2074_v57 = vpop.f32.mrb[11].mxu1 }
 0x429   : > { %3429 = vst [vmem:[%s4341_s12 + $0x3a0] sm:$0xff] %v3089_v52  ;;  %v2778_v56 = vadd.f32 %v2777_v54, %v2072_v53  ;;  %v2779_v58 = vpop.f32.mrb[11].mxu0 }
 0x42b   : > { %v3090_v59 = vadd.f32 %v4589_v27, %v2778_v56  ;;  %v2077_v60 = vpop.f32.mrb[12].mxu1 }
 0x42c   : > { %v2782_v61 = vpop.f32.mrb[12].mxu0  ;;  %v2079_v63 = vpop.f32.mrb[13].mxu1 }
 0x42d   : > { %3430 = vst [vmem:[%s4341_s12 + $0x3a8] sm:$0xff] %v3090_v59  ;;  %v2783_v62 = vadd.f32 %v2782_v61, %v2077_v60  ;;  %v2784_v0 = vpop.f32.mrb[13].mxu0 }
 0x42f   : > { %v3091_v23 = vadd.f32 %v4589_v27, %v2783_v62  ;;  %v2082_v1 = vpop.f32.mrb[14].mxu1 }
 0x430   : > { %v2787_v2 = vpop.f32.mrb[14].mxu0  ;;  %v2084_v5 = vpop.f32.mrb[15].mxu1 }
 0x431   : > { %3431 = vst [vmem:[%s4341_s12 + $0x3b0] sm:$0xff] %v3091_v23  ;;  %v2788_v4 = vadd.f32 %v2787_v2, %v2082_v1  ;;  %v2789_v7 = vpop.f32.mrb[15].mxu0 }
 0x433   : > { %v3092_v8 = vadd.f32 %v4589_v27, %v2788_v4  ;;  %v2087_v9 = vpop.f32.mrb[16].mxu1 }
 0x434   : > { %v2792_v11 = vpop.f32.mrb[16].mxu0  ;;  %v2089_v13 = vpop.f32.mrb[17].mxu1 }
 0x435   : > { %3432 = vst [vmem:[%s4341_s12 + $0x3b8] sm:$0xff] %v3092_v8  ;;  %v2793_v12 = vadd.f32 %v2792_v11, %v2087_v9  ;;  %v2794_v14 = vpop.f32.mrb[17].mxu0 }
 0x437   : > { %v3093_v15 = vadd.f32 %v4589_v27, %v2793_v12  ;;  %v2092_v39 = vpop.f32.mrb[18].mxu1 }
 0x438   : > { %v2797_v17 = vpop.f32.mrb[18].mxu0  ;;  %v2094_v19 = vpop.f32.mrb[19].mxu1 }
 0x439   : > { %3433 = vst [vmem:[%s4341_s12 + $0x3c0] sm:$0xff] %v3093_v15  ;;  %v2798_v18 = vadd.f32 %v2797_v17, %v2092_v39  ;;  %v2799_v20 = vpop.f32.mrb[19].mxu0 }
 0x43b   : > { %v3094_v21 = vadd.f32 %v4589_v27, %v2798_v18  ;;  %v2097_v45 = vpop.f32.mrb[20].mxu1 }
 0x43c   : > { %v2802_v22 = vpop.f32.mrb[20].mxu0  ;;  %v2099_v25 = vpop.f32.mrb[21].mxu1 }
 0x43d   : > { %3434 = vst [vmem:[%s4341_s12 + $0x3c8] sm:$0xff] %v3094_v21  ;;  %v2803_v24 = vadd.f32 %v2802_v22, %v2097_v45  ;;  %v2804_v26 = vpop.f32.mrb[21].mxu0 }
 0x43f   : > { %v3095_v28 = vadd.f32 %v4589_v27, %v2803_v24  ;;  %v2102_v29 = vpop.f32.mrb[22].mxu1 }
 0x440   : > { %v2807_v30 = vpop.f32.mrb[22].mxu0  ;;  %v2104_v32 = vpop.f32.mrb[23].mxu1 }
 0x441   : > { %3435 = vst [vmem:[%s4341_s12 + $0x3d0] sm:$0xff] %v3095_v28  ;;  %v2808_v31 = vadd.f32 %v2807_v30, %v2102_v29  ;;  %v2809_v16 = vpop.f32.mrb[23].mxu0 }
 0x443   : > { %v3096_v33 = vadd.f32 %v4589_v27, %v2808_v31  ;;  %v2107_v34 = vpop.f32.mrb[24].mxu1 }
 0x444   : > { %v2812_v35 = vpop.f32.mrb[24].mxu0  ;;  %v2109_v36 = vpop.f32.mrb[25].mxu1 }
 0x445   : > { %3436 = vst [vmem:[%s4341_s12 + $0x3d8] sm:$0xff] %v3096_v33  ;;  %v2813_v55 = vadd.f32 %v2812_v35, %v2107_v34  ;;  %v2814_v37 = vpop.f32.mrb[25].mxu0 }
 0x447   : > { %v3097_v38 = vadd.f32 %v4589_v27, %v2813_v55  ;;  %v2112_v40 = vpop.f32.mrb[26].mxu1 }
 0x448   : > { %v2817_v41 = vpop.f32.mrb[26].mxu0  ;;  %v2114_v43 = vpop.f32.mrb[27].mxu1 }
 0x449   : > { %3437 = vst [vmem:[%s4341_s12 + $0x3e0] sm:$0xff] %v3097_v38  ;;  %v2818_v42 = vadd.f32 %v2817_v41, %v2112_v40  ;;  %v2819_v44 = vpop.f32.mrb[27].mxu0 }
 0x44b   : > { %v3098_v3 = vadd.f32 %v4589_v27, %v2818_v42  ;;  %v2117_v46 = vpop.f32.mrb[28].mxu1 }
 0x44c   : > { %v2822_v47 = vpop.f32.mrb[28].mxu0  ;;  %v2119_v49 = vpop.f32.mrb[29].mxu1 }
 0x44d   : > { %3438 = vst [vmem:[%s4341_s12 + $0x3e8] sm:$0xff] %v3098_v3  ;;  %v2823_v48 = vadd.f32 %v2822_v47, %v2117_v46  ;;  %v2824_v6 = vpop.f32.mrb[29].mxu0 }
 0x44f   : > { %v3099_v10 = vadd.f32 %v4589_v27, %v2823_v48  ;;  %v2122_v50 = vpop.f32.mrb[30].mxu1 }
 0x450   : > { %v2827_v51 = vpop.f32.mrb[30].mxu0  ;;  %v2124_v53 = vpop.f32.mrb[31].mxu1 }
 0x451   : > { %3439 = vst [vmem:[%s4341_s12 + $0x3f0] sm:$0xff] %v3099_v10  ;;  %v2828_v52 = vadd.f32 %v2827_v51, %v2122_v50  ;;  %v2829_v54 = vpop.f32.mrb[31].mxu0 }
 0x453   : > { %v3100_v56 = vadd.f32 %v4589_v27, %v2828_v52 }
 0x455   : > { %3440 = vst [vmem:[%s4341_s12 + $0x3f8] sm:$0xff] %v3100_v56 }
 0x456   : > { %3903 = shalt.err (!%p3900_p4)
}
 0x457   : > { %s3904_s10 = scalar_lea.hbm %s4627_s21, 16384  ;;  %s3908_s22 = scalar_lea.hbm %s4685_s4, 32768 }
 0x458   : > { %p3905_p8 = scmp.ne.s32.totalorder %s4627_s21, %s3904_s10  ;;  %p3909_p2 = scmp.lt.u32.totalorder %s4627_s21, %s4685_s4 }
 0x459   : > { %p3910_p3 = scmp.lt.u32.totalorder %s3908_s22, %s3904_s10  ;;  %p3912_p1 = scmp.lt.u32.totalorder %s3904_s10, %s4627_s21 }
 0x45a   : > { %p3906_p10 = pnand %p3905_p8, %p4700_p5 }
 0x45b   : > { %p3911_p13 = por %p3910_p3, %p3909_p2 }
 0x45c   : > { %p3907_p11 = pneg %p3906_p10 }
 0x45d   : > { %p3913_p6 = por %p3912_p1, %p3911_p13 }
 0x45f   : > { %p3914_p7 = pnand %p3913_p6, %p3907_p11 }
 0x461   : > { %3917 = shalt.err (!%p3914_p7)
}
 0x462   : > { %s3991_s6 = smov 128   ;;  %s3992_s9 = smov 8  }
 0x463   : > { %3740 = dma.vmem_to_hbm [thread:$0]  (%p4700_p5), %s4629_s29, 16384, %s4627_s21, %s4635_s18, %s3991_s6, %s3991_s6, %s3992_s9  }
 0x464 PF: > { %p3762_p9 = scmp.ge.s32.totalorder %s3980_s20, 2  ;;  %s3150_s5 = sand.u32 1, %s3960_s15  }
 0x465   : > { %p4701_p12 = scmp.ne.s32.totalorder %s4693_s27, 0  ;;  %s3151_s7 = scalar_lea.sflag [#allocation4], %s3150_s5 }
 0x467   : > { %p3753_p0 = pnand %p3762_p9, %p4701_p12 }
 0x469   : > { %3955 = dma.done.wait (!%p3753_p0), %s3151_s7, 16384  }
 0x46a   : > { %3957 = vsyncadd (!%p3753_p0), %s3151_s7, 4294950912  ;;  %s20_s20 = sadd.s32 1, %s3980_s20   ;;  %s4702_s25 = sld [smem:[#allocation14_spill]] }
 0x46b   : > { %p17_p4 = scmp.ge.s32.totalorder %s20_s20, 4   ;;  %s4703_s15 = smov %s3964_s16 }
 0x46c   : > { %s4704_s16 = smov %s3968_s17  ;;  %s4705_s17 = smov %s4071_s28 }
 0x46d   : > { %s4706_s18 = smov %s3976_s19  ;;  %19 = sbr.rel (!%p17_p4) target bundleno = 7 (0x7), region = 93 }
 0x470   : > { %s4707_s19 = smov %s4702_s25 }
 0x474   :  { %3156 = vsyncpa [#allocation3], 1 }
 0x475   :  { %3158 = vsyncpa [#allocation3 + $0x1], 1 }
 0x476   :  { %3159 = vsyncpa [#allocation7], 1 }
 0x477   :  { %3160 = vsyncpa [#allocation4], 1 }
 0x478   :  { %3162 = vsyncpa [#allocation4 + $0x1], 1 }
 0x479   :  { %3163 = vsyncpa [#allocation5], 1 }
 0x47a   :  { %3165 = vsyncpa [#allocation5 + $0x1], 1 }

</bundles_post_ra>
